<compile_context>
chip_gen: v5e
topology: v5e:2x2
jax: 0.10.0
libtpu: 0.0.40
codegen_flags: <defaults>
</compile_context>

<pallas_src>
import jax
import jax.numpy as jnp
from jax import lax
from jax.experimental import pallas as pl
from jax.experimental.pallas import tpu as pltpu


def _round_up(n, m):
    return ((n + m - 1) // m) * m


# ----------------------------- fused LSTM layer kernel -----------------------------

def _make_lstm_kernel(t_chunk, b_blk, h_pad, fuse_linear):
    """Kernel factory. Grid = (batch_block, time_chunk); time_chunk is sequential."""
    g = 4 * h_pad

    def kernel(*refs):
        if fuse_linear:
            (len_ref, x_ref, wih_ref, whh_ref, b_ref, wout_ref, bout_ref,
             out_ref, hfin_ref, y_ref, pg_sc, h_sc, c_sc) = refs
        else:
            (len_ref, x_ref, wih_ref, whh_ref, b_ref,
             out_ref, hfin_ref, pg_sc, h_sc, c_sc) = refs

        tc = pl.program_id(1)
        nt = pl.num_programs(1)

        @pl.when(tc == 0)
        def _():
            h_sc[...] = jnp.zeros_like(h_sc)
            c_sc[...] = jnp.zeros_like(c_sc)

        # -- hoisted input projection: one well-shaped MXU matmul for the whole chunk --
        d_in = x_ref.shape[-1]
        xm = x_ref[...].reshape(t_chunk * b_blk, d_in).astype(jnp.bfloat16)
        pg = (jnp.dot(xm, wih_ref[...], preferred_element_type=jnp.float32)
              + b_ref[...])                                          # (T_CHUNK*B_blk, 4Hp) f32
        pg_sc[...] = pg.reshape(t_chunk, b_blk, g)

        lengths = len_ref[...]                                       # (B_blk, 1) int32

        # -- sequential recurrence over the chunk: only h @ W_hh on the critical path --
        def step(j, carry):
            t = tc * t_chunk + j
            gates = pg_sc[j] + jnp.dot(h_sc[...].astype(jnp.bfloat16), whh_ref[...],
                                       preferred_element_type=jnp.float32)   # (B_blk, 4Hp)
            # PyTorch gate order: i, f, g, o — each slice is a lane-aligned 128-multiple.
            i_g = jax.nn.sigmoid(gates[:, 0 * h_pad:1 * h_pad])
            f_g = jax.nn.sigmoid(gates[:, 1 * h_pad:2 * h_pad])
            g_g = jnp.tanh(gates[:, 2 * h_pad:3 * h_pad])
            o_g = jax.nn.sigmoid(gates[:, 3 * h_pad:4 * h_pad])

            c_new = f_g * c_sc[...] + i_g * g_g
            h_new = o_g * jnp.tanh(c_new)

            valid = lengths > t                                      # (B_blk, 1) bool
            h_sc[...] = jnp.where(valid, h_new, h_sc[...])
            c_sc[...] = jnp.where(valid, c_new, c_sc[...])
            out_ref[j] = jnp.where(valid, h_new, 0.0)                # zero-pad past length
            return carry

        lax.fori_loop(0, t_chunk, step, 0, unroll=bool(t_chunk <= 32))

        # -- final hidden (and fused Linear) written ONCE, on the last time chunk --
        @pl.when(tc == nt - 1)
        def _():
            hfin_ref[...] = h_sc[...]
            if fuse_linear:
                # TODO(synk): self.dropout(h) before the Linear is identity in eval mode.
                y_ref[...] = (jnp.dot(h_sc[...].astype(jnp.bfloat16), wout_ref[...],
                                      preferred_element_type=jnp.float32)
                              + bout_ref[...])

    return kernel


def lstm_layer(x_tm, lengths2, w_ih, w_hh, bias, w_out=None, b_out=None,
               *, t_chunk, b_blk=8):
    """One LSTM layer over padded, time-major input.

    x_tm:     (Tp, Bp, D) f32, Tp multiple of t_chunk, Bp multiple of b_blk
    lengths2: (Bp, 1) int32
    w_ih:     (D, 4Hp) bf16   (gate-padded, pre-transposed)
    w_hh:     (Hp, 4Hp) bf16
    bias:     (1, 4Hp) f32    (b_ih + b_hh, gate-padded)
    w_out/b_out (optional): (Hp, Op) bf16 / (1, Op) f32 — fuses the output Linear.

    Returns (states (Tp,Bp,Hp) f32, h_final (Bp,Hp) f32[, y (Bp,Op) f32]).
    """
    Tp, Bp, D = x_tm.shape
    Hp = w_hh.shape[0]
    G = 4 * Hp
    nt = Tp // t_chunk
    nb = Bp // b_blk
    fuse = w_out is not None

    kernel = _make_lstm_kernel(t_chunk, b_blk, Hp, fuse)

    in_specs = [
        pl.BlockSpec((b_blk, 1), lambda b, t: (b, 0)),               # lengths
        pl.BlockSpec((t_chunk, b_blk, D), lambda b, t: (t, b, 0)),   # x time-chunk
        # TODO(synk): at very large H on v7x (64 MiB VMEM), switch these constant
        # weight blocks to memory_space=pl.ANY + a single manual make_async_copy
        # (single-buffered) instead of pipelined (double-buffered) blocks.
        pl.BlockSpec((D, G), lambda b, t: (0, 0)),                   # W_ih (resident)
        pl.BlockSpec((Hp, G), lambda b, t: (0, 0)),                  # W_hh (resident)
        pl.BlockSpec((1, G), lambda b, t: (0, 0)),                   # bias (resident)
    ]
    out_specs = [
        pl.BlockSpec((t_chunk, b_blk, Hp), lambda b, t: (t, b, 0)),  # per-step hiddens
        pl.BlockSpec((b_blk, Hp), lambda b, t: (b, 0)),              # final hidden (resident)
    ]
    out_shape = [
        jax.ShapeDtypeStruct((Tp, Bp, Hp), jnp.float32),
        jax.ShapeDtypeStruct((Bp, Hp), jnp.float32),
    ]
    args = [lengths2, x_tm, w_ih, w_hh, bias]
    if fuse:
        Op = w_out.shape[1]
        in_specs += [pl.BlockSpec((Hp, Op), lambda b, t: (0, 0)),    # W_out (resident)
                     pl.BlockSpec((1, Op), lambda b, t: (0, 0))]     # b_out (resident)
        out_specs += [pl.BlockSpec((b_blk, Op), lambda b, t: (b, 0))]
        out_shape += [jax.ShapeDtypeStruct((Bp, Op), jnp.float32)]
        args += [w_out, b_out]

    grid_spec = pltpu.PrefetchScalarGridSpec(
        num_scalar_prefetch=0,
        grid=(nb, nt),                        # batch blocks (parallel) x time chunks (sequential)
        in_specs=in_specs,
        out_specs=out_specs,
        scratch_shapes=[
            pltpu.VMEM((t_chunk, b_blk, G), jnp.float32),   # pregates for the chunk
            pltpu.VMEM((b_blk, Hp), jnp.float32),           # h carry
            pltpu.VMEM((b_blk, Hp), jnp.float32),           # c carry
        ],
    )
    return pl.pallas_call(
        kernel,
        grid_spec=grid_spec,
        out_shape=tuple(out_shape),
        compiler_params=pltpu.CompilerParams(
            dimension_semantics=("parallel", "arbitrary"),
            vmem_limit_bytes=32 * 1024 * 1024),
    )(*args)


# --------------------------- parameters & padding helpers ---------------------------

def init_params(key, input_size, hidden_size, output_size, num_layers):
    """Uniform(-1/sqrt(H), 1/sqrt(H)) init, matching torch nn.LSTM / nn.Linear scale.

    Weights stored pre-transposed: w_ih (D_in, 4H), w_hh (H, 4H); the two PyTorch
    biases are pre-summed into a single (1, 4H) row.
    """
    k = 1.0 / float(jnp.sqrt(jnp.float32(hidden_size)))
    layers = []
    for l in range(num_layers):
        d_in = input_size if l == 0 else hidden_size
        k0, k1, k2, k3, key = jax.random.split(key, 5)
        w_ih = jax.random.uniform(k0, (d_in, 4 * hidden_size), jnp.float32, -k, k)
        w_hh = jax.random.uniform(k1, (hidden_size, 4 * hidden_size), jnp.float32, -k, k)
        b_ih = jax.random.uniform(k2, (1, 4 * hidden_size), jnp.float32, -k, k)
        b_hh = jax.random.uniform(k3, (1, 4 * hidden_size), jnp.float32, -k, k)
        layers.append((w_ih, w_hh, b_ih + b_hh))
    k4, k5, _ = jax.random.split(key, 3)
    w_out = jax.random.uniform(k4, (hidden_size, output_size), jnp.float32, -k, k)
    b_out = jax.random.uniform(k5, (1, output_size), jnp.float32, -k, k)
    return {"layers": layers, "w_out": w_out, "b_out": b_out,
            "hidden_size": hidden_size}


def _pad_gates(w, H, Hp):
    """(rows, 4H) -> (rows, 4Hp): zero-pad EACH of the i/f/g/o gate blocks to Hp."""
    r = w.shape[0]
    w4 = jnp.pad(w.reshape(r, 4, H), ((0, 0), (0, 0), (0, Hp - H)))
    return w4.reshape(r, 4 * Hp)


# ----------------------------------- forward ----------------------------------------

def lstm_encoder_forward(params, minf, lengths, *, b_blk=8, max_t_chunk=64):
    """minf: (B, T, D) batch-first f32; lengths: (B,) int.

    Returns (y, padded_states) matching the PyTorch module in eval mode:
      y             = Linear(final_hidden.squeeze())
      padded_states = last-layer per-step hiddens, (B, T, H), zero past each length.
    """
    B, T, D = minf.shape
    H = params["hidden_size"]
    O = params["w_out"].shape[1]
    Hp = _round_up(H, 128)                       # lane-dense gates & stores
    Op = _round_up(O, 128)
    Bp = _round_up(B, b_blk)
    t_chunk = T if T <= max_t_chunk else max_t_chunk
    Tp = _round_up(T, t_chunk)

    x = jnp.transpose(minf, (1, 0, 2)).astype(jnp.float32)           # time-major (T, B, D)
    x = jnp.pad(x, ((0, Tp - T), (0, Bp - B), (0, 0)))
    len2 = jnp.pad(lengths.astype(jnp.int32), (0, Bp - B)).reshape(Bp, 1)

    num_layers = len(params["layers"])
    w_out_p = jnp.pad(params["w_out"], ((0, Hp - H), (0, Op - O))).astype(jnp.bfloat16)
    b_out_p = jnp.pad(params["b_out"], ((0, 0), (0, Op - O))).astype(jnp.float32)

    h_finals = []
    y_p = None
    for li, (w_ih, w_hh, b) in enumerate(params["layers"]):
        wih_p = _pad_gates(w_ih, H, Hp)
        if li > 0:                               # inputs of layers > 0 are Hp-padded hiddens
            wih_p = jnp.pad(wih_p, ((0, Hp - H), (0, 0)))
        wih_p = wih_p.astype(jnp.bfloat16)
        whh_p = jnp.pad(_pad_gates(w_hh, H, Hp), ((0, Hp - H), (0, 0))).astype(jnp.bfloat16)
        bias_p = _pad_gates(b, H, Hp).astype(jnp.float32)

        fuse = (num_layers == 1)                 # fuse the output Linear into the only layer
        # TODO(synk): PyTorch applies inter-layer dropout only during training; eval -> identity.
        if fuse:
            x, h_fin, y_p = lstm_layer(x, len2, wih_p, whh_p, bias_p,
                                       w_out_p, b_out_p, t_chunk=t_chunk, b_blk=b_blk)
        else:
            x, h_fin = lstm_layer(x, len2, wih_p, whh_p, bias_p,
                                  t_chunk=t_chunk, b_blk=b_blk)
        h_finals.append(h_fin)

    # NOTE: pad_packed_sequence pads only to max(lengths); here max(lengths) == T.
    padded_states = jnp.transpose(x[:T, :B, :H], (1, 0, 2))           # (B, T, H)

    if num_layers == 1:
        y = y_p[:B, :O]
    else:
        # PyTorch: Linear applied to h_n.squeeze() of shape (L, B, H) -> (L, B, O).
        # TODO(synk): dropout on h is identity in eval mode.
        h_stack = jnp.squeeze(jnp.stack([hf[:B, :H] for hf in h_finals], axis=0))
        y = h_stack @ params["w_out"] + params["b_out"]
    return y, padded_states


if __name__ == "__main__":
    input_size, hidden_size, output_size, num_layers = 8, 32, 16, 1
    B, T = 2, 8

    key = jax.random.PRNGKey(0)
    kx, kp = jax.random.split(key)
    minf = jax.random.normal(kx, (B, T, input_size), jnp.float32)     # batch-first, torch batch_first=True
    lengths = jnp.array([T, 5], dtype=jnp.int32)                      # max(lengths) == T

    params = init_params(kp, input_size, hidden_size, output_size, num_layers)

    y, padded_states = lstm_encoder_forward(params, minf, lengths)
    jax.block_until_ready((y, padded_states))

    assert y.shape == (B, output_size)
    assert padded_states.shape == (B, T, hidden_size)
    # packed-sequence semantics: second sequence must be zero past its length
    assert bool(jnp.all(padded_states[1, 5:, :] == 0.0))
    assert bool(jnp.all(jnp.isfinite(y))) and bool(jnp.all(jnp.isfinite(padded_states)))
    print("KERNEL_OK")
</pallas_src>

<mosaic_0001>
module attributes {stable_mosaic.version = 11 : i64} {
  func.func @kernel(%arg0: i32, %arg1: i32, %arg2: memref<8x1xi32, #tpu.memory_space<vmem>>, %arg3: memref<8x8x8xf32, #tpu.memory_space<vmem>>, %arg4: memref<8x512xbf16, #tpu.memory_space<vmem>>, %arg5: memref<128x512xbf16, #tpu.memory_space<vmem>>, %arg6: memref<1x512xf32, #tpu.memory_space<vmem>>, %arg7: memref<128x128xbf16, #tpu.memory_space<vmem>>, %arg8: memref<1x128xf32, #tpu.memory_space<vmem>>, %arg9: memref<8x8x128xf32, #tpu.memory_space<vmem>>, %arg10: memref<8x128xf32, #tpu.memory_space<vmem>>, %arg11: memref<8x128xf32, #tpu.memory_space<vmem>>, %arg12: memref<8x8x512xf32, #tpu.memory_space<vmem>>, %arg13: memref<8x128xf32, #tpu.memory_space<vmem>>, %arg14: memref<8x128xf32, #tpu.memory_space<vmem>>) attributes {dimension_semantics = [#tpu.dimension_semantics<parallel>, #tpu.dimension_semantics<arbitrary>], iteration_bounds = array<i64: 1, 1>, scalar_prefetch = 0 : i64, scratch_operands = 3 : i64, tpu.core_type = #tpu.core_type<tc>, window_params = [{transform_indices = @transform_0, window_bounds = array<i64: 8, 1>}, {transform_indices = @transform_1, window_bounds = array<i64: 8, 8, 8>}, {pipeline_mode = #tpu.pipeline_mode<synchronous>, transform_indices = @transform_2, window_bounds = array<i64: 8, 512>}, {pipeline_mode = #tpu.pipeline_mode<synchronous>, transform_indices = @transform_3, window_bounds = array<i64: 128, 512>}, {pipeline_mode = #tpu.pipeline_mode<synchronous>, transform_indices = @transform_4, window_bounds = array<i64: 1, 512>}, {pipeline_mode = #tpu.pipeline_mode<synchronous>, transform_indices = @transform_5, window_bounds = array<i64: 128, 128>}, {pipeline_mode = #tpu.pipeline_mode<synchronous>, transform_indices = @transform_6, window_bounds = array<i64: 1, 128>}, {transform_indices = @transform_7, window_bounds = array<i64: 8, 8, 128>}, {transform_indices = @transform_8, window_bounds = array<i64: 8, 128>}, {transform_indices = @transform_9, window_bounds = array<i64: 8, 128>}]} {
    %c0_i32 = arith.constant 0 : i32
    %0 = arith.cmpi eq, %arg1, %c0_i32 : i32
    %1 = arith.extui %0 : i1 to i32
    %c0_i32_0 = arith.constant 0 : i32
    %2 = arith.cmpi ne, %1, %c0_i32_0 : i32
    scf.if %2 {
      %cst_207 = arith.constant 0.000000e+00 : f32
      %465 = vector.broadcast %cst_207 : f32 to vector<8x128xf32>
      %c0_208 = arith.constant 0 : index
      %c0_209 = arith.constant 0 : index
      %466 = vector.load %arg13[%c0_208, %c0_209] : memref<8x128xf32, #tpu.memory_space<vmem>>, vector<8x128xf32>
      tpu.vector_store %arg13[%c0_208, %c0_209], %465 {strides = array<i32>} : memref<8x128xf32, #tpu.memory_space<vmem>>, vector<8x128xf32>,
      %cst_210 = arith.constant 0.000000e+00 : f32
      %467 = vector.broadcast %cst_210 : f32 to vector<8x128xf32>
      %c0_211 = arith.constant 0 : index
      %c0_212 = arith.constant 0 : index
      %468 = vector.load %arg14[%c0_211, %c0_212] : memref<8x128xf32, #tpu.memory_space<vmem>>, vector<8x128xf32>
      tpu.vector_store %arg14[%c0_211, %c0_212], %467 {strides = array<i32>} : memref<8x128xf32, #tpu.memory_space<vmem>>, vector<8x128xf32>,
    } else {
    }
    %c0 = arith.constant 0 : index
    %c0_1 = arith.constant 0 : index
    %c0_2 = arith.constant 0 : index
    %3 = vector.load %arg3[%c0, %c0_1, %c0_2] : memref<8x8x8xf32, #tpu.memory_space<vmem>>, vector<8x8x8xf32>
    %4 = vector.shape_cast %3 : vector<8x8x8xf32> to vector<64x8xf32>
    %5 = arith.truncf %4 : vector<64x8xf32> to vector<64x8xbf16>
    %c0_3 = arith.constant 0 : index
    %c0_4 = arith.constant 0 : index
    %6 = vector.load %arg4[%c0_3, %c0_4] : memref<8x512xbf16, #tpu.memory_space<vmem>>, vector<8x512xbf16>
    %cst = arith.constant dense<0.000000e+00> : vector<64x512xf32>
    %7 = tpu.matmul %5, %6, %cst {dimension_numbers = #tpu.dot_dimension_numbers<[1], [0], [0], [1], [0, 0, 1, 1], [], []>} : vector<64x8xbf16>, vector<8x512xbf16>, vector<64x512xf32> -> vector<64x512xf32>
    %c0_5 = arith.constant 0 : index
    %c0_6 = arith.constant 0 : index
    %8 = vector.load %arg6[%c0_5, %c0_6] : memref<1x512xf32, #tpu.memory_space<vmem>>, vector<1x512xf32>
    %9 = vector.broadcast %8 : vector<1x512xf32> to vector<64x512xf32>
    %10 = arith.addf %7, %9 : vector<64x512xf32>
    %11 = vector.shape_cast %10 : vector<64x512xf32> to vector<8x8x512xf32>
    %c0_7 = arith.constant 0 : index
    %c0_8 = arith.constant 0 : index
    %c0_9 = arith.constant 0 : index
    %12 = vector.load %arg12[%c0_7, %c0_8, %c0_9] : memref<8x8x512xf32, #tpu.memory_space<vmem>>, vector<8x8x512xf32>
    tpu.vector_store %arg12[%c0_7, %c0_8, %c0_9], %11 {strides = array<i32>} : memref<8x8x512xf32, #tpu.memory_space<vmem>>, vector<8x8x512xf32>,
    %c0_10 = arith.constant 0 : index
    %c0_11 = arith.constant 0 : index
    %13 = vector.load %arg2[%c0_10, %c0_11] : memref<8x1xi32, #tpu.memory_space<vmem>>, vector<8x1xi32>
    %c0_i32_12 = arith.constant 0 : i32
    %c8_i32 = arith.constant 8 : i32
    %14 = arith.muli %arg1, %c8_i32 : i32
    %15 = arith.addi %14, %c0_i32_12 : i32
    %16 = arith.index_cast %c0_i32_12 : i32 to index
    %c0_13 = arith.constant 0 : index
    %c0_14 = arith.constant 0 : index
    %17 = vector.load %arg12[%16, %c0_13, %c0_14] : memref<8x8x512xf32, #tpu.memory_space<vmem>>, vector<1x8x512xf32>
    %18 = vector.shape_cast %17 : vector<1x8x512xf32> to vector<8x512xf32>
    %c0_15 = arith.constant 0 : index
    %c0_16 = arith.constant 0 : index
    %19 = vector.load %arg13[%c0_15, %c0_16] : memref<8x128xf32, #tpu.memory_space<vmem>>, vector<8x128xf32>
    %20 = arith.truncf %19 : vector<8x128xf32> to vector<8x128xbf16>
    %c0_17 = arith.constant 0 : index
    %c0_18 = arith.constant 0 : index
    %21 = vector.load %arg5[%c0_17, %c0_18] : memref<128x512xbf16, #tpu.memory_space<vmem>>, vector<128x512xbf16>
    %cst_19 = arith.constant dense<0.000000e+00> : vector<8x512xf32>
    %22 = tpu.matmul %20, %21, %cst_19 {dimension_numbers = #tpu.dot_dimension_numbers<[1], [0], [0], [1], [0, 0, 1, 1], [], []>} : vector<8x128xbf16>, vector<128x512xbf16>, vector<8x512xf32> -> vector<8x512xf32>
    %23 = arith.addf %18, %22 : vector<8x512xf32>
    %24 = vector.extract_strided_slice %23 {offsets = [0, 0], sizes = [8, 128], strides = [1, 1]} : vector<8x512xf32> to vector<8x128xf32>
    %25 = arith.negf %24 : vector<8x128xf32>
    %26 = math.exp %25 : vector<8x128xf32>
    %cst_20 = arith.constant 1.000000e+00 : f32
    %27 = vector.broadcast %cst_20 : f32 to vector<8x128xf32>
    %28 = arith.addf %27, %26 : vector<8x128xf32>
    %29 = arith.divf %27, %28 : vector<8x128xf32>
    %30 = vector.extract_strided_slice %23 {offsets = [0, 128], sizes = [8, 128], strides = [1, 1]} : vector<8x512xf32> to vector<8x128xf32>
    %31 = arith.negf %30 : vector<8x128xf32>
    %32 = math.exp %31 : vector<8x128xf32>
    %cst_21 = arith.constant 1.000000e+00 : f32
    %33 = vector.broadcast %cst_21 : f32 to vector<8x128xf32>
    %34 = arith.addf %33, %32 : vector<8x128xf32>
    %35 = arith.divf %33, %34 : vector<8x128xf32>
    %36 = vector.extract_strided_slice %23 {offsets = [0, 256], sizes = [8, 128], strides = [1, 1]} : vector<8x512xf32> to vector<8x128xf32>
    %37 = math.tanh %36 : vector<8x128xf32>
    %38 = vector.extract_strided_slice %23 {offsets = [0, 384], sizes = [8, 128], strides = [1, 1]} : vector<8x512xf32> to vector<8x128xf32>
    %39 = arith.negf %38 : vector<8x128xf32>
    %40 = math.exp %39 : vector<8x128xf32>
    %cst_22 = arith.constant 1.000000e+00 : f32
    %41 = vector.broadcast %cst_22 : f32 to vector<8x128xf32>
    %42 = arith.addf %41, %40 : vector<8x128xf32>
    %43 = arith.divf %41, %42 : vector<8x128xf32>
    %c0_23 = arith.constant 0 : index
    %c0_24 = arith.constant 0 : index
    %44 = vector.load %arg14[%c0_23, %c0_24] : memref<8x128xf32, #tpu.memory_space<vmem>>, vector<8x128xf32>
    %45 = arith.mulf %35, %44 : vector<8x128xf32>
    %46 = arith.mulf %29, %37 : vector<8x128xf32>
    %47 = arith.addf %45, %46 : vector<8x128xf32>
    %48 = math.tanh %47 : vector<8x128xf32>
    %49 = arith.mulf %43, %48 : vector<8x128xf32>
    %50 = vector.broadcast %15 : i32 to vector<8x1xi32>
    %51 = arith.cmpi sgt, %13, %50 : vector<8x1xi32>
    %c0_25 = arith.constant 0 : index
    %c0_26 = arith.constant 0 : index
    %52 = vector.load %arg13[%c0_25, %c0_26] : memref<8x128xf32, #tpu.memory_space<vmem>>, vector<8x128xf32>
    %53 = vector.shape_cast %51 : vector<8x1xi1> to vector<8x1xi1>
    %54 = vector.broadcast %53 : vector<8x1xi1> to vector<8x128xi1>
    %55 = arith.select %54, %49, %52 : vector<8x128xi1>, vector<8x128xf32>
    %c0_27 = arith.constant 0 : index
    %c0_28 = arith.constant 0 : index
    %56 = vector.load %arg13[%c0_27, %c0_28] : memref<8x128xf32, #tpu.memory_space<vmem>>, vector<8x128xf32>
    tpu.vector_store %arg13[%c0_27, %c0_28], %55 {strides = array<i32>} : memref<8x128xf32, #tpu.memory_space<vmem>>, vector<8x128xf32>,
    %c0_29 = arith.constant 0 : index
    %c0_30 = arith.constant 0 : index
    %57 = vector.load %arg14[%c0_29, %c0_30] : memref<8x128xf32, #tpu.memory_space<vmem>>, vector<8x128xf32>
    %58 = vector.shape_cast %51 : vector<8x1xi1> to vector<8x1xi1>
    %59 = vector.broadcast %58 : vector<8x1xi1> to vector<8x128xi1>
    %60 = arith.select %59, %47, %57 : vector<8x128xi1>, vector<8x128xf32>
    %c0_31 = arith.constant 0 : index
    %c0_32 = arith.constant 0 : index
    %61 = vector.load %arg14[%c0_31, %c0_32] : memref<8x128xf32, #tpu.memory_space<vmem>>, vector<8x128xf32>
    tpu.vector_store %arg14[%c0_31, %c0_32], %60 {strides = array<i32>} : memref<8x128xf32, #tpu.memory_space<vmem>>, vector<8x128xf32>,
    %cst_33 = arith.constant 0.000000e+00 : f32
    %62 = vector.shape_cast %51 : vector<8x1xi1> to vector<8x1xi1>
    %63 = vector.broadcast %62 : vector<8x1xi1> to vector<8x128xi1>
    %64 = vector.broadcast %cst_33 : f32 to vector<8x128xf32>
    %65 = arith.select %63, %49, %64 : vector<8x128xi1>, vector<8x128xf32>
    %66 = arith.index_cast %c0_i32_12 : i32 to index
    %c0_34 = arith.constant 0 : index
    %c0_35 = arith.constant 0 : index
    %67 = vector.load %arg9[%66, %c0_34, %c0_35] : memref<8x8x128xf32, #tpu.memory_space<vmem>>, vector<1x8x128xf32>
    %68 = vector.shape_cast %67 : vector<1x8x128xf32> to vector<8x128xf32>
    %69 = vector.shape_cast %65 : vector<8x128xf32> to vector<1x8x128xf32>
    tpu.vector_store %arg9[%66, %c0_34, %c0_35], %69 {strides = array<i32>} : memref<8x8x128xf32, #tpu.memory_space<vmem>>, vector<1x8x128xf32>,
    %c1_i32 = arith.constant 1 : i32
    %c8_i32_36 = arith.constant 8 : i32
    %70 = arith.muli %arg1, %c8_i32_36 : i32
    %71 = arith.addi %70, %c1_i32 : i32
    %72 = arith.index_cast %c1_i32 : i32 to index
    %c0_37 = arith.constant 0 : index
    %c0_38 = arith.constant 0 : index
    %73 = vector.load %arg12[%72, %c0_37, %c0_38] : memref<8x8x512xf32, #tpu.memory_space<vmem>>, vector<1x8x512xf32>
    %74 = vector.shape_cast %73 : vector<1x8x512xf32> to vector<8x512xf32>
    %c0_39 = arith.constant 0 : index
    %c0_40 = arith.constant 0 : index
    %75 = vector.load %arg13[%c0_39, %c0_40] : memref<8x128xf32, #tpu.memory_space<vmem>>, vector<8x128xf32>
    %76 = arith.truncf %75 : vector<8x128xf32> to vector<8x128xbf16>
    %c0_41 = arith.constant 0 : index
    %c0_42 = arith.constant 0 : index
    %77 = vector.load %arg5[%c0_41, %c0_42] : memref<128x512xbf16, #tpu.memory_space<vmem>>, vector<128x512xbf16>
    %cst_43 = arith.constant dense<0.000000e+00> : vector<8x512xf32>
    %78 = tpu.matmul %76, %77, %cst_43 {dimension_numbers = #tpu.dot_dimension_numbers<[1], [0], [0], [1], [0, 0, 1, 1], [], []>} : vector<8x128xbf16>, vector<128x512xbf16>, vector<8x512xf32> -> vector<8x512xf32>
    %79 = arith.addf %74, %78 : vector<8x512xf32>
    %80 = vector.extract_strided_slice %79 {offsets = [0, 0], sizes = [8, 128], strides = [1, 1]} : vector<8x512xf32> to vector<8x128xf32>
    %81 = arith.negf %80 : vector<8x128xf32>
    %82 = math.exp %81 : vector<8x128xf32>
    %cst_44 = arith.constant 1.000000e+00 : f32
    %83 = vector.broadcast %cst_44 : f32 to vector<8x128xf32>
    %84 = arith.addf %83, %82 : vector<8x128xf32>
    %85 = arith.divf %83, %84 : vector<8x128xf32>
    %86 = vector.extract_strided_slice %79 {offsets = [0, 128], sizes = [8, 128], strides = [1, 1]} : vector<8x512xf32> to vector<8x128xf32>
    %87 = arith.negf %86 : vector<8x128xf32>
    %88 = math.exp %87 : vector<8x128xf32>
    %cst_45 = arith.constant 1.000000e+00 : f32
    %89 = vector.broadcast %cst_45 : f32 to vector<8x128xf32>
    %90 = arith.addf %89, %88 : vector<8x128xf32>
    %91 = arith.divf %89, %90 : vector<8x128xf32>
    %92 = vector.extract_strided_slice %79 {offsets = [0, 256], sizes = [8, 128], strides = [1, 1]} : vector<8x512xf32> to vector<8x128xf32>
    %93 = math.tanh %92 : vector<8x128xf32>
    %94 = vector.extract_strided_slice %79 {offsets = [0, 384], sizes = [8, 128], strides = [1, 1]} : vector<8x512xf32> to vector<8x128xf32>
    %95 = arith.negf %94 : vector<8x128xf32>
    %96 = math.exp %95 : vector<8x128xf32>
    %cst_46 = arith.constant 1.000000e+00 : f32
    %97 = vector.broadcast %cst_46 : f32 to vector<8x128xf32>
    %98 = arith.addf %97, %96 : vector<8x128xf32>
    %99 = arith.divf %97, %98 : vector<8x128xf32>
    %c0_47 = arith.constant 0 : index
    %c0_48 = arith.constant 0 : index
    %100 = vector.load %arg14[%c0_47, %c0_48] : memref<8x128xf32, #tpu.memory_space<vmem>>, vector<8x128xf32>
    %101 = arith.mulf %91, %100 : vector<8x128xf32>
    %102 = arith.mulf %85, %93 : vector<8x128xf32>
    %103 = arith.addf %101, %102 : vector<8x128xf32>
    %104 = math.tanh %103 : vector<8x128xf32>
    %105 = arith.mulf %99, %104 : vector<8x128xf32>
    %106 = vector.broadcast %71 : i32 to vector<8x1xi32>
    %107 = arith.cmpi sgt, %13, %106 : vector<8x1xi32>
    %c0_49 = arith.constant 0 : index
    %c0_50 = arith.constant 0 : index
    %108 = vector.load %arg13[%c0_49, %c0_50] : memref<8x128xf32, #tpu.memory_space<vmem>>, vector<8x128xf32>
    %109 = vector.shape_cast %107 : vector<8x1xi1> to vector<8x1xi1>
    %110 = vector.broadcast %109 : vector<8x1xi1> to vector<8x128xi1>
    %111 = arith.select %110, %105, %108 : vector<8x128xi1>, vector<8x128xf32>
    %c0_51 = arith.constant 0 : index
    %c0_52 = arith.constant 0 : index
    %112 = vector.load %arg13[%c0_51, %c0_52] : memref<8x128xf32, #tpu.memory_space<vmem>>, vector<8x128xf32>
    tpu.vector_store %arg13[%c0_51, %c0_52], %111 {strides = array<i32>} : memref<8x128xf32, #tpu.memory_space<vmem>>, vector<8x128xf32>,
    %c0_53 = arith.constant 0 : index
    %c0_54 = arith.constant 0 : index
    %113 = vector.load %arg14[%c0_53, %c0_54] : memref<8x128xf32, #tpu.memory_space<vmem>>, vector<8x128xf32>
    %114 = vector.shape_cast %107 : vector<8x1xi1> to vector<8x1xi1>
    %115 = vector.broadcast %114 : vector<8x1xi1> to vector<8x128xi1>
    %116 = arith.select %115, %103, %113 : vector<8x128xi1>, vector<8x128xf32>
    %c0_55 = arith.constant 0 : index
    %c0_56 = arith.constant 0 : index
    %117 = vector.load %arg14[%c0_55, %c0_56] : memref<8x128xf32, #tpu.memory_space<vmem>>, vector<8x128xf32>
    tpu.vector_store %arg14[%c0_55, %c0_56], %116 {strides = array<i32>} : memref<8x128xf32, #tpu.memory_space<vmem>>, vector<8x128xf32>,
    %cst_57 = arith.constant 0.000000e+00 : f32
    %118 = vector.shape_cast %107 : vector<8x1xi1> to vector<8x1xi1>
    %119 = vector.broadcast %118 : vector<8x1xi1> to vector<8x128xi1>
    %120 = vector.broadcast %cst_57 : f32 to vector<8x128xf32>
    %121 = arith.select %119, %105, %120 : vector<8x128xi1>, vector<8x128xf32>
    %122 = arith.index_cast %c1_i32 : i32 to index
    %c0_58 = arith.constant 0 : index
    %c0_59 = arith.constant 0 : index
    %123 = vector.load %arg9[%122, %c0_58, %c0_59] : memref<8x8x128xf32, #tpu.memory_space<vmem>>, vector<1x8x128xf32>
    %124 = vector.shape_cast %123 : vector<1x8x128xf32> to vector<8x128xf32>
    %125 = vector.shape_cast %121 : vector<8x128xf32> to vector<1x8x128xf32>
    tpu.vector_store %arg9[%122, %c0_58, %c0_59], %125 {strides = array<i32>} : memref<8x8x128xf32, #tpu.memory_space<vmem>>, vector<1x8x128xf32>,
    %c2_i32 = arith.constant 2 : i32
    %c8_i32_60 = arith.constant 8 : i32
    %126 = arith.muli %arg1, %c8_i32_60 : i32
    %127 = arith.addi %126, %c2_i32 : i32
    %128 = arith.index_cast %c2_i32 : i32 to index
    %c0_61 = arith.constant 0 : index
    %c0_62 = arith.constant 0 : index
    %129 = vector.load %arg12[%128, %c0_61, %c0_62] : memref<8x8x512xf32, #tpu.memory_space<vmem>>, vector<1x8x512xf32>
    %130 = vector.shape_cast %129 : vector<1x8x512xf32> to vector<8x512xf32>
    %c0_63 = arith.constant 0 : index
    %c0_64 = arith.constant 0 : index
    %131 = vector.load %arg13[%c0_63, %c0_64] : memref<8x128xf32, #tpu.memory_space<vmem>>, vector<8x128xf32>
    %132 = arith.truncf %131 : vector<8x128xf32> to vector<8x128xbf16>
    %c0_65 = arith.constant 0 : index
    %c0_66 = arith.constant 0 : index
    %133 = vector.load %arg5[%c0_65, %c0_66] : memref<128x512xbf16, #tpu.memory_space<vmem>>, vector<128x512xbf16>
    %cst_67 = arith.constant dense<0.000000e+00> : vector<8x512xf32>
    %134 = tpu.matmul %132, %133, %cst_67 {dimension_numbers = #tpu.dot_dimension_numbers<[1], [0], [0], [1], [0, 0, 1, 1], [], []>} : vector<8x128xbf16>, vector<128x512xbf16>, vector<8x512xf32> -> vector<8x512xf32>
    %135 = arith.addf %130, %134 : vector<8x512xf32>
    %136 = vector.extract_strided_slice %135 {offsets = [0, 0], sizes = [8, 128], strides = [1, 1]} : vector<8x512xf32> to vector<8x128xf32>
    %137 = arith.negf %136 : vector<8x128xf32>
    %138 = math.exp %137 : vector<8x128xf32>
    %cst_68 = arith.constant 1.000000e+00 : f32
    %139 = vector.broadcast %cst_68 : f32 to vector<8x128xf32>
    %140 = arith.addf %139, %138 : vector<8x128xf32>
    %141 = arith.divf %139, %140 : vector<8x128xf32>
    %142 = vector.extract_strided_slice %135 {offsets = [0, 128], sizes = [8, 128], strides = [1, 1]} : vector<8x512xf32> to vector<8x128xf32>
    %143 = arith.negf %142 : vector<8x128xf32>
    %144 = math.exp %143 : vector<8x128xf32>
    %cst_69 = arith.constant 1.000000e+00 : f32
    %145 = vector.broadcast %cst_69 : f32 to vector<8x128xf32>
    %146 = arith.addf %145, %144 : vector<8x128xf32>
    %147 = arith.divf %145, %146 : vector<8x128xf32>
    %148 = vector.extract_strided_slice %135 {offsets = [0, 256], sizes = [8, 128], strides = [1, 1]} : vector<8x512xf32> to vector<8x128xf32>
    %149 = math.tanh %148 : vector<8x128xf32>
    %150 = vector.extract_strided_slice %135 {offsets = [0, 384], sizes = [8, 128], strides = [1, 1]} : vector<8x512xf32> to vector<8x128xf32>
    %151 = arith.negf %150 : vector<8x128xf32>
    %152 = math.exp %151 : vector<8x128xf32>
    %cst_70 = arith.constant 1.000000e+00 : f32
    %153 = vector.broadcast %cst_70 : f32 to vector<8x128xf32>
    %154 = arith.addf %153, %152 : vector<8x128xf32>
    %155 = arith.divf %153, %154 : vector<8x128xf32>
    %c0_71 = arith.constant 0 : index
    %c0_72 = arith.constant 0 : index
    %156 = vector.load %arg14[%c0_71, %c0_72] : memref<8x128xf32, #tpu.memory_space<vmem>>, vector<8x128xf32>
    %157 = arith.mulf %147, %156 : vector<8x128xf32>
    %158 = arith.mulf %141, %149 : vector<8x128xf32>
    %159 = arith.addf %157, %158 : vector<8x128xf32>
    %160 = math.tanh %159 : vector<8x128xf32>
    %161 = arith.mulf %155, %160 : vector<8x128xf32>
    %162 = vector.broadcast %127 : i32 to vector<8x1xi32>
    %163 = arith.cmpi sgt, %13, %162 : vector<8x1xi32>
    %c0_73 = arith.constant 0 : index
    %c0_74 = arith.constant 0 : index
    %164 = vector.load %arg13[%c0_73, %c0_74] : memref<8x128xf32, #tpu.memory_space<vmem>>, vector<8x128xf32>
    %165 = vector.shape_cast %163 : vector<8x1xi1> to vector<8x1xi1>
    %166 = vector.broadcast %165 : vector<8x1xi1> to vector<8x128xi1>
    %167 = arith.select %166, %161, %164 : vector<8x128xi1>, vector<8x128xf32>
    %c0_75 = arith.constant 0 : index
    %c0_76 = arith.constant 0 : index
    %168 = vector.load %arg13[%c0_75, %c0_76] : memref<8x128xf32, #tpu.memory_space<vmem>>, vector<8x128xf32>
    tpu.vector_store %arg13[%c0_75, %c0_76], %167 {strides = array<i32>} : memref<8x128xf32, #tpu.memory_space<vmem>>, vector<8x128xf32>,
    %c0_77 = arith.constant 0 : index
    %c0_78 = arith.constant 0 : index
    %169 = vector.load %arg14[%c0_77, %c0_78] : memref<8x128xf32, #tpu.memory_space<vmem>>, vector<8x128xf32>
    %170 = vector.shape_cast %163 : vector<8x1xi1> to vector<8x1xi1>
    %171 = vector.broadcast %170 : vector<8x1xi1> to vector<8x128xi1>
    %172 = arith.select %171, %159, %169 : vector<8x128xi1>, vector<8x128xf32>
    %c0_79 = arith.constant 0 : index
    %c0_80 = arith.constant 0 : index
    %173 = vector.load %arg14[%c0_79, %c0_80] : memref<8x128xf32, #tpu.memory_space<vmem>>, vector<8x128xf32>
    tpu.vector_store %arg14[%c0_79, %c0_80], %172 {strides = array<i32>} : memref<8x128xf32, #tpu.memory_space<vmem>>, vector<8x128xf32>,
    %cst_81 = arith.constant 0.000000e+00 : f32
    %174 = vector.shape_cast %163 : vector<8x1xi1> to vector<8x1xi1>
    %175 = vector.broadcast %174 : vector<8x1xi1> to vector<8x128xi1>
    %176 = vector.broadcast %cst_81 : f32 to vector<8x128xf32>
    %177 = arith.select %175, %161, %176 : vector<8x128xi1>, vector<8x128xf32>
    %178 = arith.index_cast %c2_i32 : i32 to index
    %c0_82 = arith.constant 0 : index
    %c0_83 = arith.constant 0 : index
    %179 = vector.load %arg9[%178, %c0_82, %c0_83] : memref<8x8x128xf32, #tpu.memory_space<vmem>>, vector<1x8x128xf32>
    %180 = vector.shape_cast %179 : vector<1x8x128xf32> to vector<8x128xf32>
    %181 = vector.shape_cast %177 : vector<8x128xf32> to vector<1x8x128xf32>
    tpu.vector_store %arg9[%178, %c0_82, %c0_83], %181 {strides = array<i32>} : memref<8x8x128xf32, #tpu.memory_space<vmem>>, vector<1x8x128xf32>,
    %c3_i32 = arith.constant 3 : i32
    %c8_i32_84 = arith.constant 8 : i32
    %182 = arith.muli %arg1, %c8_i32_84 : i32
    %183 = arith.addi %182, %c3_i32 : i32
    %184 = arith.index_cast %c3_i32 : i32 to index
    %c0_85 = arith.constant 0 : index
    %c0_86 = arith.constant 0 : index
    %185 = vector.load %arg12[%184, %c0_85, %c0_86] : memref<8x8x512xf32, #tpu.memory_space<vmem>>, vector<1x8x512xf32>
    %186 = vector.shape_cast %185 : vector<1x8x512xf32> to vector<8x512xf32>
    %c0_87 = arith.constant 0 : index
    %c0_88 = arith.constant 0 : index
    %187 = vector.load %arg13[%c0_87, %c0_88] : memref<8x128xf32, #tpu.memory_space<vmem>>, vector<8x128xf32>
    %188 = arith.truncf %187 : vector<8x128xf32> to vector<8x128xbf16>
    %c0_89 = arith.constant 0 : index
    %c0_90 = arith.constant 0 : index
    %189 = vector.load %arg5[%c0_89, %c0_90] : memref<128x512xbf16, #tpu.memory_space<vmem>>, vector<128x512xbf16>
    %cst_91 = arith.constant dense<0.000000e+00> : vector<8x512xf32>
    %190 = tpu.matmul %188, %189, %cst_91 {dimension_numbers = #tpu.dot_dimension_numbers<[1], [0], [0], [1], [0, 0, 1, 1], [], []>} : vector<8x128xbf16>, vector<128x512xbf16>, vector<8x512xf32> -> vector<8x512xf32>
    %191 = arith.addf %186, %190 : vector<8x512xf32>
    %192 = vector.extract_strided_slice %191 {offsets = [0, 0], sizes = [8, 128], strides = [1, 1]} : vector<8x512xf32> to vector<8x128xf32>
    %193 = arith.negf %192 : vector<8x128xf32>
    %194 = math.exp %193 : vector<8x128xf32>
    %cst_92 = arith.constant 1.000000e+00 : f32
    %195 = vector.broadcast %cst_92 : f32 to vector<8x128xf32>
    %196 = arith.addf %195, %194 : vector<8x128xf32>
    %197 = arith.divf %195, %196 : vector<8x128xf32>
    %198 = vector.extract_strided_slice %191 {offsets = [0, 128], sizes = [8, 128], strides = [1, 1]} : vector<8x512xf32> to vector<8x128xf32>
    %199 = arith.negf %198 : vector<8x128xf32>
    %200 = math.exp %199 : vector<8x128xf32>
    %cst_93 = arith.constant 1.000000e+00 : f32
    %201 = vector.broadcast %cst_93 : f32 to vector<8x128xf32>
    %202 = arith.addf %201, %200 : vector<8x128xf32>
    %203 = arith.divf %201, %202 : vector<8x128xf32>
    %204 = vector.extract_strided_slice %191 {offsets = [0, 256], sizes = [8, 128], strides = [1, 1]} : vector<8x512xf32> to vector<8x128xf32>
    %205 = math.tanh %204 : vector<8x128xf32>
    %206 = vector.extract_strided_slice %191 {offsets = [0, 384], sizes = [8, 128], strides = [1, 1]} : vector<8x512xf32> to vector<8x128xf32>
    %207 = arith.negf %206 : vector<8x128xf32>
    %208 = math.exp %207 : vector<8x128xf32>
    %cst_94 = arith.constant 1.000000e+00 : f32
    %209 = vector.broadcast %cst_94 : f32 to vector<8x128xf32>
    %210 = arith.addf %209, %208 : vector<8x128xf32>
    %211 = arith.divf %209, %210 : vector<8x128xf32>
    %c0_95 = arith.constant 0 : index
    %c0_96 = arith.constant 0 : index
    %212 = vector.load %arg14[%c0_95, %c0_96] : memref<8x128xf32, #tpu.memory_space<vmem>>, vector<8x128xf32>
    %213 = arith.mulf %203, %212 : vector<8x128xf32>
    %214 = arith.mulf %197, %205 : vector<8x128xf32>
    %215 = arith.addf %213, %214 : vector<8x128xf32>
    %216 = math.tanh %215 : vector<8x128xf32>
    %217 = arith.mulf %211, %216 : vector<8x128xf32>
    %218 = vector.broadcast %183 : i32 to vector<8x1xi32>
    %219 = arith.cmpi sgt, %13, %218 : vector<8x1xi32>
    %c0_97 = arith.constant 0 : index
    %c0_98 = arith.constant 0 : index
    %220 = vector.load %arg13[%c0_97, %c0_98] : memref<8x128xf32, #tpu.memory_space<vmem>>, vector<8x128xf32>
    %221 = vector.shape_cast %219 : vector<8x1xi1> to vector<8x1xi1>
    %222 = vector.broadcast %221 : vector<8x1xi1> to vector<8x128xi1>
    %223 = arith.select %222, %217, %220 : vector<8x128xi1>, vector<8x128xf32>
    %c0_99 = arith.constant 0 : index
    %c0_100 = arith.constant 0 : index
    %224 = vector.load %arg13[%c0_99, %c0_100] : memref<8x128xf32, #tpu.memory_space<vmem>>, vector<8x128xf32>
    tpu.vector_store %arg13[%c0_99, %c0_100], %223 {strides = array<i32>} : memref<8x128xf32, #tpu.memory_space<vmem>>, vector<8x128xf32>,
    %c0_101 = arith.constant 0 : index
    %c0_102 = arith.constant 0 : index
    %225 = vector.load %arg14[%c0_101, %c0_102] : memref<8x128xf32, #tpu.memory_space<vmem>>, vector<8x128xf32>
    %226 = vector.shape_cast %219 : vector<8x1xi1> to vector<8x1xi1>
    %227 = vector.broadcast %226 : vector<8x1xi1> to vector<8x128xi1>
    %228 = arith.select %227, %215, %225 : vector<8x128xi1>, vector<8x128xf32>
    %c0_103 = arith.constant 0 : index
    %c0_104 = arith.constant 0 : index
    %229 = vector.load %arg14[%c0_103, %c0_104] : memref<8x128xf32, #tpu.memory_space<vmem>>, vector<8x128xf32>
    tpu.vector_store %arg14[%c0_103, %c0_104], %228 {strides = array<i32>} : memref<8x128xf32, #tpu.memory_space<vmem>>, vector<8x128xf32>,
    %cst_105 = arith.constant 0.000000e+00 : f32
    %230 = vector.shape_cast %219 : vector<8x1xi1> to vector<8x1xi1>
    %231 = vector.broadcast %230 : vector<8x1xi1> to vector<8x128xi1>
    %232 = vector.broadcast %cst_105 : f32 to vector<8x128xf32>
    %233 = arith.select %231, %217, %232 : vector<8x128xi1>, vector<8x128xf32>
    %234 = arith.index_cast %c3_i32 : i32 to index
    %c0_106 = arith.constant 0 : index
    %c0_107 = arith.constant 0 : index
    %235 = vector.load %arg9[%234, %c0_106, %c0_107] : memref<8x8x128xf32, #tpu.memory_space<vmem>>, vector<1x8x128xf32>
    %236 = vector.shape_cast %235 : vector<1x8x128xf32> to vector<8x128xf32>
    %237 = vector.shape_cast %233 : vector<8x128xf32> to vector<1x8x128xf32>
    tpu.vector_store %arg9[%234, %c0_106, %c0_107], %237 {strides = array<i32>} : memref<8x8x128xf32, #tpu.memory_space<vmem>>, vector<1x8x128xf32>,
    %c4_i32 = arith.constant 4 : i32
    %c8_i32_108 = arith.constant 8 : i32
    %238 = arith.muli %arg1, %c8_i32_108 : i32
    %239 = arith.addi %238, %c4_i32 : i32
    %240 = arith.index_cast %c4_i32 : i32 to index
    %c0_109 = arith.constant 0 : index
    %c0_110 = arith.constant 0 : index
    %241 = vector.load %arg12[%240, %c0_109, %c0_110] : memref<8x8x512xf32, #tpu.memory_space<vmem>>, vector<1x8x512xf32>
    %242 = vector.shape_cast %241 : vector<1x8x512xf32> to vector<8x512xf32>
    %c0_111 = arith.constant 0 : index
    %c0_112 = arith.constant 0 : index
    %243 = vector.load %arg13[%c0_111, %c0_112] : memref<8x128xf32, #tpu.memory_space<vmem>>, vector<8x128xf32>
    %244 = arith.truncf %243 : vector<8x128xf32> to vector<8x128xbf16>
    %c0_113 = arith.constant 0 : index
    %c0_114 = arith.constant 0 : index
    %245 = vector.load %arg5[%c0_113, %c0_114] : memref<128x512xbf16, #tpu.memory_space<vmem>>, vector<128x512xbf16>
    %cst_115 = arith.constant dense<0.000000e+00> : vector<8x512xf32>
    %246 = tpu.matmul %244, %245, %cst_115 {dimension_numbers = #tpu.dot_dimension_numbers<[1], [0], [0], [1], [0, 0, 1, 1], [], []>} : vector<8x128xbf16>, vector<128x512xbf16>, vector<8x512xf32> -> vector<8x512xf32>
    %247 = arith.addf %242, %246 : vector<8x512xf32>
    %248 = vector.extract_strided_slice %247 {offsets = [0, 0], sizes = [8, 128], strides = [1, 1]} : vector<8x512xf32> to vector<8x128xf32>
    %249 = arith.negf %248 : vector<8x128xf32>
    %250 = math.exp %249 : vector<8x128xf32>
    %cst_116 = arith.constant 1.000000e+00 : f32
    %251 = vector.broadcast %cst_116 : f32 to vector<8x128xf32>
    %252 = arith.addf %251, %250 : vector<8x128xf32>
    %253 = arith.divf %251, %252 : vector<8x128xf32>
    %254 = vector.extract_strided_slice %247 {offsets = [0, 128], sizes = [8, 128], strides = [1, 1]} : vector<8x512xf32> to vector<8x128xf32>
    %255 = arith.negf %254 : vector<8x128xf32>
    %256 = math.exp %255 : vector<8x128xf32>
    %cst_117 = arith.constant 1.000000e+00 : f32
    %257 = vector.broadcast %cst_117 : f32 to vector<8x128xf32>
    %258 = arith.addf %257, %256 : vector<8x128xf32>
    %259 = arith.divf %257, %258 : vector<8x128xf32>
    %260 = vector.extract_strided_slice %247 {offsets = [0, 256], sizes = [8, 128], strides = [1, 1]} : vector<8x512xf32> to vector<8x128xf32>
    %261 = math.tanh %260 : vector<8x128xf32>
    %262 = vector.extract_strided_slice %247 {offsets = [0, 384], sizes = [8, 128], strides = [1, 1]} : vector<8x512xf32> to vector<8x128xf32>
    %263 = arith.negf %262 : vector<8x128xf32>
    %264 = math.exp %263 : vector<8x128xf32>
    %cst_118 = arith.constant 1.000000e+00 : f32
    %265 = vector.broadcast %cst_118 : f32 to vector<8x128xf32>
    %266 = arith.addf %265, %264 : vector<8x128xf32>
    %267 = arith.divf %265, %266 : vector<8x128xf32>
    %c0_119 = arith.constant 0 : index
    %c0_120 = arith.constant 0 : index
    %268 = vector.load %arg14[%c0_119, %c0_120] : memref<8x128xf32, #tpu.memory_space<vmem>>, vector<8x128xf32>
    %269 = arith.mulf %259, %268 : vector<8x128xf32>
    %270 = arith.mulf %253, %261 : vector<8x128xf32>
    %271 = arith.addf %269, %270 : vector<8x128xf32>
    %272 = math.tanh %271 : vector<8x128xf32>
    %273 = arith.mulf %267, %272 : vector<8x128xf32>
    %274 = vector.broadcast %239 : i32 to vector<8x1xi32>
    %275 = arith.cmpi sgt, %13, %274 : vector<8x1xi32>
    %c0_121 = arith.constant 0 : index
    %c0_122 = arith.constant 0 : index
    %276 = vector.load %arg13[%c0_121, %c0_122] : memref<8x128xf32, #tpu.memory_space<vmem>>, vector<8x128xf32>
    %277 = vector.shape_cast %275 : vector<8x1xi1> to vector<8x1xi1>
    %278 = vector.broadcast %277 : vector<8x1xi1> to vector<8x128xi1>
    %279 = arith.select %278, %273, %276 : vector<8x128xi1>, vector<8x128xf32>
    %c0_123 = arith.constant 0 : index
    %c0_124 = arith.constant 0 : index
    %280 = vector.load %arg13[%c0_123, %c0_124] : memref<8x128xf32, #tpu.memory_space<vmem>>, vector<8x128xf32>
    tpu.vector_store %arg13[%c0_123, %c0_124], %279 {strides = array<i32>} : memref<8x128xf32, #tpu.memory_space<vmem>>, vector<8x128xf32>,
    %c0_125 = arith.constant 0 : index
    %c0_126 = arith.constant 0 : index
    %281 = vector.load %arg14[%c0_125, %c0_126] : memref<8x128xf32, #tpu.memory_space<vmem>>, vector<8x128xf32>
    %282 = vector.shape_cast %275 : vector<8x1xi1> to vector<8x1xi1>
    %283 = vector.broadcast %282 : vector<8x1xi1> to vector<8x128xi1>
    %284 = arith.select %283, %271, %281 : vector<8x128xi1>, vector<8x128xf32>
    %c0_127 = arith.constant 0 : index
    %c0_128 = arith.constant 0 : index
    %285 = vector.load %arg14[%c0_127, %c0_128] : memref<8x128xf32, #tpu.memory_space<vmem>>, vector<8x128xf32>
    tpu.vector_store %arg14[%c0_127, %c0_128], %284 {strides = array<i32>} : memref<8x128xf32, #tpu.memory_space<vmem>>, vector<8x128xf32>,
    %cst_129 = arith.constant 0.000000e+00 : f32
    %286 = vector.shape_cast %275 : vector<8x1xi1> to vector<8x1xi1>
    %287 = vector.broadcast %286 : vector<8x1xi1> to vector<8x128xi1>
    %288 = vector.broadcast %cst_129 : f32 to vector<8x128xf32>
    %289 = arith.select %287, %273, %288 : vector<8x128xi1>, vector<8x128xf32>
    %290 = arith.index_cast %c4_i32 : i32 to index
    %c0_130 = arith.constant 0 : index
    %c0_131 = arith.constant 0 : index
    %291 = vector.load %arg9[%290, %c0_130, %c0_131] : memref<8x8x128xf32, #tpu.memory_space<vmem>>, vector<1x8x128xf32>
    %292 = vector.shape_cast %291 : vector<1x8x128xf32> to vector<8x128xf32>
    %293 = vector.shape_cast %289 : vector<8x128xf32> to vector<1x8x128xf32>
    tpu.vector_store %arg9[%290, %c0_130, %c0_131], %293 {strides = array<i32>} : memref<8x8x128xf32, #tpu.memory_space<vmem>>, vector<1x8x128xf32>,
    %c5_i32 = arith.constant 5 : i32
    %c8_i32_132 = arith.constant 8 : i32
    %294 = arith.muli %arg1, %c8_i32_132 : i32
    %295 = arith.addi %294, %c5_i32 : i32
    %296 = arith.index_cast %c5_i32 : i32 to index
    %c0_133 = arith.constant 0 : index
    %c0_134 = arith.constant 0 : index
    %297 = vector.load %arg12[%296, %c0_133, %c0_134] : memref<8x8x512xf32, #tpu.memory_space<vmem>>, vector<1x8x512xf32>
    %298 = vector.shape_cast %297 : vector<1x8x512xf32> to vector<8x512xf32>
    %c0_135 = arith.constant 0 : index
    %c0_136 = arith.constant 0 : index
    %299 = vector.load %arg13[%c0_135, %c0_136] : memref<8x128xf32, #tpu.memory_space<vmem>>, vector<8x128xf32>
    %300 = arith.truncf %299 : vector<8x128xf32> to vector<8x128xbf16>
    %c0_137 = arith.constant 0 : index
    %c0_138 = arith.constant 0 : index
    %301 = vector.load %arg5[%c0_137, %c0_138] : memref<128x512xbf16, #tpu.memory_space<vmem>>, vector<128x512xbf16>
    %cst_139 = arith.constant dense<0.000000e+00> : vector<8x512xf32>
    %302 = tpu.matmul %300, %301, %cst_139 {dimension_numbers = #tpu.dot_dimension_numbers<[1], [0], [0], [1], [0, 0, 1, 1], [], []>} : vector<8x128xbf16>, vector<128x512xbf16>, vector<8x512xf32> -> vector<8x512xf32>
    %303 = arith.addf %298, %302 : vector<8x512xf32>
    %304 = vector.extract_strided_slice %303 {offsets = [0, 0], sizes = [8, 128], strides = [1, 1]} : vector<8x512xf32> to vector<8x128xf32>
    %305 = arith.negf %304 : vector<8x128xf32>
    %306 = math.exp %305 : vector<8x128xf32>
    %cst_140 = arith.constant 1.000000e+00 : f32
    %307 = vector.broadcast %cst_140 : f32 to vector<8x128xf32>
    %308 = arith.addf %307, %306 : vector<8x128xf32>
    %309 = arith.divf %307, %308 : vector<8x128xf32>
    %310 = vector.extract_strided_slice %303 {offsets = [0, 128], sizes = [8, 128], strides = [1, 1]} : vector<8x512xf32> to vector<8x128xf32>
    %311 = arith.negf %310 : vector<8x128xf32>
    %312 = math.exp %311 : vector<8x128xf32>
    %cst_141 = arith.constant 1.000000e+00 : f32
    %313 = vector.broadcast %cst_141 : f32 to vector<8x128xf32>
    %314 = arith.addf %313, %312 : vector<8x128xf32>
    %315 = arith.divf %313, %314 : vector<8x128xf32>
    %316 = vector.extract_strided_slice %303 {offsets = [0, 256], sizes = [8, 128], strides = [1, 1]} : vector<8x512xf32> to vector<8x128xf32>
    %317 = math.tanh %316 : vector<8x128xf32>
    %318 = vector.extract_strided_slice %303 {offsets = [0, 384], sizes = [8, 128], strides = [1, 1]} : vector<8x512xf32> to vector<8x128xf32>
    %319 = arith.negf %318 : vector<8x128xf32>
    %320 = math.exp %319 : vector<8x128xf32>
    %cst_142 = arith.constant 1.000000e+00 : f32
    %321 = vector.broadcast %cst_142 : f32 to vector<8x128xf32>
    %322 = arith.addf %321, %320 : vector<8x128xf32>
    %323 = arith.divf %321, %322 : vector<8x128xf32>
    %c0_143 = arith.constant 0 : index
    %c0_144 = arith.constant 0 : index
    %324 = vector.load %arg14[%c0_143, %c0_144] : memref<8x128xf32, #tpu.memory_space<vmem>>, vector<8x128xf32>
    %325 = arith.mulf %315, %324 : vector<8x128xf32>
    %326 = arith.mulf %309, %317 : vector<8x128xf32>
    %327 = arith.addf %325, %326 : vector<8x128xf32>
    %328 = math.tanh %327 : vector<8x128xf32>
    %329 = arith.mulf %323, %328 : vector<8x128xf32>
    %330 = vector.broadcast %295 : i32 to vector<8x1xi32>
    %331 = arith.cmpi sgt, %13, %330 : vector<8x1xi32>
    %c0_145 = arith.constant 0 : index
    %c0_146 = arith.constant 0 : index
    %332 = vector.load %arg13[%c0_145, %c0_146] : memref<8x128xf32, #tpu.memory_space<vmem>>, vector<8x128xf32>
    %333 = vector.shape_cast %331 : vector<8x1xi1> to vector<8x1xi1>
    %334 = vector.broadcast %333 : vector<8x1xi1> to vector<8x128xi1>
    %335 = arith.select %334, %329, %332 : vector<8x128xi1>, vector<8x128xf32>
    %c0_147 = arith.constant 0 : index
    %c0_148 = arith.constant 0 : index
    %336 = vector.load %arg13[%c0_147, %c0_148] : memref<8x128xf32, #tpu.memory_space<vmem>>, vector<8x128xf32>
    tpu.vector_store %arg13[%c0_147, %c0_148], %335 {strides = array<i32>} : memref<8x128xf32, #tpu.memory_space<vmem>>, vector<8x128xf32>,
    %c0_149 = arith.constant 0 : index
    %c0_150 = arith.constant 0 : index
    %337 = vector.load %arg14[%c0_149, %c0_150] : memref<8x128xf32, #tpu.memory_space<vmem>>, vector<8x128xf32>
    %338 = vector.shape_cast %331 : vector<8x1xi1> to vector<8x1xi1>
    %339 = vector.broadcast %338 : vector<8x1xi1> to vector<8x128xi1>
    %340 = arith.select %339, %327, %337 : vector<8x128xi1>, vector<8x128xf32>
    %c0_151 = arith.constant 0 : index
    %c0_152 = arith.constant 0 : index
    %341 = vector.load %arg14[%c0_151, %c0_152] : memref<8x128xf32, #tpu.memory_space<vmem>>, vector<8x128xf32>
    tpu.vector_store %arg14[%c0_151, %c0_152], %340 {strides = array<i32>} : memref<8x128xf32, #tpu.memory_space<vmem>>, vector<8x128xf32>,
    %cst_153 = arith.constant 0.000000e+00 : f32
    %342 = vector.shape_cast %331 : vector<8x1xi1> to vector<8x1xi1>
    %343 = vector.broadcast %342 : vector<8x1xi1> to vector<8x128xi1>
    %344 = vector.broadcast %cst_153 : f32 to vector<8x128xf32>
    %345 = arith.select %343, %329, %344 : vector<8x128xi1>, vector<8x128xf32>
    %346 = arith.index_cast %c5_i32 : i32 to index
    %c0_154 = arith.constant 0 : index
    %c0_155 = arith.constant 0 : index
    %347 = vector.load %arg9[%346, %c0_154, %c0_155] : memref<8x8x128xf32, #tpu.memory_space<vmem>>, vector<1x8x128xf32>
    %348 = vector.shape_cast %347 : vector<1x8x128xf32> to vector<8x128xf32>
    %349 = vector.shape_cast %345 : vector<8x128xf32> to vector<1x8x128xf32>
    tpu.vector_store %arg9[%346, %c0_154, %c0_155], %349 {strides = array<i32>} : memref<8x8x128xf32, #tpu.memory_space<vmem>>, vector<1x8x128xf32>,
    %c6_i32 = arith.constant 6 : i32
    %c8_i32_156 = arith.constant 8 : i32
    %350 = arith.muli %arg1, %c8_i32_156 : i32
    %351 = arith.addi %350, %c6_i32 : i32
    %352 = arith.index_cast %c6_i32 : i32 to index
    %c0_157 = arith.constant 0 : index
    %c0_158 = arith.constant 0 : index
    %353 = vector.load %arg12[%352, %c0_157, %c0_158] : memref<8x8x512xf32, #tpu.memory_space<vmem>>, vector<1x8x512xf32>
    %354 = vector.shape_cast %353 : vector<1x8x512xf32> to vector<8x512xf32>
    %c0_159 = arith.constant 0 : index
    %c0_160 = arith.constant 0 : index
    %355 = vector.load %arg13[%c0_159, %c0_160] : memref<8x128xf32, #tpu.memory_space<vmem>>, vector<8x128xf32>
    %356 = arith.truncf %355 : vector<8x128xf32> to vector<8x128xbf16>
    %c0_161 = arith.constant 0 : index
    %c0_162 = arith.constant 0 : index
    %357 = vector.load %arg5[%c0_161, %c0_162] : memref<128x512xbf16, #tpu.memory_space<vmem>>, vector<128x512xbf16>
    %cst_163 = arith.constant dense<0.000000e+00> : vector<8x512xf32>
    %358 = tpu.matmul %356, %357, %cst_163 {dimension_numbers = #tpu.dot_dimension_numbers<[1], [0], [0], [1], [0, 0, 1, 1], [], []>} : vector<8x128xbf16>, vector<128x512xbf16>, vector<8x512xf32> -> vector<8x512xf32>
    %359 = arith.addf %354, %358 : vector<8x512xf32>
    %360 = vector.extract_strided_slice %359 {offsets = [0, 0], sizes = [8, 128], strides = [1, 1]} : vector<8x512xf32> to vector<8x128xf32>
    %361 = arith.negf %360 : vector<8x128xf32>
    %362 = math.exp %361 : vector<8x128xf32>
    %cst_164 = arith.constant 1.000000e+00 : f32
    %363 = vector.broadcast %cst_164 : f32 to vector<8x128xf32>
    %364 = arith.addf %363, %362 : vector<8x128xf32>
    %365 = arith.divf %363, %364 : vector<8x128xf32>
    %366 = vector.extract_strided_slice %359 {offsets = [0, 128], sizes = [8, 128], strides = [1, 1]} : vector<8x512xf32> to vector<8x128xf32>
    %367 = arith.negf %366 : vector<8x128xf32>
    %368 = math.exp %367 : vector<8x128xf32>
    %cst_165 = arith.constant 1.000000e+00 : f32
    %369 = vector.broadcast %cst_165 : f32 to vector<8x128xf32>
    %370 = arith.addf %369, %368 : vector<8x128xf32>
    %371 = arith.divf %369, %370 : vector<8x128xf32>
    %372 = vector.extract_strided_slice %359 {offsets = [0, 256], sizes = [8, 128], strides = [1, 1]} : vector<8x512xf32> to vector<8x128xf32>
    %373 = math.tanh %372 : vector<8x128xf32>
    %374 = vector.extract_strided_slice %359 {offsets = [0, 384], sizes = [8, 128], strides = [1, 1]} : vector<8x512xf32> to vector<8x128xf32>
    %375 = arith.negf %374 : vector<8x128xf32>
    %376 = math.exp %375 : vector<8x128xf32>
    %cst_166 = arith.constant 1.000000e+00 : f32
    %377 = vector.broadcast %cst_166 : f32 to vector<8x128xf32>
    %378 = arith.addf %377, %376 : vector<8x128xf32>
    %379 = arith.divf %377, %378 : vector<8x128xf32>
    %c0_167 = arith.constant 0 : index
    %c0_168 = arith.constant 0 : index
    %380 = vector.load %arg14[%c0_167, %c0_168] : memref<8x128xf32, #tpu.memory_space<vmem>>, vector<8x128xf32>
    %381 = arith.mulf %371, %380 : vector<8x128xf32>
    %382 = arith.mulf %365, %373 : vector<8x128xf32>
    %383 = arith.addf %381, %382 : vector<8x128xf32>
    %384 = math.tanh %383 : vector<8x128xf32>
    %385 = arith.mulf %379, %384 : vector<8x128xf32>
    %386 = vector.broadcast %351 : i32 to vector<8x1xi32>
    %387 = arith.cmpi sgt, %13, %386 : vector<8x1xi32>
    %c0_169 = arith.constant 0 : index
    %c0_170 = arith.constant 0 : index
    %388 = vector.load %arg13[%c0_169, %c0_170] : memref<8x128xf32, #tpu.memory_space<vmem>>, vector<8x128xf32>
    %389 = vector.shape_cast %387 : vector<8x1xi1> to vector<8x1xi1>
    %390 = vector.broadcast %389 : vector<8x1xi1> to vector<8x128xi1>
    %391 = arith.select %390, %385, %388 : vector<8x128xi1>, vector<8x128xf32>
    %c0_171 = arith.constant 0 : index
    %c0_172 = arith.constant 0 : index
    %392 = vector.load %arg13[%c0_171, %c0_172] : memref<8x128xf32, #tpu.memory_space<vmem>>, vector<8x128xf32>
    tpu.vector_store %arg13[%c0_171, %c0_172], %391 {strides = array<i32>} : memref<8x128xf32, #tpu.memory_space<vmem>>, vector<8x128xf32>,
    %c0_173 = arith.constant 0 : index
    %c0_174 = arith.constant 0 : index
    %393 = vector.load %arg14[%c0_173, %c0_174] : memref<8x128xf32, #tpu.memory_space<vmem>>, vector<8x128xf32>
    %394 = vector.shape_cast %387 : vector<8x1xi1> to vector<8x1xi1>
    %395 = vector.broadcast %394 : vector<8x1xi1> to vector<8x128xi1>
    %396 = arith.select %395, %383, %393 : vector<8x128xi1>, vector<8x128xf32>
    %c0_175 = arith.constant 0 : index
    %c0_176 = arith.constant 0 : index
    %397 = vector.load %arg14[%c0_175, %c0_176] : memref<8x128xf32, #tpu.memory_space<vmem>>, vector<8x128xf32>
    tpu.vector_store %arg14[%c0_175, %c0_176], %396 {strides = array<i32>} : memref<8x128xf32, #tpu.memory_space<vmem>>, vector<8x128xf32>,
    %cst_177 = arith.constant 0.000000e+00 : f32
    %398 = vector.shape_cast %387 : vector<8x1xi1> to vector<8x1xi1>
    %399 = vector.broadcast %398 : vector<8x1xi1> to vector<8x128xi1>
    %400 = vector.broadcast %cst_177 : f32 to vector<8x128xf32>
    %401 = arith.select %399, %385, %400 : vector<8x128xi1>, vector<8x128xf32>
    %402 = arith.index_cast %c6_i32 : i32 to index
    %c0_178 = arith.constant 0 : index
    %c0_179 = arith.constant 0 : index
    %403 = vector.load %arg9[%402, %c0_178, %c0_179] : memref<8x8x128xf32, #tpu.memory_space<vmem>>, vector<1x8x128xf32>
    %404 = vector.shape_cast %403 : vector<1x8x128xf32> to vector<8x128xf32>
    %405 = vector.shape_cast %401 : vector<8x128xf32> to vector<1x8x128xf32>
    tpu.vector_store %arg9[%402, %c0_178, %c0_179], %405 {strides = array<i32>} : memref<8x8x128xf32, #tpu.memory_space<vmem>>, vector<1x8x128xf32>,
    %c7_i32 = arith.constant 7 : i32
    %c8_i32_180 = arith.constant 8 : i32
    %406 = arith.muli %arg1, %c8_i32_180 : i32
    %407 = arith.addi %406, %c7_i32 : i32
    %408 = arith.index_cast %c7_i32 : i32 to index
    %c0_181 = arith.constant 0 : index
    %c0_182 = arith.constant 0 : index
    %409 = vector.load %arg12[%408, %c0_181, %c0_182] : memref<8x8x512xf32, #tpu.memory_space<vmem>>, vector<1x8x512xf32>
    %410 = vector.shape_cast %409 : vector<1x8x512xf32> to vector<8x512xf32>
    %c0_183 = arith.constant 0 : index
    %c0_184 = arith.constant 0 : index
    %411 = vector.load %arg13[%c0_183, %c0_184] : memref<8x128xf32, #tpu.memory_space<vmem>>, vector<8x128xf32>
    %412 = arith.truncf %411 : vector<8x128xf32> to vector<8x128xbf16>
    %c0_185 = arith.constant 0 : index
    %c0_186 = arith.constant 0 : index
    %413 = vector.load %arg5[%c0_185, %c0_186] : memref<128x512xbf16, #tpu.memory_space<vmem>>, vector<128x512xbf16>
    %cst_187 = arith.constant dense<0.000000e+00> : vector<8x512xf32>
    %414 = tpu.matmul %412, %413, %cst_187 {dimension_numbers = #tpu.dot_dimension_numbers<[1], [0], [0], [1], [0, 0, 1, 1], [], []>} : vector<8x128xbf16>, vector<128x512xbf16>, vector<8x512xf32> -> vector<8x512xf32>
    %415 = arith.addf %410, %414 : vector<8x512xf32>
    %416 = vector.extract_strided_slice %415 {offsets = [0, 0], sizes = [8, 128], strides = [1, 1]} : vector<8x512xf32> to vector<8x128xf32>
    %417 = arith.negf %416 : vector<8x128xf32>
    %418 = math.exp %417 : vector<8x128xf32>
    %cst_188 = arith.constant 1.000000e+00 : f32
    %419 = vector.broadcast %cst_188 : f32 to vector<8x128xf32>
    %420 = arith.addf %419, %418 : vector<8x128xf32>
    %421 = arith.divf %419, %420 : vector<8x128xf32>
    %422 = vector.extract_strided_slice %415 {offsets = [0, 128], sizes = [8, 128], strides = [1, 1]} : vector<8x512xf32> to vector<8x128xf32>
    %423 = arith.negf %422 : vector<8x128xf32>
    %424 = math.exp %423 : vector<8x128xf32>
    %cst_189 = arith.constant 1.000000e+00 : f32
    %425 = vector.broadcast %cst_189 : f32 to vector<8x128xf32>
    %426 = arith.addf %425, %424 : vector<8x128xf32>
    %427 = arith.divf %425, %426 : vector<8x128xf32>
    %428 = vector.extract_strided_slice %415 {offsets = [0, 256], sizes = [8, 128], strides = [1, 1]} : vector<8x512xf32> to vector<8x128xf32>
    %429 = math.tanh %428 : vector<8x128xf32>
    %430 = vector.extract_strided_slice %415 {offsets = [0, 384], sizes = [8, 128], strides = [1, 1]} : vector<8x512xf32> to vector<8x128xf32>
    %431 = arith.negf %430 : vector<8x128xf32>
    %432 = math.exp %431 : vector<8x128xf32>
    %cst_190 = arith.constant 1.000000e+00 : f32
    %433 = vector.broadcast %cst_190 : f32 to vector<8x128xf32>
    %434 = arith.addf %433, %432 : vector<8x128xf32>
    %435 = arith.divf %433, %434 : vector<8x128xf32>
    %c0_191 = arith.constant 0 : index
    %c0_192 = arith.constant 0 : index
    %436 = vector.load %arg14[%c0_191, %c0_192] : memref<8x128xf32, #tpu.memory_space<vmem>>, vector<8x128xf32>
    %437 = arith.mulf %427, %436 : vector<8x128xf32>
    %438 = arith.mulf %421, %429 : vector<8x128xf32>
    %439 = arith.addf %437, %438 : vector<8x128xf32>
    %440 = math.tanh %439 : vector<8x128xf32>
    %441 = arith.mulf %435, %440 : vector<8x128xf32>
    %442 = vector.broadcast %407 : i32 to vector<8x1xi32>
    %443 = arith.cmpi sgt, %13, %442 : vector<8x1xi32>
    %c0_193 = arith.constant 0 : index
    %c0_194 = arith.constant 0 : index
    %444 = vector.load %arg13[%c0_193, %c0_194] : memref<8x128xf32, #tpu.memory_space<vmem>>, vector<8x128xf32>
    %445 = vector.shape_cast %443 : vector<8x1xi1> to vector<8x1xi1>
    %446 = vector.broadcast %445 : vector<8x1xi1> to vector<8x128xi1>
    %447 = arith.select %446, %441, %444 : vector<8x128xi1>, vector<8x128xf32>
    %c0_195 = arith.constant 0 : index
    %c0_196 = arith.constant 0 : index
    %448 = vector.load %arg13[%c0_195, %c0_196] : memref<8x128xf32, #tpu.memory_space<vmem>>, vector<8x128xf32>
    tpu.vector_store %arg13[%c0_195, %c0_196], %447 {strides = array<i32>} : memref<8x128xf32, #tpu.memory_space<vmem>>, vector<8x128xf32>,
    %c0_197 = arith.constant 0 : index
    %c0_198 = arith.constant 0 : index
    %449 = vector.load %arg14[%c0_197, %c0_198] : memref<8x128xf32, #tpu.memory_space<vmem>>, vector<8x128xf32>
    %450 = vector.shape_cast %443 : vector<8x1xi1> to vector<8x1xi1>
    %451 = vector.broadcast %450 : vector<8x1xi1> to vector<8x128xi1>
    %452 = arith.select %451, %439, %449 : vector<8x128xi1>, vector<8x128xf32>
    %c0_199 = arith.constant 0 : index
    %c0_200 = arith.constant 0 : index
    %453 = vector.load %arg14[%c0_199, %c0_200] : memref<8x128xf32, #tpu.memory_space<vmem>>, vector<8x128xf32>
    tpu.vector_store %arg14[%c0_199, %c0_200], %452 {strides = array<i32>} : memref<8x128xf32, #tpu.memory_space<vmem>>, vector<8x128xf32>,
    %cst_201 = arith.constant 0.000000e+00 : f32
    %454 = vector.shape_cast %443 : vector<8x1xi1> to vector<8x1xi1>
    %455 = vector.broadcast %454 : vector<8x1xi1> to vector<8x128xi1>
    %456 = vector.broadcast %cst_201 : f32 to vector<8x128xf32>
    %457 = arith.select %455, %441, %456 : vector<8x128xi1>, vector<8x128xf32>
    %458 = arith.index_cast %c7_i32 : i32 to index
    %c0_202 = arith.constant 0 : index
    %c0_203 = arith.constant 0 : index
    %459 = vector.load %arg9[%458, %c0_202, %c0_203] : memref<8x8x128xf32, #tpu.memory_space<vmem>>, vector<1x8x128xf32>
    %460 = vector.shape_cast %459 : vector<1x8x128xf32> to vector<8x128xf32>
    %461 = vector.shape_cast %457 : vector<8x128xf32> to vector<1x8x128xf32>
    tpu.vector_store %arg9[%458, %c0_202, %c0_203], %461 {strides = array<i32>} : memref<8x8x128xf32, #tpu.memory_space<vmem>>, vector<1x8x128xf32>,
    %c8_i32_204 = arith.constant 8 : i32
    %c0_i32_205 = arith.constant 0 : i32
    %462 = arith.cmpi eq, %arg1, %c0_i32_205 : i32
    %463 = arith.extui %462 : i1 to i32
    %c0_i32_206 = arith.constant 0 : i32
    %464 = arith.cmpi ne, %463, %c0_i32_206 : i32
    scf.if %464 {
      %c0_207 = arith.constant 0 : index
      %c0_208 = arith.constant 0 : index
      %465 = vector.load %arg13[%c0_207, %c0_208] : memref<8x128xf32, #tpu.memory_space<vmem>>, vector<8x128xf32>
      %c0_209 = arith.constant 0 : index
      %c0_210 = arith.constant 0 : index
      %466 = vector.load %arg10[%c0_209, %c0_210] : memref<8x128xf32, #tpu.memory_space<vmem>>, vector<8x128xf32>
      tpu.vector_store %arg10[%c0_209, %c0_210], %465 {strides = array<i32>} : memref<8x128xf32, #tpu.memory_space<vmem>>, vector<8x128xf32>,
      %c0_211 = arith.constant 0 : index
      %c0_212 = arith.constant 0 : index
      %467 = vector.load %arg13[%c0_211, %c0_212] : memref<8x128xf32, #tpu.memory_space<vmem>>, vector<8x128xf32>
      %468 = arith.truncf %467 : vector<8x128xf32> to vector<8x128xbf16>
      %c0_213 = arith.constant 0 : index
      %c0_214 = arith.constant 0 : index
      %469 = vector.load %arg7[%c0_213, %c0_214] : memref<128x128xbf16, #tpu.memory_space<vmem>>, vector<128x128xbf16>
      %cst_215 = arith.constant dense<0.000000e+00> : vector<8x128xf32>
      %470 = tpu.matmul %468, %469, %cst_215 {dimension_numbers = #tpu.dot_dimension_numbers<[1], [0], [0], [1], [0, 0, 1, 1], [], []>} : vector<8x128xbf16>, vector<128x128xbf16>, vector<8x128xf32> -> vector<8x128xf32>
      %c0_216 = arith.constant 0 : index
      %c0_217 = arith.constant 0 : index
      %471 = vector.load %arg8[%c0_216, %c0_217] : memref<1x128xf32, #tpu.memory_space<vmem>>, vector<1x128xf32>
      %472 = vector.broadcast %471 : vector<1x128xf32> to vector<8x128xf32>
      %473 = arith.addf %470, %472 : vector<8x128xf32>
      %c0_218 = arith.constant 0 : index
      %c0_219 = arith.constant 0 : index
      %474 = vector.load %arg11[%c0_218, %c0_219] : memref<8x128xf32, #tpu.memory_space<vmem>>, vector<8x128xf32>
      tpu.vector_store %arg11[%c0_218, %c0_219], %473 {strides = array<i32>} : memref<8x128xf32, #tpu.memory_space<vmem>>, vector<8x128xf32>,
    } else {
    }
    return
  }
  func.func @transform_0(%arg0: i32, %arg1: i32) -> (i32, i32) {
    %c0_i32 = arith.constant 0 : i32
    %c0_i32_0 = arith.constant 0 : i32
    return %arg0, %c0_i32 : i32, i32
  }
  func.func @transform_1(%arg0: i32, %arg1: i32) -> (i32, i32, i32) {
    %c0_i32 = arith.constant 0 : i32
    %c0_i32_0 = arith.constant 0 : i32
    return %arg1, %arg0, %c0_i32 : i32, i32, i32
  }
  func.func @transform_2(%arg0: i32, %arg1: i32) -> (i32, i32) {
    %c0_i32 = arith.constant 0 : i32
    %c0_i32_0 = arith.constant 0 : i32
    %c0_i32_1 = arith.constant 0 : i32
    return %c0_i32, %c0_i32_0 : i32, i32
  }
  func.func @transform_3(%arg0: i32, %arg1: i32) -> (i32, i32) {
    %c0_i32 = arith.constant 0 : i32
    %c0_i32_0 = arith.constant 0 : i32
    %c0_i32_1 = arith.constant 0 : i32
    return %c0_i32, %c0_i32_0 : i32, i32
  }
  func.func @transform_4(%arg0: i32, %arg1: i32) -> (i32, i32) {
    %c0_i32 = arith.constant 0 : i32
    %c0_i32_0 = arith.constant 0 : i32
    %c0_i32_1 = arith.constant 0 : i32
    return %c0_i32, %c0_i32_0 : i32, i32
  }
  func.func @transform_5(%arg0: i32, %arg1: i32) -> (i32, i32) {
    %c0_i32 = arith.constant 0 : i32
    %c0_i32_0 = arith.constant 0 : i32
    %c0_i32_1 = arith.constant 0 : i32
    return %c0_i32, %c0_i32_0 : i32, i32
  }
  func.func @transform_6(%arg0: i32, %arg1: i32) -> (i32, i32) {
    %c0_i32 = arith.constant 0 : i32
    %c0_i32_0 = arith.constant 0 : i32
    %c0_i32_1 = arith.constant 0 : i32
    return %c0_i32, %c0_i32_0 : i32, i32
  }
  func.func @transform_7(%arg0: i32, %arg1: i32) -> (i32, i32, i32) {
    %c0_i32 = arith.constant 0 : i32
    %c0_i32_0 = arith.constant 0 : i32
    return %arg1, %arg0, %c0_i32 : i32, i32, i32
  }
  func.func @transform_8(%arg0: i32, %arg1: i32) -> (i32, i32) {
    %c0_i32 = arith.constant 0 : i32
    %c0_i32_0 = arith.constant 0 : i32
    return %arg0, %c0_i32 : i32, i32
  }
  func.func @transform_9(%arg0: i32, %arg1: i32) -> (i32, i32) {
    %c0_i32 = arith.constant 0 : i32
    %c0_i32_0 = arith.constant 0 : i32
    return %arg0, %c0_i32 : i32, i32
  }
}

</mosaic_0001>

<bundles_post_ra>
// kernel: tpu_custom_call.1
= control target key start
LH: loop header
LB: loop body
LE: loop exit
PB: predicated region body
PF: predicated region fallthrough
CT: control target
= control target key end

     0   :  { %15 = vsyncpa [#allocation6], 0  ;;  %s5220_s0 = inlined_call_operand.vmem [shape: s32[8,1], index: 0, kind: input, shape index: {}]   ;;  %s5221_s1 = inlined_call_operand.hbm [shape: f32[8,8,8], index: 1, kind: input, shape index: {}]   ;;  %s5222_s2 = inlined_call_operand.hbm [shape: bf16[8,512], index: 2, kind: input, shape index: {}]   ;;  %s5223_s3 = inlined_call_operand.hbm [shape: bf16[128,512], index: 3, kind: input, shape index: {}]   ;;  %s5224_s4 = inlined_call_operand.vmem [shape: f32[1,512], index: 4, kind: input, shape index: {}]   ;;  %s5225_s5 = inlined_call_operand.hbm [shape: bf16[128,128], index: 5, kind: input, shape index: {}]   ;;  %s5226_s6 = inlined_call_operand.vmem [shape: f32[1,128], index: 6, kind: input, shape index: {}]   ;;  %s5227_s7 = inlined_call_operand.hbm [shape: f32[8,8,128], index: 7, kind: output, shape index: {0}]   ;;  %s5228_s8 = inlined_call_operand.hbm [shape: f32[8,128], index: 8, kind: output, shape index: {1}]   ;;  %s5229_s9 = inlined_call_operand.hbm [shape: f32[8,128], index: 9, kind: output, shape index: {2}]  }
   0x1   :  { %16 = vsyncpa [#allocation9], 0 }
   0x2   :  { %17 = vsyncpa [#allocation12], 0 }
   0x3   :  { %18 = vsyncpa [#allocation7], 0  ;;  %s40_s11 = sshll.u32 %s5222_s2, 4  ;;  %s41_s11 = int_to_ptr.hbm [resolvable:$true] %s40_s11 }
   0x4   :  { %19 = vsyncpa [#allocation15], 0  ;;  %s4826_s12 = smov [#allocation8]   ;;  %s26_s16 = sshll.u32 %s5221_s1, 4  ;;  %s27_s16 = int_to_ptr.hbm [resolvable:$true] %s26_s16 }
   0x5   :  { %s42_s13 = sshll.u32 %s4826_s12, 4  ;;  %s4827_s17 = smov [#allocation5]   ;;  %s43_s13 = int_to_ptr.vmem [resolvable:$true] %s42_s13 }
   0x6   :  { %45 = dma.hbm_to_vmem [thread:$0]  %s41_s11, 256, %s43_s13, [#allocation9]  }
   0x7   :  { %s28_s18 = sshll.u32 %s4827_s17, 4  ;;  %s4828_s19 = smov 128   ;;  %s29_s18 = int_to_ptr.vmem [resolvable:$true] %s28_s18 }
   0x8   :  { %s4829_s20 = smov 8   ;;  %s50_s22 = sshll.u32 %s5223_s3, 4  ;;  %s51_s22 = int_to_ptr.hbm [resolvable:$true] %s50_s22 }
   0x9   :  { %34 = dma.hbm_to_vmem [thread:$0]  %s27_s16, 1024, %s29_s18, [#allocation6], %s4828_s19, %s4828_s19, %s4829_s20  }
   0xa   :  { %s4830_s23 = smov [#allocation10]   ;;  %s65_s26 = sshll.u32 %s5225_s5, 4  ;;  %s66_s26 = int_to_ptr.hbm [resolvable:$true] %s65_s26 }
   0xb   :  { %s52_s24 = sshll.u32 %s4830_s23, 4  ;;  %s4831_s27 = smov 256   ;;  %s53_s24 = int_to_ptr.vmem [resolvable:$true] %s52_s24 }
   0xc   :  { %s4832_s28 = smov 16   ;;  %s4833_s29 = smov [#allocation11]  }
   0xd   :  { %58 = dma.hbm_to_vmem [thread:$0]  %s51_s22, 4096, %s53_s24, [#allocation9], %s4831_s27, %s4831_s27, %s4832_s28  }
   0xe   :  { %s67_s30 = sshll.u32 %s4833_s29, 4  ;;  %s4834_s10 = smov 64   ;;  %s68_s30 = int_to_ptr.vmem [resolvable:$true] %s67_s30 }
   0xf   :  { %s4835_s11 = smov 4  }
  0x10   :  { %73 = dma.hbm_to_vmem [thread:$0]  %s66_s26, 1024, %s68_s30, [#allocation12], %s4834_s10, %s4834_s10, %s4835_s11  }
  0x11   :  { %4816 = dma.done.wait [#allocation6], 1024  }
  0x12   :  { %4817 = vsyncadd [#allocation6], 4294966272 }
  0x13   :  { %4818 = dma.done.wait [#allocation9], 4352  }
  0x14   :  { %4819 = vsyncadd [#allocation9], 4294962944 }
  0x15   :  { %4820 = dma.done.wait [#allocation12], 1024  }
  0x16   :  { %4821 = vsyncadd [#allocation12], 4294966272  ;;  %v111_v0 = vld [vmem:[#allocation8] sm:$0xff]  ;;  %v112_v1 = vld [vmem:[#allocation8 + $0x8] sm:$0xff]  ;;  %vm146_vm0 = vcmask 1043456   ;;  %vm133_vm1 = vcmask 64512  }
  0x17   :  { %v99_v2 = vld [vmem:[#allocation5] sm:$0xff]  ;;  %v125_v3 = vunpack.c.l.b16 %v111_v0  ;;  %v127_v4 = vunpack.c.l.b16 %v112_v1  ;;  %v128_v5 = vunpack.c.h.b16 %v112_v1  ;;  %v100_v6 = vld [vmem:[#allocation5 + $0x8] sm:$0xff]  ;;  %v105_v7 = vld [vmem:[#allocation5 + $0x30] sm:$0xff]  ;;  %v126_v9 = vunpack.c.h.b16 %v111_v0  ;;  %s3095_s16 = sshll.u32 %s5228_s8, 4  ;;  %s4838_s17 = smov [#allocation14]   ;;  %s3096_s16 = int_to_ptr.hbm [resolvable:$true] %s3095_s16 }
  0x18   :  { %v106_v8 = vld [vmem:[#allocation5 + $0x38] sm:$0xff]  ;;  %v4251_v10 = vld [vmem:[#allocation10 + $0xe4] sm:$0xf]  ;;  %v3259_v15 = vld [vmem:[#allocation10 + $0xf0] sm:$0xf0]  ;;  %v4906_v18 = vpack.c.bf16 %v100_v6, %v99_v2  ;;  %s3093_s18 = sshll.u32 %s4838_s17, 4  ;;  %s3094_s18 = int_to_ptr.vmem [resolvable:$true] %s3093_s18 }
  0x19   :  { %v129_v11 = vpack.c.b16 %v125_v3, %v125_v3  ;;  %v131_v12 = vpack.c.b16 %v127_v4, %v127_v4  ;;  %v132_v13 = vpack.c.b16 %v128_v5, %v128_v5  ;;  %v130_v14 = vpack.c.b16 %v126_v9, %v126_v9  ;;  %v3257_v16 = vld [vmem:[#allocation10 + $0xe0] sm:$0xf]  ;;  %v4253_v17 = vld [vmem:[#allocation10 + $0xec] sm:$0xf0]  ;;  %v4252_v23 = vld [vmem:[#allocation10 + $0xec] sm:$0xf] }
  0x1a   :  { %v4908_v19 = vpack.c.bf16 %v106_v8, %v105_v7  ;;  %v3258_v20 = vor.u32 %v4253_v17, %v3257_v16  ;;  %v3241_v21 = vld [vmem:[#allocation10 + $0xc0] sm:$0xf]  ;;  %v4249_v22 = vld [vmem:[#allocation10 + $0xcc] sm:$0xf0]  ;;  %v3267_v28 = vld [vmem:[#allocation10 + $0xf8] sm:$0xf0]  ;;  %v3262_v29 = vor.u32 %v4251_v10, %v3259_v15 }
  0x1b   :  { %v148_v24 = vsel %vm146_vm0, %v129_v11, 0  ;;  %v154_v25 = vsel %vm146_vm0, %v131_v12, 0  ;;  %v157_v26 = vsel %vm146_vm0, %v132_v13, 0  ;;  %v151_v27 = vsel %vm146_vm0, %v130_v14, 0  ;;  %v4247_v31 = vld [vmem:[#allocation10 + $0xc4] sm:$0xf] }
  0x1c   :  { %166 = vmatpush.bf16.msra.mxu0 %v148_v24  ;;  %4499 = vmatpush.bf16.msra.mxu1 %v148_v24  ;;  %v3270_v30 = vor.u32 %v4252_v23, %v3267_v28  ;;  %v3243_v32 = vld [vmem:[#allocation10 + $0xd0] sm:$0xf0]  ;;  %v3242_v33 = vor.u32 %v4249_v22, %v3241_v21  ;;  %v4248_v34 = vld [vmem:[#allocation10 + $0xcc] sm:$0xf]  ;;  %v3251_v35 = vld [vmem:[#allocation10 + $0xd8] sm:$0xf0] }
  0x1d   :  { %224 = vmatpush.bf16.msra.mxu2 %v154_v25  ;;  %253 = vmatpush.bf16.msra.mxu3 %v157_v26  ;;  %v3265_v36 = vld [vmem:[#allocation10 + $0xe8] sm:$0xf]  ;;  %v3225_v37 = vld [vmem:[#allocation10 + $0xa0] sm:$0xf]  ;;  %v4245_v38 = vld [vmem:[#allocation10 + $0xac] sm:$0xf0]  ;;  %v3246_v41 = vor.u32 %v4247_v31, %v3243_v32  ;;  %v3254_v42 = vor.u32 %v4248_v34, %v3251_v35 }
  0x1e   :  { %v4254_v39 = vld [vmem:[#allocation10 + $0xf4] sm:$0xf0]  ;;  %v4243_v43 = vld [vmem:[#allocation10 + $0xa4] sm:$0xf]  ;;  %v3227_v44 = vld [vmem:[#allocation10 + $0xb0] sm:$0xf0]  ;;  %v3226_v45 = vor.u32 %v4245_v38, %v3225_v37 }
  0x1f   :  { %3127 = vmatmul.msk.bf16.vlgmr.msra.gmra.mxu0 %vm133_vm1, %v4906_v18  ;;  %3130 = vmatmul.msk.bf16.vlgmr.msra.gmra.mxu1 %vm133_vm1, %v4908_v19  ;;  %v3266_v40 = vor.u32 %v4254_v39, %v3265_v36  ;;  %v3249_v46 = vld [vmem:[#allocation10 + $0xc8] sm:$0xf]  ;;  %v4250_v47 = vld [vmem:[#allocation10 + $0xd4] sm:$0xf0]  ;;  %v4244_v48 = vld [vmem:[#allocation10 + $0xac] sm:$0xf]  ;;  %v3230_v54 = vor.u32 %v4243_v43, %v3227_v44 }
  0x20   :  { %195 = vmatpush.bf16.msrb.mxu1 %v151_v27  ;;  %507 = vmatpush.bf16.msrb.mxu0 %v3258_v20  ;;  %v3209_v49 = vld [vmem:[#allocation10 + $0x80] sm:$0xf]  ;;  %v4241_v50 = vld [vmem:[#allocation10 + $0x8c] sm:$0xf0]  ;;  %v3250_v51 = vor.u32 %v4250_v47, %v3249_v46  ;;  %v3235_v52 = vld [vmem:[#allocation10 + $0xb8] sm:$0xf0] }
  0x21   :  { %3135 = vmatmul.msk.bf16.vlgmr.msra.gmra.mxu2 %vm133_vm1, %v4906_v18  ;;  %3139 = vmatmul.msk.bf16.vlgmr.msra.gmra.mxu3 %vm133_vm1, %v4906_v18  ;;  %v3233_v53 = vld [vmem:[#allocation10 + $0xa8] sm:$0xf]  ;;  %v3193_v55 = vld [vmem:[#allocation10 + $0x60] sm:$0xf]  ;;  %v4237_v56 = vld [vmem:[#allocation10 + $0x6c] sm:$0xf0]  ;;  %v3238_v57 = vor.u32 %v4244_v48, %v3235_v52  ;;  %v3210_v60 = vor.u32 %v4241_v50, %v3209_v49 }
  0x22   :  { %546 = vmatpush.bf16.msrb.mxu3 %v3270_v30  ;;  %533 = vmatpush.bf16.msrb.mxu2 %v3266_v40  ;;  %v4239_v58 = vld [vmem:[#allocation10 + $0x84] sm:$0xf]  ;;  %v4246_v59 = vld [vmem:[#allocation10 + $0xb4] sm:$0xf0]  ;;  %v3211_v61 = vld [vmem:[#allocation10 + $0x90] sm:$0xf0]  ;;  %v3194_v7 = vor.u32 %v4237_v56, %v3193_v55 }
  0x23   :  { %v3234_v62 = vor.u32 %v4246_v59, %v3233_v53  ;;  %v3217_v63 = vld [vmem:[#allocation10 + $0x88] sm:$0xf]  ;;  %v4240_v0 = vld [vmem:[#allocation10 + $0x8c] sm:$0xf]  ;;  %v4242_v1 = vld [vmem:[#allocation10 + $0x94] sm:$0xf0]  ;;  %v3214_v5 = vor.u32 %v4239_v58, %v3211_v61 }
  0x24   :  { %520 = vmatpush.bf16.msra.mxu1 %v3262_v29  ;;  %508 = vmatpush.bf16.msrb.mxu0 %v3242_v33  ;;  %v3219_v2 = vld [vmem:[#allocation10 + $0x98] sm:$0xf0]  ;;  %v101_v3 = vld [vmem:[#allocation5 + $0x10] sm:$0xff]  ;;  %v102_v4 = vld [vmem:[#allocation5 + $0x18] sm:$0xff]  ;;  %v3218_v8 = vor.u32 %v4242_v1, %v3217_v63  ;;  %v4836_v59 = vmov 0.0|0.0   ;;  %v4837_v61 = vmov 0  }
  0x25   :  { %v3222_v6 = vor.u32 %v4240_v0, %v3219_v2  ;;  %v4922_v9 = vpack.c.bf16 %v102_v4, %v101_v3  ;;  %v3177_v10 = vld [vmem:[#allocation10 + $0x40] sm:$0xf]  ;;  %v4233_v11 = vld [vmem:[#allocation10 + $0x4c] sm:$0xf0]  ;;  %v3201_v13 = vld [vmem:[#allocation10 + $0x68] sm:$0xf]  ;;  %4515 = vset.pattern.permute.xlu0 %v4837_v61  ;;  %4516 = vset.pattern.permute.xlu1 %v4837_v61 }
  0x26   :  { %547 = vmatpush.bf16.msrb.mxu3 %v3254_v42  ;;  %534 = vmatpush.bf16.msrb.mxu2 %v3250_v51  ;;  %v3178_v12 = vor.u32 %v4233_v11, %v3177_v10  ;;  %v4238_v14 = vld [vmem:[#allocation10 + $0x74] sm:$0xf0]  ;;  %v4236_v15 = vld [vmem:[#allocation10 + $0x6c] sm:$0xf]  ;;  %v3161_v16 = vld [vmem:[#allocation10 + $0x20] sm:$0xf] }
  0x27   :  { %v4229_v17 = vld [vmem:[#allocation10 + $0x2c] sm:$0xf0]  ;;  %v3202_v20 = vor.u32 %v4238_v14, %v3201_v13  ;;  %v3203_v21 = vld [vmem:[#allocation10 + $0x78] sm:$0xf0]  ;;  %v4235_v22 = vld [vmem:[#allocation10 + $0x64] sm:$0xf]  ;;  %4517 = vset.pattern.permute.xlu2 %v4837_v61 }
  0x28   :  { %521 = vmatpush.bf16.msra.mxu1 %v3246_v41  ;;  %509 = vmatpush.bf16.msrb.mxu0 %v3226_v45  ;;  %v3195_v23 = vld [vmem:[#allocation10 + $0x70] sm:$0xf0]  ;;  %v3206_v24 = vor.u32 %v4236_v15, %v3203_v21  ;;  %v3185_v25 = vld [vmem:[#allocation10 + $0x48] sm:$0xf]  ;;  %v4234_v27 = vld [vmem:[#allocation10 + $0x54] sm:$0xf0] }
  0x29   :  { %v3198_v26 = vor.u32 %v4235_v22, %v3195_v23  ;;  %v4232_v28 = vld [vmem:[#allocation10 + $0x4c] sm:$0xf]  ;;  %v3187_v29 = vld [vmem:[#allocation10 + $0x58] sm:$0xf0]  ;;  %v3145_v30 = vld [vmem:[#allocation10] sm:$0xf]  ;;  %v3186_v31 = vor.u32 %v4234_v27, %v3185_v25 }
  0x2a   :  { %548 = vmatpush.bf16.msrb.mxu3 %v3238_v57  ;;  %535 = vmatpush.bf16.msrb.mxu2 %v3234_v62  ;;  %v4231_v32 = vld [vmem:[#allocation10 + $0x44] sm:$0xf]  ;;  %v3179_v33 = vld [vmem:[#allocation10 + $0x50] sm:$0xf0]  ;;  %v4225_v34 = vld [vmem:[#allocation10 + $0xc] sm:$0xf0]  ;;  %v3190_v35 = vor.u32 %v4232_v28, %v3187_v29 }
  0x2b   :  { %v3182_v36 = vor.u32 %v4231_v32, %v3179_v33  ;;  %v3169_v37 = vld [vmem:[#allocation10 + $0x28] sm:$0xf]  ;;  %v4230_v38 = vld [vmem:[#allocation10 + $0x34] sm:$0xf0]  ;;  %v4228_v39 = vld [vmem:[#allocation10 + $0x2c] sm:$0xf]  ;;  %v3146_v41 = vor.u32 %v4225_v34, %v3145_v30 }
  0x2c   :  { %522 = vmatpush.bf16.msra.mxu1 %v3230_v54  ;;  %510 = vmatpush.bf16.msrb.mxu0 %v3210_v60  ;;  %v3171_v40 = vld [vmem:[#allocation10 + $0x38] sm:$0xf0]  ;;  %v3170_v42 = vor.u32 %v4230_v38, %v3169_v37  ;;  %v3153_v44 = vld [vmem:[#allocation10 + $0x8] sm:$0xf]  ;;  %v4226_v45 = vld [vmem:[#allocation10 + $0x14] sm:$0xf0] }
  0x2d   :  { %v3174_v43 = vor.u32 %v4228_v39, %v3171_v40  ;;  %v103_v46 = vld [vmem:[#allocation5 + $0x20] sm:$0xff]  ;;  %v104_v47 = vld [vmem:[#allocation5 + $0x28] sm:$0xff]  ;;  %v3154_v48 = vor.u32 %v4226_v45, %v3153_v44  ;;  %v4224_v49 = vld [vmem:[#allocation10 + $0xc] sm:$0xf]  ;;  %s3081_s22 = sshll.u32 %s5227_s7, 4  ;;  %s4839_s23 = smov [#allocation13]   ;;  %s3082_s22 = int_to_ptr.hbm [resolvable:$true] %s3081_s22 }
  0x2e   :  { %549 = vmatpush.bf16.msrb.mxu3 %v3222_v6  ;;  %536 = vmatpush.bf16.msrb.mxu2 %v3218_v8  ;;  %v3155_v50 = vld [vmem:[#allocation10 + $0x18] sm:$0xf0]  ;;  %v109_v51 = vpack.c.bf16 %v104_v47, %v103_v46  ;;  %v4227_v53 = vld [vmem:[#allocation10 + $0x24] sm:$0xf]  ;;  %v3163_v54 = vld [vmem:[#allocation10 + $0x30] sm:$0xf0] }
  0x2f   :  { %3128 = vmatmul.msk.bf16.gmra.mxu0 %vm133_vm1, %v4922_v9  ;;  %3131 = vmatmul.msk.bf16.vlgmr.msrb.gmra.mxu1 %vm133_vm1, %v4906_v18  ;;  %v3162_v18 = vor.u32 %v4229_v17, %v3161_v16  ;;  %v3158_v52 = vor.u32 %v4224_v49, %v3155_v50  ;;  %v3166_v55 = vor.u32 %v4227_v53, %v3163_v54  ;;  %v4223_v56 = vld [vmem:[#allocation10 + $0x4] sm:$0xf]  ;;  %v3147_v57 = vld [vmem:[#allocation10 + $0x10] sm:$0xf0]  ;;  %v113_v1 = vld [vmem:[%s5224_s4] sm:$0xf] }
  0x30   :  { %523 = vmatpush.bf16.msra.mxu1 %v3214_v5  ;;  %511 = vmatpush.bf16.msrb.mxu0 %v3194_v7  ;;  %v3150_v58 = vor.u32 %v4223_v56, %v3147_v57  ;;  %v4941_v60 = vld [vmem:[%s5220_s0] sm:$0xff]  ;;  %v4961_v2 = vperm.slane %v113_v1, 0  ;;  %v4975_v10 = vperm.slane %v113_v1, 2  ;;  %v4977_v11 = vperm.slane %v113_v1, 3  ;;  %s3079_s24 = sshll.u32 %s4839_s23, 4  ;;  %s4840_s8 = smov [#allocation16]   ;;  %s3080_s24 = int_to_ptr.vmem [resolvable:$true] %s3079_s24 }
  0x31   :  { %3136 = vmatmul.msk.bf16.gmra.mxu2 %vm133_vm1, %v4922_v9  ;;  %3140 = vmatmul.msk.bf16.gmra.mxu3 %vm133_vm1, %v4922_v9  ;;  %vm628_vm2 = vcmp.gt.s32.totalorder %v4941_v60, 0  ;;  %vm962_vm3 = vcmp.gt.s32.totalorder %v4941_v60, 1  ;;  %vm2637_vm4 = vcmp.gt.s32.totalorder %v4941_v60, 6  ;;  %v4990_v21 = vperm.slane %v113_v1, 1  ;;  %s3104_s26 = sshll.u32 %s4840_s8, 4  ;;  %s3106_s29 = sshll.u32 %s5229_s9, 4  ;;  %s3105_s26 = int_to_ptr.vmem [resolvable:$true] %s3104_s26  ;;  %s3107_s29 = int_to_ptr.hbm [resolvable:$true] %s3106_s29 }
  0x32   :  { %537 = vmatpush.bf16.msrb.mxu2 %v3202_v20  ;;  %550 = vmatpush.bf16.msrb.mxu3 %v3206_v24  ;;  %v629_v62 = vsel %vm628_vm2, 1, %v4837_v61  ;;  %v963_v63 = vsel %vm962_vm3, 1, %v4837_v61  ;;  %v2638_v0 = vsel %vm2637_vm4, 1, %v4837_v61  ;;  %vm1297_vm3 = vcmp.gt.s32.totalorder %v4941_v60, 2 }
  0x33   :  { %631 = vperm.xlu0 %4515, %v629_v62   ;;  %vm1632_vm4 = vcmp.gt.s32.totalorder %v4941_v60, 3 }
  0x34   :  { %512 = vmatpush.bf16.msrb.mxu0 %v3178_v12  ;;  %524 = vmatpush.bf16.msra.mxu1 %v3198_v26 }
  0x36   :  { %538 = vmatpush.bf16.msrb.mxu2 %v3186_v31  ;;  %551 = vmatpush.bf16.msrb.mxu3 %v3190_v35 }
  0x38   :  { %513 = vmatpush.bf16.msrb.mxu0 %v3162_v18  ;;  %525 = vmatpush.bf16.msra.mxu1 %v3182_v36 }
  0x3a   :  { %539 = vmatpush.bf16.msrb.mxu2 %v3170_v42  ;;  %552 = vmatpush.bf16.msrb.mxu3 %v3174_v43 }
  0x3b   :  { %965 = vperm.xlu0 %4515, %v963_v63  }
  0x3c   :  { %514 = vmatpush.bf16.msrb.mxu0 %v3146_v41  ;;  %526 = vmatpush.bf16.msra.mxu1 %v3166_v55 }
  0x3e   :  { %540 = vmatpush.bf16.msrb.mxu2 %v3154_v48  ;;  %553 = vmatpush.bf16.msrb.mxu3 %v3158_v52 }
  0x3f   :  { %3129 = vmatmul.msk.bf16.gmra.mxu0 %vm133_vm1, %v109_v51  ;;  %3132 = vmatmul.msk.bf16.gmra.mxu1 %vm133_vm1, %v4922_v9 }
  0x40   :  { %527 = vmatpush.bf16.msra.mxu1 %v3150_v58 }
  0x41   :  { %3137 = vmatmul.msk.bf16.gmra.mxu2 %vm133_vm1, %v109_v51  ;;  %3141 = vmatmul.msk.bf16.gmra.mxu3 %vm133_vm1, %v109_v51 }
  0x43   :  { %2640 = vperm.xlu0 %4515, %v2638_v0  }
  0x4f   :  { %3133 = vmatmul.msk.bf16.gmra.mxu1 %vm133_vm1, %v109_v51  ;;  %515 = vmatmul.bf16.vlgmr.msrb.gmra.mxu0 %v4836_v59 }
  0x51   :  { %3138 = vmatmul.msk.bf16.gmra.mxu2 %vm133_vm1, %v4908_v19  ;;  %3142 = vmatmul.msk.bf16.gmra.mxu3 %vm133_vm1, %v4908_v19 }
  0x5f   :  { %3134 = vmatmul.msk.bf16.gmra.mxu1 %vm133_vm1, %v4908_v19 }
  0x61   :  { %541 = vmatmul.bf16.vlgmr.msrb.gmra.mxu2 %v4836_v59  ;;  %554 = vmatmul.bf16.vlgmr.msrb.gmra.mxu3 %v4836_v59 }
  0x6f   :  { %528 = vmatmul.bf16.vlgmr.msra.gmra.mxu1 %v4836_v59 }
  0x9c   :  { %v168_v19 = vpop.f32.mrf.mxu0  ;;  %v183_v3 = vpop.f32.mrf.mxu1 }
  0x9d   :  { %v4964_v4 = vadd.f32 %v183_v3, %v4961_v2  ;;  %v169_v45 = vadd.f32 %v168_v19, %v4961_v2  ;;  %v3388_v19 = vld [vmem:[#allocation10 + $0xe0] sm:$0xf]  ;;  %v4285_v3 = vld [vmem:[#allocation10 + $0xec] sm:$0xf0] }
  0xa4   :  { %v4966_v5 = vpop.f32.mrf.mxu2  ;;  %v4968_v6 = vpop.f32.mrf.mxu3 }
  0xa5   :  { %v170_v7 = vpop.f32.mrf.mxu0  ;;  %v4970_v8 = vpop.f32.mrf.mxu1 }
  0xa6   :  { %v4973_v9 = vadd.f32 %v170_v7, %v4961_v2  ;;  %v4283_v7 = vld [vmem:[#allocation10 + $0xe4] sm:$0xf] }
  0xac   :  { %v228_v12 = vpop.f32.mrf.mxu2  ;;  %v257_v13 = vpop.f32.mrf.mxu3 }
  0xad   :  { %v4980_v14 = vadd.f32 %v228_v12, %v4975_v10  ;;  %v4983_v15 = vadd.f32 %v257_v13, %v4977_v11  ;;  %v173_v16 = vpop.f32.mrf.mxu0  ;;  %v4985_v17 = vpop.f32.mrf.mxu1  ;;  %v3389_v12 = vor.u32 %v4285_v3, %v3388_v19  ;;  %v3390_v13 = vld [vmem:[#allocation10 + $0xf0] sm:$0xf0] }
  0xae   :  { %v4988_v20 = vadd.f32 %v173_v16, %v4961_v2  ;;  %v3396_v16 = vld [vmem:[#allocation10 + $0xe8] sm:$0xf] }
  0xaf   :  { %841 = vmatpush.bf16.msra.mxu0 %v3389_v12  ;;  %v3356_v12 = vld [vmem:[#allocation10 + $0xa0] sm:$0xf] }
  0xb4   :  { %v231_v22 = vpop.f32.mrf.mxu2  ;;  %v260_v23 = vpop.f32.mrf.mxu3 }
  0xb5   :  { %v4993_v24 = vadd.f32 %v231_v22, %v4975_v10  ;;  %v4996_v25 = vadd.f32 %v260_v23, %v4977_v11  ;;  %v175_v26 = vpop.f32.mrf.mxu0  ;;  %v199_v27 = vpop.f32.mrf.mxu1  ;;  %v4286_v22 = vld [vmem:[#allocation10 + $0xf4] sm:$0xf0] }
  0xb6   :  { %v4999_v28 = vadd.f32 %v175_v26, %v4961_v2  ;;  %v5002_v29 = vadd.f32 %v199_v27, %v4990_v21  ;;  %v3393_v27 = vor.u32 %v4283_v7, %v3390_v13  ;;  %v4277_v13 = vld [vmem:[#allocation10 + $0xac] sm:$0xf0] }
  0xb8   :  { %854 = vmatpush.bf16.msrb.mxu1 %v3393_v27  ;;  %v3358_v27 = vld [vmem:[#allocation10 + $0xb0] sm:$0xf0] }
  0xbc   :  { %v233_v18 = vpop.f32.mrf.mxu2  ;;  %v262_v30 = vpop.f32.mrf.mxu3 }
  0xbd   :  { %v5005_v31 = vadd.f32 %v233_v18, %v4975_v10  ;;  %v5008_v32 = vadd.f32 %v262_v30, %v4977_v11  ;;  %v178_v33 = vpop.f32.mrf.mxu0  ;;  %v202_v34 = vpop.f32.mrf.mxu1  ;;  %v3397_v18 = vor.u32 %v4286_v22, %v3396_v16  ;;  %v4284_v30 = vld [vmem:[#allocation10 + $0xec] sm:$0xf]  ;;  %v4275_v16 = vld [vmem:[#allocation10 + $0xa4] sm:$0xf]  ;;  %v227_v22 = vadd.f32 %v4966_v5, %v4975_v10 }
  0xbe   :  { %v5011_v35 = vadd.f32 %v178_v33, %v4961_v2  ;;  %v5014_v36 = vadd.f32 %v202_v34, %v4990_v21  ;;  %v3398_v33 = vld [vmem:[#allocation10 + $0xf8] sm:$0xf0] }
  0xbf   :  { %867 = vmatpush.bf16.msra.mxu2 %v3397_v18  ;;  %v3364_v18 = vld [vmem:[#allocation10 + $0xa8] sm:$0xf] }
  0xc4   :  { %v236_v37 = vpop.f32.mrf.mxu2  ;;  %v265_v38 = vpop.f32.mrf.mxu3 }
  0xc5   :  { %v5017_v39 = vadd.f32 %v236_v37, %v4975_v10  ;;  %v5020_v40 = vadd.f32 %v265_v38, %v4977_v11  ;;  %v180_v41 = vpop.f32.mrf.mxu0  ;;  %v204_v42 = vpop.f32.mrf.mxu1 }
  0xc6   :  { %v5023_v43 = vadd.f32 %v180_v41, %v4961_v2  ;;  %v5026_v44 = vadd.f32 %v204_v42, %v4990_v21  ;;  %v3401_v41 = vor.u32 %v4284_v30, %v3398_v33  ;;  %v4278_v30 = vld [vmem:[#allocation10 + $0xb4] sm:$0xf0] }
  0xc8   :  { %880 = vmatpush.bf16.msra.mxu3 %v3401_v41 }
  0xcc   :  { %v238_v46 = vpop.f32.mrf.mxu2  ;;  %v267_v47 = vpop.f32.mrf.mxu3 }
  0xcd   :  { %v5030_v48 = vadd.f32 %v238_v46, %v4975_v10  ;;  %v5033_v49 = vadd.f32 %v267_v47, %v4977_v11  ;;  %v207_v50 = vpop.f32.mrf.mxu1  ;;  %v516_v51 = vpop.f32.mrf.mxu0  ;;  %v4281_v46 = vld [vmem:[#allocation10 + $0xcc] sm:$0xf0]  ;;  %v4279_v47 = vld [vmem:[#allocation10 + $0xc4] sm:$0xf] }
  0xce   :  { %v5036_v52 = vadd.f32 %v207_v50, %v4990_v21  ;;  %v559_v53 = vadd.f32 %v516_v51, %v169_v45  ;;  %v3372_v45 = vld [vmem:[#allocation10 + $0xc0] sm:$0xf]  ;;  %v3374_v51 = vld [vmem:[#allocation10 + $0xd0] sm:$0xf0] }
  0xcf   :  { %v3373_v50 = vor.u32 %v4281_v46, %v3372_v45  ;;  %v3361_v45 = vor.u32 %v4275_v16, %v3358_v27  ;;  %v3365_v46 = vor.u32 %v4278_v30, %v3364_v18  ;;  %v3342_v16 = vld [vmem:[#allocation10 + $0x90] sm:$0xf0]  ;;  %v4272_v18 = vld [vmem:[#allocation10 + $0x8c] sm:$0xf]  ;;  %v3350_v30 = vld [vmem:[#allocation10 + $0x98] sm:$0xf0] }
  0xd0   :  { %v3271_v54 = vmul.f32 -1.442695, %v559_v53  ;;  %v3380_v53 = vld [vmem:[#allocation10 + $0xc8] sm:$0xf] }
  0xd1   :  { %842 = vmatpush.bf16.msra.mxu0 %v3373_v50  ;;  %v3366_v50 = vld [vmem:[#allocation10 + $0xb8] sm:$0xf0] }
  0xd2   :  { %4519 = vpow2.f32 %v3271_v54  ;;  %v4282_v54 = vld [vmem:[#allocation10 + $0xd4] sm:$0xf0] }
  0xd4   :  { %v241_v55 = vpop.f32.mrf.mxu2  ;;  %v270_v56 = vpop.f32.mrf.mxu3 }
  0xd5   :  { %v5039_v57 = vadd.f32 %v241_v55, %v4975_v10  ;;  %v5042_v58 = vadd.f32 %v270_v56, %v4977_v11  ;;  %v209_v59 = vpop.f32.mrf.mxu1  ;;  %v518_v62 = vpop.f32.mrf.mxu0  ;;  %v3377_v55 = vor.u32 %v4279_v47, %v3374_v51  ;;  %v3381_v56 = vor.u32 %v4282_v54, %v3380_v53  ;;  %v4276_v47 = vld [vmem:[#allocation10 + $0xac] sm:$0xf] }
  0xd6   :  { %v5045_v63 = vadd.f32 %v209_v59, %v4990_v21  ;;  %v4280_v59 = vld [vmem:[#allocation10 + $0xcc] sm:$0xf]  ;;  %v3382_v62 = vld [vmem:[#allocation10 + $0xd8] sm:$0xf0]  ;;  %v3369_v5 = vor.u32 %v4276_v47, %v3366_v50  ;;  %v4269_v47 = vld [vmem:[#allocation10 + $0x6c] sm:$0xf0] }
  0xd7   :  { %v3385_v19 = vor.u32 %v4280_v59, %v3382_v62  ;;  %855 = vmatpush.bf16.msrb.mxu1 %v3377_v55  ;;  %868 = vmatpush.bf16.msra.mxu2 %v3381_v56  ;;  %v4267_v50 = vld [vmem:[#allocation10 + $0x64] sm:$0xf] }
  0xd8   :  { %v4520_v0 = vpop.eup %4519 }
  0xd9   :  { %v5047_v1 = vadd.f32 1.0, %v4520_v0  ;;  %881 = vmatpush.bf16.msra.mxu3 %v3385_v19  ;;  %v3340_v19 = vld [vmem:[#allocation10 + $0x80] sm:$0xf] }
  0xdb   :  { %4521 = vrcp.f32 %v5047_v1  ;;  %v578_v3 = vand.u32 2147483648, %v5047_v1  ;;  %856 = vmatpush.bf16.msrb.mxu1 %v3361_v45  ;;  %869 = vmatpush.bf16.msra.mxu2 %v3365_v46  ;;  %vm572_vm6 = vweird.f32 %v5047_v1  ;;  %v3324_v46 = vld [vmem:[#allocation10 + $0x60] sm:$0xf] }
  0xdc   :  { %v243_v23 = vpop.f32.mrf.mxu2  ;;  %v272_v26 = vpop.f32.mrf.mxu3 }
  0xdd   :  { %v5051_v34 = vadd.f32 %v243_v23, %v4975_v10  ;;  %v5054_v37 = vadd.f32 %v272_v26, %v4977_v11  ;;  %v212_v38 = vpop.f32.mrf.mxu1  ;;  %v256_v23 = vadd.f32 %v4968_v6, %v4977_v11  ;;  %v3357_v26 = vor.u32 %v4277_v13, %v3356_v12  ;;  %882 = vmatpush.bf16.msra.mxu3 %v3369_v5  ;;  %v4271_v12 = vld [vmem:[#allocation10 + $0x84] sm:$0xf]  ;;  %v3332_v5 = vld [vmem:[#allocation10 + $0x68] sm:$0xf] }
  0xde   :  { %v5057_v42 = vadd.f32 %v212_v38, %v4990_v21  ;;  %v576_v11 = vand.u32 2147483647, %v5047_v1  ;;  %v579_v59 = vor.u32 1.1754944e-38, %v578_v3  ;;  %v198_v3 = vadd.f32 %v4985_v17, %v4990_v21 }
  0xdf   :  { %843 = vmatpush.bf16.msra.mxu0 %v3357_v26  ;;  %v3345_v26 = vor.u32 %v4271_v12, %v3342_v16  ;;  %v3308_v12 = vld [vmem:[#allocation10 + $0x40] sm:$0xf]  ;;  %v3310_v16 = vld [vmem:[#allocation10 + $0x50] sm:$0xf0] }
  0xe0   :  { %vm577_vm8 = vcmp.eq.f32.partialorder %v576_v11, 8.507059e+37 }
  0xe1   :  { %v4522_v0 = vpop.eup %4521  ;;  %857 = vmatpush.bf16.msrb.mxu1 %v3345_v26 }
  0xe2   :  { %v568_v7 = vmul.f32 %v4522_v0, %v5047_v1  ;;  %vm573_vm5 = vweird.f32 %v4522_v0 }
  0xe3   :  { %vm5071_vm7 = vmor %vm572_vm6, %vm573_vm5 }
  0xe4   :  { %v569_v33 = vsub.f32 1.0, %v568_v7  ;;  %v542_v38 = vpop.f32.mrf.mxu2  ;;  %v555_v41 = vpop.f32.mrf.mxu3  ;;  %v4273_v7 = vld [vmem:[#allocation10 + $0x8c] sm:$0xf0] }
  0xe5   :  { %v561_v51 = vadd.f32 %v542_v38, %v227_v22  ;;  %v562_v53 = vadd.f32 %v555_v41, %v256_v23  ;;  %v214_v54 = vpop.f32.mrf.mxu1  ;;  %v3341_v13 = vor.u32 %v4273_v7, %v3340_v19  ;;  %v3348_v22 = vld [vmem:[#allocation10 + $0x88] sm:$0xf]  ;;  %v4274_v23 = vld [vmem:[#allocation10 + $0x94] sm:$0xf0]  ;;  %v3353_v38 = vor.u32 %v4272_v18, %v3350_v30  ;;  %v4264_v18 = vld [vmem:[#allocation10 + $0x4c] sm:$0xf] }
  0xe6   :  { %v5066_v6 = vadd.f32 %v214_v54, %v4990_v21  ;;  %v570_v10 = vmul.f32 %v4522_v0, %v569_v33  ;;  %v3349_v27 = vor.u32 %v4274_v23, %v3348_v22  ;;  %v3326_v54 = vld [vmem:[#allocation10 + $0x70] sm:$0xf0]  ;;  %v4268_v21 = vld [vmem:[#allocation10 + $0x6c] sm:$0xf]  ;;  %v3316_v22 = vld [vmem:[#allocation10 + $0x48] sm:$0xf] }
  0xe7   :  { %4523 = vtanh.f32 %v561_v51  ;;  %v3273_v55 = vmul.f32 -1.442695, %v562_v53  ;;  %844 = vmatpush.bf16.msra.mxu0 %v3341_v13  ;;  %883 = vmatpush.bf16.msra.mxu3 %v3353_v38  ;;  %v3325_v53 = vor.u32 %v4269_v47, %v3324_v46  ;;  %v4263_v13 = vld [vmem:[#allocation10 + $0x44] sm:$0xf]  ;;  %v3292_v38 = vld [vmem:[#allocation10 + $0x20] sm:$0xf] }
  0xe8   :  { %v571_v62 = vadd.f32 %v4522_v0, %v570_v10  ;;  %870 = vmatpush.bf16.msra.mxu2 %v3349_v27  ;;  %v4270_v10 = vld [vmem:[#allocation10 + $0x74] sm:$0xf0]  ;;  %v3313_v26 = vor.u32 %v4263_v13, %v3310_v16  ;;  %v4259_v46 = vld [vmem:[#allocation10 + $0x24] sm:$0xf]  ;;  %v3294_v47 = vld [vmem:[#allocation10 + $0x30] sm:$0xf0] }
  0xe9   :  { %4525 = vpow2.f32 %v3273_v55  ;;  %v3333_v17 = vor.u32 %v4270_v10, %v3332_v5  ;;  %v4265_v55 = vld [vmem:[#allocation10 + $0x4c] sm:$0xf0]  ;;  %v4266_v27 = vld [vmem:[#allocation10 + $0x54] sm:$0xf0] }
  0xea   :  { %v575_v1 = vsel %vm5071_vm7, %v4522_v0, %v571_v62  ;;  %v3334_v62 = vld [vmem:[#allocation10 + $0x78] sm:$0xf0]  ;;  %v3317_v30 = vor.u32 %v4266_v27, %v3316_v22  ;;  %v4258_v13 = vld [vmem:[#allocation10 + $0x14] sm:$0xf0] }
  0xeb   :  { %v580_v33 = vsel %vm577_vm8, %v579_v59, %v575_v1  ;;  %v3329_v59 = vor.u32 %v4267_v50, %v3326_v54  ;;  %845 = vmatpush.bf16.msra.mxu0 %v3325_v53  ;;  %v3337_v19 = vor.u32 %v4268_v21, %v3334_v62  ;;  %v3309_v1 = vor.u32 %v4265_v55, %v3308_v12  ;;  %v4262_v53 = vld [vmem:[#allocation10 + $0x34] sm:$0xf0]  ;;  %v4260_v54 = vld [vmem:[#allocation10 + $0x2c] sm:$0xf]  ;;  %v4257_v21 = vld [vmem:[#allocation10 + $0xc] sm:$0xf0] }
  0xec   :  { %v557_v41 = vpop.f32.mrf.mxu3  ;;  %v544_v45 = vpop.f32.mrf.mxu2  ;;  %871 = vmatpush.bf16.msra.mxu2 %v3333_v17  ;;  %v3276_v17 = vld [vmem:[#allocation10] sm:$0xf]  ;;  %v4255_v62 = vld [vmem:[#allocation10 + $0x4] sm:$0xf]  ;;  %v3278_v12 = vld [vmem:[#allocation10 + $0x10] sm:$0xf0] }
  0xed   :  { %v4524_v51 = vpop.eup %4523  ;;  %v529_v0 = vpop.f32.mrf.mxu1  ;;  %858 = vmatpush.bf16.msrb.mxu1 %v3329_v59  ;;  %884 = vmatpush.bf16.msra.mxu3 %v3337_v19  ;;  %v4261_v45 = vld [vmem:[#allocation10 + $0x2c] sm:$0xf0]  ;;  %v3284_v55 = vld [vmem:[#allocation10 + $0x8] sm:$0xf]  ;;  %v3281_v22 = vor.u32 %v4255_v62, %v3278_v12 }
  0xee   :  { %v560_v11 = vadd.f32 %v529_v0, %v198_v3  ;;  %v5079_v56 = vmul.f32 %v4524_v51, %v580_v33  ;;  %v3318_v33 = vld [vmem:[#allocation10 + $0x58] sm:$0xf0]  ;;  %v3293_v50 = vor.u32 %v4261_v45, %v3292_v38  ;;  %v3297_v51 = vor.u32 %v4259_v46, %v3294_v47  ;;  %v3300_v0 = vld [vmem:[#allocation10 + $0x28] sm:$0xf] }
  0xef   :  { %v4526_v23 = vpop.eup %4525  ;;  %846 = vmatpush.bf16.msra.mxu0 %v3309_v1  ;;  %v3321_v41 = vor.u32 %v4264_v18, %v3318_v33  ;;  %v3301_v10 = vor.u32 %v4262_v53, %v3300_v0  ;;  %v3285_v1 = vor.u32 %v4258_v13, %v3284_v55 }
  0xf0   :  { %v3272_v7 = vmul.f32 -1.442695, %v560_v11  ;;  %872 = vmatpush.bf16.msra.mxu2 %v3317_v30  ;;  %v605_v5 = vadd.f32 1.0, %v4526_v23  ;;  %v3302_v11 = vld [vmem:[#allocation10 + $0x38] sm:$0xf0] }
  0xf1   :  { %859 = vmatpush.bf16.msrb.mxu1 %v3313_v26  ;;  %885 = vmatpush.bf16.msra.mxu3 %v3321_v41  ;;  %v3305_v59 = vor.u32 %v4260_v54, %v3302_v11  ;;  %v4256_v26 = vld [vmem:[#allocation10 + $0xc] sm:$0xf]  ;;  %v3286_v23 = vld [vmem:[#allocation10 + $0x18] sm:$0xf0] }
  0xf2   :  { %4527 = vpow2.f32 %v3272_v7  ;;  %v3277_v7 = vor.u32 %v4257_v21, %v3276_v17  ;;  %v3289_v27 = vor.u32 %v4256_v26, %v3286_v23  ;;  %v617_v21 = vand.u32 2147483648, %v605_v5  ;;  %v4315_v26 = vld [vmem:[#allocation10 + $0xe4] sm:$0xf] }
  0xf3   :  { %847 = vmatpush.bf16.msra.mxu0 %v3293_v50  ;;  %4529 = vrcp.f32 %v605_v5  ;;  %vm611_vm15 = vweird.f32 %v605_v5 }
  0xf4   :  { %873 = vmatpush.bf16.msra.mxu2 %v3301_v10  ;;  %v632_v10 = vpop.permute.xlu0 %631  ;;  %v618_v12 = vor.u32 1.1754944e-38, %v617_v21 }
  0xf5   :  { %v531_v3 = vpop.f32.mrf.mxu1  ;;  %860 = vmatpush.bf16.msrb.mxu1 %v3297_v51  ;;  %886 = vmatpush.bf16.msra.mxu3 %v3305_v59  ;;  %vm633_vm13 = vcmp.eq.s32.totalorder %v632_v10, 1 }
  0xf6   :  { %vm4487_vm2 = vmpackc.low %vm633_vm13, %vm633_vm13 }
  0xf7   :  { %848 = vmatpush.bf16.msra.mxu0 %v3277_v7 }
  0xf8   :  { %v4528_v19 = vpop.eup %4527  ;;  %874 = vmatpush.bf16.msra.mxu2 %v3285_v1  ;;  %v4317_v1 = vld [vmem:[#allocation10 + $0xec] sm:$0xf0] }
  0xf9   :  { %v585_v16 = vadd.f32 1.0, %v4528_v19  ;;  %861 = vmatpush.bf16.msrb.mxu1 %v3281_v22  ;;  %887 = vmatpush.bf16.msra.mxu3 %v3289_v27  ;;  %v4530_v18 = vpop.eup %4529  ;;  %v615_v19 = vand.u32 2147483647, %v605_v5  ;;  %v3521_v27 = vld [vmem:[#allocation10 + $0xf0] sm:$0xf0] }
  0xfa   :  { %v607_v38 = vmul.f32 %v4530_v18, %v605_v5  ;;  %vm612_vm14 = vweird.f32 %v4530_v18  ;;  %v3519_v5 = vld [vmem:[#allocation10 + $0xe0] sm:$0xf] }
  0xfb   :  { %4531 = vrcp.f32 %v585_v16  ;;  %v597_v41 = vand.u32 2147483648, %v585_v16  ;;  %v595_v46 = vand.u32 2147483647, %v585_v16  ;;  %vm591_vm10 = vweird.f32 %v585_v16  ;;  %vm613_vm0 = vmor %vm611_vm15, %vm612_vm14 }
  0xfc   :  { %v608_v47 = vsub.f32 1.0, %v607_v38  ;;  %vm616_vm1 = vcmp.eq.f32.partialorder %v615_v19, 8.507059e+37  ;;  %v3520_v23 = vor.u32 %v4317_v1, %v3519_v5  ;;  %v3487_v19 = vld [vmem:[#allocation10 + $0xa0] sm:$0xf] }
  0xfd   :  { %v598_v51 = vor.u32 1.1754944e-38, %v597_v41  ;;  %vm596_vm12 = vcmp.eq.f32.partialorder %v595_v46, 8.507059e+37  ;;  %v3529_v41 = vld [vmem:[#allocation10 + $0xf8] sm:$0xf0]  ;;  %v3503_v46 = vld [vmem:[#allocation10 + $0xc0] sm:$0xf] }
  0xfe   :  { %v609_v54 = vmul.f32 %v4530_v18, %v608_v47  ;;  %1176 = vmatpush.bf16.msrb.mxu0 %v3520_v23  ;;  %v4313_v47 = vld [vmem:[#allocation10 + $0xcc] sm:$0xf0]  ;;  %v3497_v23 = vld [vmem:[#allocation10 + $0xb8] sm:$0xf0] }
 0x100   :  { %v610_v17 = vadd.f32 %v4530_v18, %v609_v54  ;;  %v4314_v54 = vld [vmem:[#allocation10 + $0xd4] sm:$0xf0] }
 0x101   :  { %v4532_v30 = vpop.eup %4531 }
 0x102   :  { %v587_v33 = vmul.f32 %v4532_v30, %v585_v16  ;;  %vm592_vm9 = vweird.f32 %v4532_v30  ;;  %v614_v7 = vsel %vm613_vm0, %v4530_v18, %v610_v17  ;;  %v3527_v18 = vld [vmem:[#allocation10 + $0xe8] sm:$0xf]  ;;  %v3513_v17 = vld [vmem:[#allocation10 + $0xd8] sm:$0xf0] }
 0x103   :  { %vm593_vm11 = vmor %vm591_vm10, %vm592_vm9  ;;  %v619_v13 = vsel %vm616_vm1, %v618_v12, %v614_v7  ;;  %v4309_v7 = vld [vmem:[#allocation10 + $0xac] sm:$0xf0]  ;;  %v4307_v12 = vld [vmem:[#allocation10 + $0xa4] sm:$0xf] }
 0x104   :  { %v588_v3 = vsub.f32 1.0, %v587_v33  ;;  %v3524_v33 = vor.u32 %v4315_v26, %v3521_v27  ;;  %v4308_v26 = vld [vmem:[#allocation10 + $0xac] sm:$0xf] }
 0x105   :  { %v3500_v27 = vor.u32 %v4308_v26, %v3497_v23 }
 0x106   :  { %v589_v45 = vmul.f32 %v4532_v30, %v588_v3  ;;  %v4316_v3 = vld [vmem:[#allocation10 + $0xec] sm:$0xf]  ;;  %1189 = vmatpush.bf16.msra.mxu1 %v3524_v33  ;;  %v4303_v33 = vld [vmem:[#allocation10 + $0x84] sm:$0xf] }
 0x108   :  { %v590_v50 = vadd.f32 %v4532_v30, %v589_v45  ;;  %v3532_v45 = vor.u32 %v4316_v3, %v3529_v41  ;;  %v3473_v3 = vld [vmem:[#allocation10 + $0x90] sm:$0xf0]  ;;  %v3479_v41 = vld [vmem:[#allocation10 + $0x88] sm:$0xf] }
 0x10a   :  { %v594_v0 = vsel %vm593_vm11, %v4532_v30, %v590_v50  ;;  %v4318_v30 = vld [vmem:[#allocation10 + $0xf4] sm:$0xf0]  ;;  %v4311_v50 = vld [vmem:[#allocation10 + $0xc4] sm:$0xf]  ;;  %1215 = vmatpush.bf16.msrb.mxu3 %v3532_v45 }
 0x10b   :  { %v599_v53 = vsel %vm596_vm12, %v598_v51, %v594_v0  ;;  %v3528_v38 = vor.u32 %v4318_v30, %v3527_v18  ;;  %v3504_v51 = vor.u32 %v4313_v47, %v3503_v46  ;;  %v3505_v0 = vld [vmem:[#allocation10 + $0xd0] sm:$0xf0]  ;;  %v3471_v18 = vld [vmem:[#allocation10 + $0x80] sm:$0xf]  ;;  %v4305_v30 = vld [vmem:[#allocation10 + $0x8c] sm:$0xf0]  ;;  %v3476_v46 = vor.u32 %v4303_v33, %v3473_v3 }
 0x10c   :  { %v622_v11 = vmul.f32 0.0, %v599_v53  ;;  %v3511_v53 = vld [vmem:[#allocation10 + $0xc8] sm:$0xf]  ;;  %v3508_v10 = vor.u32 %v4311_v50, %v3505_v0  ;;  %v4306_v45 = vld [vmem:[#allocation10 + $0x94] sm:$0xf0]  ;;  %vm2972_vm12 = vcmp.gt.s32.totalorder %v4941_v60, 7 }
 0x10d   :  { %1202 = vmatpush.bf16.msrb.mxu2 %v3528_v38  ;;  %1177 = vmatpush.bf16.msrb.mxu0 %v3504_v51  ;;  %v3472_v38 = vor.u32 %v4305_v30, %v3471_v18  ;;  %v3480_v47 = vor.u32 %v4306_v45, %v3479_v41  ;;  %v4304_v50 = vld [vmem:[#allocation10 + $0x8c] sm:$0xf]  ;;  %v3481_v51 = vld [vmem:[#allocation10 + $0x98] sm:$0xf0]  ;;  %v4297_v18 = vld [vmem:[#allocation10 + $0x4c] sm:$0xf0] }
 0x10e   :  { %v624_v59 = vadd.f32 %v5079_v56, %v622_v11  ;;  %v3512_v11 = vor.u32 %v4314_v54, %v3511_v53  ;;  %1190 = vmatpush.bf16.msra.mxu1 %v3508_v10  ;;  %v3484_v0 = vor.u32 %v4304_v50, %v3481_v51  ;;  %v3455_v53 = vld [vmem:[#allocation10 + $0x60] sm:$0xf]  ;;  %v4301_v54 = vld [vmem:[#allocation10 + $0x6c] sm:$0xf0]  ;;  %v4299_v10 = vld [vmem:[#allocation10 + $0x64] sm:$0xf] }
 0x10f   :  { %v4295_v30 = vld [vmem:[#allocation10 + $0x44] sm:$0xf]  ;;  %v3441_v33 = vld [vmem:[#allocation10 + $0x50] sm:$0xf0]  ;;  %v3447_v3 = vld [vmem:[#allocation10 + $0x48] sm:$0xf] }
 0x110   :  { %4533 = vtanh.f32 %v624_v59  ;;  %v5083_v62 = vsel %vm633_vm13, %v624_v59, 0.0  ;;  %v4312_v59 = vld [vmem:[#allocation10 + $0xcc] sm:$0xf]  ;;  %v4293_v50 = vld [vmem:[#allocation10 + $0x2c] sm:$0xf0] }
 0x111   :  { %v3516_v21 = vor.u32 %v4312_v59, %v3513_v17  ;;  %1203 = vmatpush.bf16.msrb.mxu2 %v3512_v11  ;;  %v3456_v17 = vor.u32 %v4301_v54, %v3455_v53  ;;  %v4296_v41 = vld [vmem:[#allocation10 + $0x4c] sm:$0xf] }
 0x113   :  { %1216 = vmatpush.bf16.msrb.mxu3 %v3516_v21  ;;  %v3457_v21 = vld [vmem:[#allocation10 + $0x70] sm:$0xf0] }
 0x116   :  { %v4534_v55 = vpop.eup %4533 }
 0x117   :  { %v626_v16 = vmul.f32 %v4534_v55, %v619_v13  ;;  %v3488_v55 = vor.u32 %v4309_v7, %v3487_v19  ;;  %v3489_v13 = vld [vmem:[#allocation10 + $0xb0] sm:$0xf0]  ;;  %1217 = vmatpush.bf16.msrb.mxu3 %v3500_v27  ;;  %v3463_v19 = vld [vmem:[#allocation10 + $0x68] sm:$0xf]  ;;  %v4302_v7 = vld [vmem:[#allocation10 + $0x74] sm:$0xf0] }
 0x118   :  { %v3492_v5 = vor.u32 %v4307_v12, %v3489_v13  ;;  %v3460_v13 = vor.u32 %v4299_v10, %v3457_v21  ;;  %v3439_v27 = vld [vmem:[#allocation10 + $0x40] sm:$0xf]  ;;  %v4291_v10 = vld [vmem:[#allocation10 + $0x24] sm:$0xf] }
 0x119   :  { %v5088_v56 = vsel %vm633_vm13, %v626_v16, 0.0  ;;  %v4488_v22 = vpack.c.bf16 %v626_v16, %v626_v16  ;;  %v3495_v16 = vld [vmem:[#allocation10 + $0xa8] sm:$0xf]  ;;  %1178 = vmatpush.bf16.msrb.mxu0 %v3488_v55 }
 0x11a   :  { %640 = vst [vmem:[#allocation13] sm:$0xff] %v5088_v56  ;;  %1191 = vmatpush.bf16.msra.mxu1 %v3492_v5  ;;  %v3465_v5 = vld [vmem:[#allocation10 + $0x78] sm:$0xf0] }
 0x11b   :  { %4489 = vmatmul.msk.bf16.vlgmr.msra.gmra.mxu0 %vm4487_vm2, %v4488_v22  ;;  %4492 = vmatmul.msk.bf16.vlgmr.msrb.gmra.mxu1 %vm4487_vm2, %v4488_v22 }
 0x11c   :  { %4495 = vmatmul.msk.bf16.vlgmr.msra.gmra.mxu2 %vm4487_vm2, %v4488_v22  ;;  %4498 = vmatmul.msk.bf16.vlgmr.msra.gmra.mxu3 %vm4487_vm2, %v4488_v22  ;;  %v4310_v22 = vld [vmem:[#allocation10 + $0xb4] sm:$0xf0] }
 0x11d   :  { %v3496_v1 = vor.u32 %v4310_v22, %v3495_v16  ;;  %1179 = vmatpush.bf16.msrb.mxu0 %v3472_v38  ;;  %1218 = vmatpush.bf16.msrb.mxu3 %v3484_v0  ;;  %v3464_v16 = vor.u32 %v4302_v7, %v3463_v19  ;;  %v4300_v22 = vld [vmem:[#allocation10 + $0x6c] sm:$0xf]  ;;  %v3440_v38 = vor.u32 %v4297_v18, %v3439_v27  ;;  %v3409_v27 = vld [vmem:[#allocation10 + $0x10] sm:$0xf0]  ;;  %v3415_v18 = vld [vmem:[#allocation10 + $0x8] sm:$0xf] }
 0x11e   :  { %1192 = vmatpush.bf16.msra.mxu1 %v3476_v46  ;;  %v3449_v46 = vld [vmem:[#allocation10 + $0x58] sm:$0xf0] }
 0x11f   :  { %1204 = vmatpush.bf16.msrb.mxu2 %v3496_v1  ;;  %v3468_v1 = vor.u32 %v4300_v22, %v3465_v5  ;;  %v3452_v53 = vor.u32 %v4296_v41, %v3449_v46  ;;  %v3407_v5 = vld [vmem:[#allocation10] sm:$0xf] }
 0x121   :  { %1180 = vmatpush.bf16.msrb.mxu0 %v3456_v17  ;;  %1219 = vmatpush.bf16.msrb.mxu3 %v3468_v1  ;;  %v4289_v1 = vld [vmem:[#allocation10 + $0xc] sm:$0xf0] }
 0x122   :  { %1193 = vmatpush.bf16.msra.mxu1 %v3460_v13  ;;  %v3433_v13 = vld [vmem:[#allocation10 + $0x38] sm:$0xf0] }
 0x123   :  { %1205 = vmatpush.bf16.msrb.mxu2 %v3480_v47  ;;  %v3423_v47 = vld [vmem:[#allocation10 + $0x20] sm:$0xf] }
 0x124   :  { %v3424_v54 = vor.u32 %v4293_v50, %v3423_v47 }
 0x125   :  { %1181 = vmatpush.bf16.msrb.mxu0 %v3440_v38  ;;  %1220 = vmatpush.bf16.msrb.mxu3 %v3452_v53  ;;  %v4290_v38 = vld [vmem:[#allocation10 + $0x14] sm:$0xf0] }
 0x127   :  { %1206 = vmatpush.bf16.msrb.mxu2 %v3464_v16 }
 0x129   :  { %1182 = vmatpush.bf16.msrb.mxu0 %v3424_v54  ;;  %v1298_v54 = vsel %vm1297_vm3, 1, %v4837_v61 }
 0x12a   :  { %1300 = vperm.xlu1 %4516, %v1298_v54  }
 0x198   :  { %v850_v11 = vpop.f32.mrf.mxu0  ;;  %v863_v59 = vpop.f32.mrf.mxu1 }
 0x199   :  { %v893_v12 = vadd.f32 %v850_v11, %v4973_v9  ;;  %v894_v55 = vadd.f32 %v863_v59, %v5002_v29  ;;  %v3444_v9 = vor.u32 %v4295_v30, %v3441_v33  ;;  %v4298_v29 = vld [vmem:[#allocation10 + $0x54] sm:$0xf0]  ;;  %v3425_v11 = vld [vmem:[#allocation10 + $0x30] sm:$0xf0]  ;;  %v3431_v59 = vld [vmem:[#allocation10 + $0x28] sm:$0xf] }
 0x19a   :  { %v3448_v45 = vor.u32 %v4298_v29, %v3447_v3  ;;  %v3428_v7 = vor.u32 %v4291_v10, %v3425_v11  ;;  %v3417_v3 = vld [vmem:[#allocation10 + $0x18] sm:$0xf0] }
 0x19b   :  { %v3402_v26 = vmul.f32 -1.442695, %v893_v12  ;;  %v3403_v23 = vmul.f32 -1.442695, %v894_v55  ;;  %1194 = vmatpush.bf16.msra.mxu1 %v3444_v9  ;;  %v4294_v12 = vld [vmem:[#allocation10 + $0x34] sm:$0xf0] }
 0x19c   :  { %1207 = vmatpush.bf16.msrb.mxu2 %v3448_v45  ;;  %v4292_v55 = vld [vmem:[#allocation10 + $0x2c] sm:$0xf]  ;;  %v3432_v16 = vor.u32 %v4294_v12, %v3431_v59  ;;  %v3416_v45 = vor.u32 %v4290_v38, %v3415_v18 }
 0x19d   :  { %4535 = vpow2.f32 %v3402_v26  ;;  %v3436_v22 = vor.u32 %v4292_v55, %v3433_v13  ;;  %v4287_v26 = vld [vmem:[#allocation10 + $0x4] sm:$0xf]  ;;  %v4288_v9 = vld [vmem:[#allocation10 + $0xc] sm:$0xf]  ;;  %v1633_v13 = vsel %vm1632_vm4, 1, %v4837_v61 }
 0x19e   :  { %4537 = vpow2.f32 %v3403_v23  ;;  %v3412_v33 = vor.u32 %v4287_v26, %v3409_v27  ;;  %v3420_v47 = vor.u32 %v4288_v9, %v3417_v3  ;;  %1635 = vperm.xlu1 %4516, %v1633_v13   ;;  %v4349_v13 = vld [vmem:[#allocation10 + $0xec] sm:$0xf0] }
 0x19f   :  { %v876_v51 = vpop.f32.mrf.mxu2  ;;  %v889_v0 = vpop.f32.mrf.mxu3  ;;  %1195 = vmatpush.bf16.msra.mxu1 %v3428_v7  ;;  %1221 = vmatpush.bf16.msrb.mxu3 %v3436_v22 }
 0x1a0   :  { %v896_v17 = vadd.f32 %v889_v0, %v4983_v15  ;;  %v852_v21 = vpop.f32.mrf.mxu0  ;;  %v865_v19 = vpop.f32.mrf.mxu1  ;;  %v3408_v15 = vor.u32 %v4289_v1, %v3407_v5  ;;  %1208 = vmatpush.bf16.msrb.mxu2 %v3432_v16  ;;  %v895_v59 = vadd.f32 %v876_v51, %v4980_v14 }
 0x1a2   :  { %v3404_v23 = vmul.f32 -1.442695, %v896_v17  ;;  %1183 = vmatpush.bf16.msrb.mxu0 %v3408_v15 }
 0x1a3   :  { %v4536_v30 = vpop.eup %4535  ;;  %1196 = vmatpush.bf16.msra.mxu1 %v3412_v33  ;;  %1222 = vmatpush.bf16.msrb.mxu3 %v3420_v47  ;;  %v2973_v47 = vsel %vm2972_vm12, 1, %v4837_v61 }
 0x1a4   :  { %v4538_v29 = vpop.eup %4537  ;;  %v900_v41 = vadd.f32 1.0, %v4536_v30  ;;  %4539 = vpow2.f32 %v3404_v23  ;;  %1209 = vmatpush.bf16.msrb.mxu2 %v3416_v45 }
 0x1a5   :  { %v919_v46 = vadd.f32 1.0, %v4538_v29 }
 0x1a6   :  { %4541 = vrcp.f32 %v900_v41  ;;  %v912_v55 = vand.u32 2147483648, %v900_v41  ;;  %v910_v5 = vand.u32 2147483647, %v900_v41  ;;  %vm906_vm7 = vweird.f32 %v900_v41  ;;  %2975 = vperm.xlu1 %4516, %v2973_v47  }
 0x1a7   :  { %4543 = vrcp.f32 %v919_v46  ;;  %v878_v50 = vpop.f32.mrf.mxu2  ;;  %v891_v0 = vpop.f32.mrf.mxu3  ;;  %v931_v16 = vand.u32 2147483648, %v919_v46  ;;  %v929_v26 = vand.u32 2147483647, %v919_v46  ;;  %vm925_vm8 = vweird.f32 %v919_v46 }
 0x1a8   :  { %v913_v23 = vor.u32 1.1754944e-38, %v912_v55  ;;  %vm911_vm11 = vcmp.eq.f32.partialorder %v910_v5, 8.507059e+37  ;;  %v966_v50 = vpop.permute.xlu0 %965  ;;  %v3652_v5 = vld [vmem:[#allocation10 + $0xf0] sm:$0xf0] }
 0x1a9   :  { %v932_v30 = vor.u32 1.1754944e-38, %v931_v16  ;;  %vm930_vm13 = vcmp.eq.f32.partialorder %v929_v26, 8.507059e+37  ;;  %vm967_vm14 = vcmp.eq.s32.totalorder %v966_v50, 1  ;;  %v4347_v16 = vld [vmem:[#allocation10 + $0xe4] sm:$0xf] }
 0x1aa   :  { %v4540_v53 = vpop.eup %4539  ;;  %v4350_v26 = vld [vmem:[#allocation10 + $0xf4] sm:$0xf0]  ;;  %v3618_v50 = vld [vmem:[#allocation10 + $0xa0] sm:$0xf] }
 0x1ab   :  { %v939_v10 = vadd.f32 1.0, %v4540_v53 }
 0x1ac   :  { %v4542_v11 = vpop.eup %4541 }
 0x1ad   :  { %v4544_v17 = vpop.eup %4543  ;;  %v902_v21 = vmul.f32 %v4542_v11, %v900_v41  ;;  %4545 = vrcp.f32 %v939_v10  ;;  %vm907_vm5 = vweird.f32 %v4542_v11  ;;  %v951_v60 = vand.u32 2147483648, %v939_v10 }
 0x1ae   :  { %v921_v19 = vmul.f32 %v4544_v17, %v919_v46  ;;  %4547 = vtanh.f32 %v895_v59  ;;  %vm926_vm6 = vweird.f32 %v4544_v17  ;;  %vm908_vm9 = vmor %vm906_vm7, %vm907_vm5  ;;  %vm945_vm0 = vweird.f32 %v939_v10 }
 0x1af   :  { %v903_v7 = vsub.f32 1.0, %v902_v21  ;;  %vm927_vm10 = vmor %vm925_vm8, %vm926_vm6 }
 0x1b0   :  { %v922_v12 = vsub.f32 1.0, %v921_v19 }
 0x1b1   :  { %v904_v22 = vmul.f32 %v4542_v11, %v903_v7 }
 0x1b2   :  { %v923_v1 = vmul.f32 %v4544_v17, %v922_v12 }
 0x1b3   :  { %v4546_v14 = vpop.eup %4545  ;;  %v905_v51 = vadd.f32 %v4542_v11, %v904_v22 }
 0x1b4   :  { %v924_v27 = vadd.f32 %v4544_v17, %v923_v1  ;;  %v941_v18 = vmul.f32 %v4546_v14, %v939_v10  ;;  %v4548_v33 = vpop.eup %4547  ;;  %vm946_vm15 = vweird.f32 %v4546_v14  ;;  %v3658_v1 = vld [vmem:[#allocation10 + $0xe8] sm:$0xf] }
 0x1b5   :  { %v909_v15 = vsel %vm908_vm9, %v4542_v11, %v905_v51  ;;  %v949_v11 = vand.u32 2147483647, %v939_v10  ;;  %vm947_vm1 = vmor %vm945_vm0, %vm946_vm15  ;;  %v3650_v10 = vld [vmem:[#allocation10 + $0xe0] sm:$0xf]  ;;  %v4348_v51 = vld [vmem:[#allocation10 + $0xec] sm:$0xf] }
 0x1b6   :  { %v914_v38 = vsel %vm911_vm11, %v913_v23, %v909_v15  ;;  %v928_v9 = vsel %vm927_vm10, %v4544_v17, %v924_v27  ;;  %v942_v3 = vsub.f32 1.0, %v941_v18  ;;  %v952_v17 = vor.u32 1.1754944e-38, %v951_v60  ;;  %v3660_v23 = vld [vmem:[#allocation10 + $0xf8] sm:$0xf0]  ;;  %v3634_v18 = vld [vmem:[#allocation10 + $0xc0] sm:$0xf] }
 0x1b7   :  { %v933_v29 = vsel %vm930_vm13, %v932_v30, %v928_v9  ;;  %v957_v45 = vmul.f32 %v4548_v33, %v914_v38  ;;  %vm950_vm2 = vcmp.eq.f32.partialorder %v949_v11, 8.507059e+37  ;;  %v3651_v22 = vor.u32 %v4349_v13, %v3650_v10  ;;  %v4345_v30 = vld [vmem:[#allocation10 + $0xcc] sm:$0xf0]  ;;  %v4343_v15 = vld [vmem:[#allocation10 + $0xc4] sm:$0xf] }
 0x1b8   :  { %v956_v41 = vmul.f32 %v933_v29, %v5083_v62  ;;  %v943_v46 = vmul.f32 %v4546_v14, %v942_v3  ;;  %v3663_v27 = vor.u32 %v4348_v51, %v3660_v23  ;;  %v3635_v33 = vor.u32 %v4345_v30, %v3634_v18  ;;  %v3636_v38 = vld [vmem:[#allocation10 + $0xd0] sm:$0xf0]  ;;  %v3642_v9 = vld [vmem:[#allocation10 + $0xc8] sm:$0xf]  ;;  %v4346_v3 = vld [vmem:[#allocation10 + $0xd4] sm:$0xf0] }
 0x1b9   :  { %1511 = vmatpush.bf16.msra.mxu0 %v3651_v22  ;;  %v3639_v29 = vor.u32 %v4343_v15, %v3636_v38  ;;  %v3620_v11 = vld [vmem:[#allocation10 + $0xb0] sm:$0xf0]  ;;  %v3602_v10 = vld [vmem:[#allocation10 + $0x80] sm:$0xf]  ;;  %v4337_v13 = vld [vmem:[#allocation10 + $0x8c] sm:$0xf0] }
 0x1ba   :  { %v958_v0 = vadd.f32 %v957_v45, %v956_v41  ;;  %v944_v53 = vadd.f32 %v4546_v14, %v943_v46  ;;  %1550 = vmatpush.bf16.msra.mxu3 %v3663_v27  ;;  %v3643_v45 = vor.u32 %v4346_v3, %v3642_v9  ;;  %v4344_v41 = vld [vmem:[#allocation10 + $0xcc] sm:$0xf]  ;;  %v3644_v46 = vld [vmem:[#allocation10 + $0xd8] sm:$0xf0]  ;;  %v3603_v22 = vor.u32 %v4337_v13, %v3602_v10  ;;  %v3586_v18 = vld [vmem:[#allocation10 + $0x60] sm:$0xf] }
 0x1bb   :  { %v3647_v47 = vor.u32 %v4344_v41, %v3644_v46  ;;  %v4336_v51 = vld [vmem:[#allocation10 + $0x8c] sm:$0xf]  ;;  %v3612_v23 = vld [vmem:[#allocation10 + $0x98] sm:$0xf0]  ;;  %v4333_v30 = vld [vmem:[#allocation10 + $0x6c] sm:$0xf0] }
 0x1bc   :  { %4549 = vtanh.f32 %v958_v0  ;;  %v5104_v54 = vsel %vm967_vm14, %v958_v0, %v5083_v62  ;;  %v948_v59 = vsel %vm947_vm1, %v4546_v14, %v944_v53  ;;  %v3655_v14 = vor.u32 %v4347_v16, %v3652_v5  ;;  %v4341_v0 = vld [vmem:[#allocation10 + $0xac] sm:$0xf0]  ;;  %v4339_v53 = vld [vmem:[#allocation10 + $0xa4] sm:$0xf]  ;;  %v3604_v5 = vld [vmem:[#allocation10 + $0x90] sm:$0xf0] }
 0x1bd   :  { %v953_v19 = vsel %vm950_vm2, %v952_v17, %v948_v59  ;;  %1512 = vmatpush.bf16.msra.mxu0 %v3635_v33  ;;  %v3619_v60 = vor.u32 %v4341_v0, %v3618_v50  ;;  %v3626_v59 = vld [vmem:[#allocation10 + $0xa8] sm:$0xf]  ;;  %v4342_v17 = vld [vmem:[#allocation10 + $0xb4] sm:$0xf0]  ;;  %v4335_v16 = vld [vmem:[#allocation10 + $0x84] sm:$0xf]  ;;  %v3615_v27 = vor.u32 %v4336_v51, %v3612_v23  ;;  %v3587_v9 = vor.u32 %v4333_v30, %v3586_v18 }
 0x1be   :  { %1524 = vmatpush.bf16.msrb.mxu1 %v3655_v14  ;;  %1551 = vmatpush.bf16.msra.mxu3 %v3647_v47  ;;  %v3607_v14 = vor.u32 %v4335_v16, %v3604_v5  ;;  %v4331_v15 = vld [vmem:[#allocation10 + $0x64] sm:$0xf]  ;;  %v3588_v3 = vld [vmem:[#allocation10 + $0x70] sm:$0xf0]  ;;  %v4332_v0 = vld [vmem:[#allocation10 + $0x6c] sm:$0xf] }
 0x1bf   :  { %v3591_v47 = vor.u32 %v4331_v15, %v3588_v3  ;;  %v4328_v13 = vld [vmem:[#allocation10 + $0x4c] sm:$0xf]  ;;  %v3580_v16 = vld [vmem:[#allocation10 + $0x58] sm:$0xf0]  ;;  %v3556_v30 = vld [vmem:[#allocation10 + $0x30] sm:$0xf0] }
 0x1c0   :  { %v3562_v15 = vld [vmem:[#allocation10 + $0x28] sm:$0xf]  ;;  %v4324_v3 = vld [vmem:[#allocation10 + $0x2c] sm:$0xf] }
 0x1c1   :  { %1513 = vmatpush.bf16.msra.mxu0 %v3619_v60 }
 0x1c2   :  { %v4550_v21 = vpop.eup %4549  ;;  %1525 = vmatpush.bf16.msrb.mxu1 %v3639_v29  ;;  %v3594_v29 = vld [vmem:[#allocation10 + $0x68] sm:$0xf] }
 0x1c3   :  { %v960_v7 = vmul.f32 %v4550_v21, %v953_v19  ;;  %v3623_v21 = vor.u32 %v4339_v53, %v3620_v11  ;;  %v3627_v19 = vor.u32 %v4342_v17, %v3626_v59  ;;  %v3596_v53 = vld [vmem:[#allocation10 + $0x78] sm:$0xf0]  ;;  %v3570_v17 = vld [vmem:[#allocation10 + $0x40] sm:$0xf] }
 0x1c4   :  { %v3599_v60 = vor.u32 %v4332_v0, %v3596_v53 }
 0x1c5   :  { %v5108_v12 = vsel %vm967_vm14, %v960_v7, %v5088_v56  ;;  %v973_v55 = vsel %vm967_vm14, %v960_v7, 0.0  ;;  %v3659_v56 = vor.u32 %v4350_v26, %v3658_v1  ;;  %v4340_v7 = vld [vmem:[#allocation10 + $0xac] sm:$0xf]  ;;  %v3610_v1 = vld [vmem:[#allocation10 + $0x88] sm:$0xf]  ;;  %1514 = vmatpush.bf16.msra.mxu0 %v3603_v22 }
 0x1c6   :  { %975 = vst [vmem:[#allocation13 + $0x8] sm:$0xff] %v973_v55  ;;  %v983_v62 = vpack.c.bf16 %v5108_v12, %v5108_v12  ;;  %v3628_v55 = vld [vmem:[#allocation10 + $0xb8] sm:$0xf0]  ;;  %1526 = vmatpush.bf16.msrb.mxu1 %v3623_v21  ;;  %v4338_v26 = vld [vmem:[#allocation10 + $0x94] sm:$0xf0] }
 0x1c7   :  { %1537 = vmatpush.bf16.msra.mxu2 %v3659_v56  ;;  %v3611_v56 = vor.u32 %v4338_v26, %v3610_v1  ;;  %v4329_v21 = vld [vmem:[#allocation10 + $0x4c] sm:$0xf0]  ;;  %v3583_v1 = vor.u32 %v4328_v13, %v3580_v16  ;;  %v3554_v26 = vld [vmem:[#allocation10 + $0x20] sm:$0xf] }
 0x1c8   :  { %1184 = vmatmul.bf16.vlgmr.msrb.gmra.mxu0 %v983_v62  ;;  %1197 = vmatmul.bf16.vlgmr.msra.gmra.mxu1 %v983_v62 }
 0x1c9   :  { %1210 = vmatmul.bf16.vlgmr.msrb.gmra.mxu2 %v983_v62  ;;  %1223 = vmatmul.bf16.vlgmr.msrb.gmra.mxu3 %v983_v62  ;;  %v3631_v62 = vor.u32 %v4340_v7, %v3628_v55  ;;  %v3571_v7 = vor.u32 %v4329_v21, %v3570_v17  ;;  %v3572_v55 = vld [vmem:[#allocation10 + $0x50] sm:$0xf0]  ;;  %v3546_v21 = vld [vmem:[#allocation10 + $0x8] sm:$0xf] }
 0x1ca   :  { %1527 = vmatpush.bf16.msrb.mxu1 %v3607_v14  ;;  %1515 = vmatpush.bf16.msra.mxu0 %v3587_v9  ;;  %v4325_v14 = vld [vmem:[#allocation10 + $0x2c] sm:$0xf0] }
 0x1cb   :  { %1538 = vmatpush.bf16.msra.mxu2 %v3643_v45  ;;  %1552 = vmatpush.bf16.msra.mxu3 %v3631_v62  ;;  %v4334_v45 = vld [vmem:[#allocation10 + $0x74] sm:$0xf0]  ;;  %v3555_v18 = vor.u32 %v4325_v14, %v3554_v26 }
 0x1cc   :  { %v3595_v50 = vor.u32 %v4334_v45, %v3594_v29  ;;  %v4330_v62 = vld [vmem:[#allocation10 + $0x54] sm:$0xf0]  ;;  %v3564_v29 = vld [vmem:[#allocation10 + $0x38] sm:$0xf0] }
 0x1ce   :  { %1528 = vmatpush.bf16.msrb.mxu1 %v3591_v47  ;;  %1516 = vmatpush.bf16.msra.mxu0 %v3571_v7  ;;  %v3538_v47 = vld [vmem:[#allocation10] sm:$0xf]  ;;  %v4320_v7 = vld [vmem:[#allocation10 + $0xc] sm:$0xf] }
 0x1cf   :  { %1539 = vmatpush.bf16.msra.mxu2 %v3627_v19  ;;  %1553 = vmatpush.bf16.msra.mxu3 %v3615_v27  ;;  %v4327_v19 = vld [vmem:[#allocation10 + $0x44] sm:$0xf] }
 0x1d2   :  { %1517 = vmatpush.bf16.msra.mxu0 %v3555_v18 }
 0x1d3   :  { %1540 = vmatpush.bf16.msra.mxu2 %v3611_v56  ;;  %1554 = vmatpush.bf16.msra.mxu3 %v3599_v60  ;;  %v4323_v56 = vld [vmem:[#allocation10 + $0x24] sm:$0xf] }
 0x1d7   :  { %1541 = vmatpush.bf16.msra.mxu2 %v3595_v50  ;;  %1555 = vmatpush.bf16.msra.mxu3 %v3583_v1  ;;  %v4321_v50 = vld [vmem:[#allocation10 + $0xc] sm:$0xf0] }
 0x1d8   :  { %v3539_v60 = vor.u32 %v4321_v50, %v3538_v47 }
 0x1da   :  { %1518 = vmatpush.bf16.msra.mxu0 %v3539_v60 }
 0x245   :  { %v1185_v33 = vpop.f32.mrf.mxu0  ;;  %v1198_v38 = vpop.f32.mrf.mxu1 }
 0x246   :  { %v1228_v41 = vadd.f32 %v1185_v33, %v4988_v20  ;;  %v1229_v46 = vadd.f32 %v1198_v38, %v5014_v36  ;;  %v3578_v20 = vld [vmem:[#allocation10 + $0x48] sm:$0xf]  ;;  %v3575_v36 = vor.u32 %v4327_v19, %v3572_v55  ;;  %v4326_v33 = vld [vmem:[#allocation10 + $0x34] sm:$0xf0]  ;;  %v3559_v38 = vor.u32 %v4323_v56, %v3556_v30 }
 0x247   :  { %v3579_v10 = vor.u32 %v4330_v62, %v3578_v20  ;;  %v3563_v9 = vor.u32 %v4326_v33, %v3562_v15  ;;  %v4322_v19 = vld [vmem:[#allocation10 + $0x14] sm:$0xf0]  ;;  %v3548_v62 = vld [vmem:[#allocation10 + $0x18] sm:$0xf0] }
 0x248   :  { %v3533_v11 = vmul.f32 -1.442695, %v1228_v41  ;;  %v3534_v59 = vmul.f32 -1.442695, %v1229_v46  ;;  %1529 = vmatpush.bf16.msrb.mxu1 %v3575_v36  ;;  %v3567_v41 = vor.u32 %v4324_v3, %v3564_v29  ;;  %v3547_v36 = vor.u32 %v4322_v19, %v3546_v21 }
 0x249   :  { %1542 = vmatpush.bf16.msra.mxu2 %v3579_v10  ;;  %v3551_v10 = vor.u32 %v4320_v7, %v3548_v62 }
 0x24a   :  { %4551 = vpow2.f32 %v3533_v11  ;;  %v3540_v11 = vld [vmem:[#allocation10 + $0x10] sm:$0xf0]  ;;  %1556 = vmatpush.bf16.msra.mxu3 %v3567_v41 }
 0x24b   :  { %4553 = vpow2.f32 %v3534_v59 }
 0x24c   :  { %v1211_v22 = vpop.f32.mrf.mxu2  ;;  %v1224_v5 = vpop.f32.mrf.mxu3  ;;  %1530 = vmatpush.bf16.msrb.mxu1 %v3559_v38 }
 0x24d   :  { %v1231_v51 = vadd.f32 %v1224_v5, %v4996_v25  ;;  %v1187_v23 = vpop.f32.mrf.mxu0  ;;  %v1200_v27 = vpop.f32.mrf.mxu1  ;;  %v4319_v25 = vld [vmem:[#allocation10 + $0x4] sm:$0xf]  ;;  %1543 = vmatpush.bf16.msra.mxu2 %v3563_v9  ;;  %v1230_v1 = vadd.f32 %v1211_v22, %v4993_v24 }
 0x24e   :  { %v3543_v17 = vor.u32 %v4319_v25, %v3540_v11  ;;  %1557 = vmatpush.bf16.msra.mxu3 %v3551_v10  ;;  %v1301_v11 = vpop.permute.xlu1 %1300 }
 0x24f   :  { %v3535_v45 = vmul.f32 -1.442695, %v1231_v51  ;;  %vm1302_vm11 = vcmp.eq.s32.totalorder %v1301_v11, 1  ;;  %v4371_v11 = vld [vmem:[#allocation10 + $0xa4] sm:$0xf] }
 0x250   :  { %v4552_v46 = vpop.eup %4551  ;;  %1531 = vmatpush.bf16.msrb.mxu1 %v3543_v17 }
 0x251   :  { %v4554_v0 = vpop.eup %4553  ;;  %v1235_v53 = vadd.f32 1.0, %v4552_v46  ;;  %4555 = vpow2.f32 %v3535_v45  ;;  %1544 = vmatpush.bf16.msra.mxu2 %v3547_v36 }
 0x252   :  { %v1254_v59 = vadd.f32 1.0, %v4554_v0 }
 0x253   :  { %4557 = vrcp.f32 %v1235_v53  ;;  %v1247_v27 = vand.u32 2147483648, %v1235_v53  ;;  %v1245_v30 = vand.u32 2147483647, %v1235_v53  ;;  %vm1241_vm5 = vweird.f32 %v1235_v53 }
 0x254   :  { %4559 = vrcp.f32 %v1254_v59  ;;  %v1213_v55 = vpop.f32.mrf.mxu2  ;;  %v1226_v20 = vpop.f32.mrf.mxu3  ;;  %v1266_v15 = vand.u32 2147483648, %v1254_v59  ;;  %v1264_v38 = vand.u32 2147483647, %v1254_v59  ;;  %vm1260_vm7 = vweird.f32 %v1254_v59 }
 0x255   :  { %v1248_v24 = vor.u32 1.1754944e-38, %v1247_v27  ;;  %vm1246_vm8 = vcmp.eq.f32.partialorder %v1245_v30, 8.507059e+37  ;;  %v4382_v27 = vld [vmem:[#allocation10 + $0xf4] sm:$0xf0]  ;;  %v4380_v30 = vld [vmem:[#allocation10 + $0xec] sm:$0xf] }
 0x256   :  { %v1267_v41 = vor.u32 1.1754944e-38, %v1266_v15  ;;  %vm1265_vm10 = vcmp.eq.f32.partialorder %v1264_v38, 8.507059e+37  ;;  %v3791_v15 = vld [vmem:[#allocation10 + $0xf8] sm:$0xf0]  ;;  %v3765_v38 = vld [vmem:[#allocation10 + $0xc0] sm:$0xf] }
 0x257   :  { %v4556_v13 = vpop.eup %4555 }
 0x258   :  { %v1274_v16 = vadd.f32 1.0, %v4556_v13 }
 0x259   :  { %v4558_v5 = vpop.eup %4557 }
 0x25a   :  { %v4560_v26 = vpop.eup %4559  ;;  %v1237_v14 = vmul.f32 %v4558_v5, %v1235_v53  ;;  %4561 = vrcp.f32 %v1274_v16  ;;  %vm1242_vm3 = vweird.f32 %v4558_v5  ;;  %vm1280_vm13 = vweird.f32 %v1274_v16 }
 0x25b   :  { %v1256_v56 = vmul.f32 %v4560_v26, %v1254_v59  ;;  %4563 = vtanh.f32 %v1230_v1  ;;  %vm1261_vm4 = vweird.f32 %v4560_v26  ;;  %vm1243_vm6 = vmor %vm1241_vm5, %vm1242_vm3  ;;  %v1286_v59 = vand.u32 2147483648, %v1274_v16 }
 0x25c   :  { %v1238_v51 = vsub.f32 1.0, %v1237_v14  ;;  %vm1262_vm9 = vmor %vm1260_vm7, %vm1261_vm4  ;;  %v1284_v55 = vand.u32 2147483647, %v1274_v16  ;;  %v4379_v14 = vld [vmem:[#allocation10 + $0xe4] sm:$0xf] }
 0x25d   :  { %v1257_v23 = vsub.f32 1.0, %v1256_v56  ;;  %v1287_v62 = vor.u32 1.1754944e-38, %v1286_v59 }
 0x25e   :  { %v1239_v18 = vmul.f32 %v4558_v5, %v1238_v51  ;;  %vm1285_vm15 = vcmp.eq.f32.partialorder %v1284_v55, 8.507059e+37  ;;  %v3783_v51 = vld [vmem:[#allocation10 + $0xf0] sm:$0xf0] }
 0x25f   :  { %v1258_v33 = vmul.f32 %v4560_v26, %v1257_v23  ;;  %v3789_v23 = vld [vmem:[#allocation10 + $0xe8] sm:$0xf] }
 0x260   :  { %v4562_v9 = vpop.eup %4561  ;;  %v1240_v3 = vadd.f32 %v4558_v5, %v1239_v18  ;;  %v3786_v18 = vor.u32 %v4379_v14, %v3783_v51  ;;  %v4370_v14 = vld [vmem:[#allocation10 + $0x94] sm:$0xf0] }
 0x261   :  { %v1276_v22 = vmul.f32 %v4562_v9, %v1274_v16  ;;  %v1259_v29 = vadd.f32 %v4560_v26, %v1258_v33  ;;  %v4564_v46 = vpop.eup %4563  ;;  %vm1281_vm12 = vweird.f32 %v4562_v9  ;;  %v3781_v16 = vld [vmem:[#allocation10 + $0xe0] sm:$0xf]  ;;  %v3794_v33 = vor.u32 %v4380_v30, %v3791_v15  ;;  %v4365_v30 = vld [vmem:[#allocation10 + $0x6c] sm:$0xf0]  ;;  %v4363_v15 = vld [vmem:[#allocation10 + $0x64] sm:$0xf] }
 0x262   :  { %v1244_v45 = vsel %vm1243_vm6, %v4558_v5, %v1240_v3  ;;  %vm1282_vm14 = vmor %vm1280_vm13, %vm1281_vm12  ;;  %1859 = vmatpush.bf16.msra.mxu1 %v3786_v18  ;;  %v4375_v3 = vld [vmem:[#allocation10 + $0xc4] sm:$0xf] }
 0x263   :  { %v1249_v47 = vsel %vm1246_vm8, %v1248_v24, %v1244_v45  ;;  %v1277_v50 = vsub.f32 1.0, %v1276_v22  ;;  %v1263_v25 = vsel %vm1262_vm9, %v4560_v26, %v1259_v29  ;;  %v4381_v26 = vld [vmem:[#allocation10 + $0xec] sm:$0xf0]  ;;  %1885 = vmatpush.bf16.msrb.mxu3 %v3794_v33  ;;  %v3767_v22 = vld [vmem:[#allocation10 + $0xd0] sm:$0xf0] }
 0x264   :  { %v1292_v0 = vmul.f32 %v4564_v46, %v1249_v47  ;;  %v1268_v60 = vsel %vm1265_vm10, %v1267_v41, %v1263_v25  ;;  %v3782_v56 = vor.u32 %v4381_v26, %v3781_v16  ;;  %v3773_v29 = vld [vmem:[#allocation10 + $0xc8] sm:$0xf]  ;;  %v4378_v45 = vld [vmem:[#allocation10 + $0xd4] sm:$0xf0]  ;;  %v3770_v41 = vor.u32 %v4375_v3, %v3767_v22  ;;  %v4376_v47 = vld [vmem:[#allocation10 + $0xcc] sm:$0xf] }
 0x265   :  { %v1278_v17 = vmul.f32 %v4562_v9, %v1277_v50  ;;  %v1291_v53 = vmul.f32 %v1268_v60, %v5104_v54  ;;  %v3774_v46 = vor.u32 %v4378_v45, %v3773_v29  ;;  %v3775_v50 = vld [vmem:[#allocation10 + $0xd8] sm:$0xf0]  ;;  %v4373_v60 = vld [vmem:[#allocation10 + $0xac] sm:$0xf0]  ;;  %v3735_v16 = vld [vmem:[#allocation10 + $0x90] sm:$0xf0] }
 0x266   :  { %1846 = vmatpush.bf16.msrb.mxu0 %v3782_v56  ;;  %v3778_v25 = vor.u32 %v4376_v47, %v3775_v50  ;;  %1860 = vmatpush.bf16.msra.mxu1 %v3770_v41  ;;  %v3741_v26 = vld [vmem:[#allocation10 + $0x88] sm:$0xf]  ;;  %v3719_v3 = vld [vmem:[#allocation10 + $0x70] sm:$0xf0]  ;;  %v4366_v22 = vld [vmem:[#allocation10 + $0x74] sm:$0xf0] }
 0x267   :  { %v1293_v21 = vadd.f32 %v1292_v0, %v1291_v53  ;;  %v1279_v19 = vadd.f32 %v4562_v9, %v1278_v17  ;;  %v3749_v0 = vld [vmem:[#allocation10 + $0xa0] sm:$0xf]  ;;  %v3751_v53 = vld [vmem:[#allocation10 + $0xb0] sm:$0xf0]  ;;  %v3742_v51 = vor.u32 %v4370_v14, %v3741_v26  ;;  %v3722_v41 = vor.u32 %v4363_v15, %v3719_v3  ;;  %v4364_v47 = vld [vmem:[#allocation10 + $0x6c] sm:$0xf] }
 0x268   :  { %1886 = vmatpush.bf16.msrb.mxu3 %v3778_v25  ;;  %v3750_v17 = vor.u32 %v4373_v60, %v3749_v0  ;;  %v3754_v59 = vor.u32 %v4371_v11, %v3751_v53  ;;  %v3727_v50 = vld [vmem:[#allocation10 + $0x78] sm:$0xf0]  ;;  %v3701_v11 = vld [vmem:[#allocation10 + $0x40] sm:$0xf]  ;;  %v4359_v53 = vld [vmem:[#allocation10 + $0x44] sm:$0xf] }
 0x269   :  { %4565 = vtanh.f32 %v1293_v21  ;;  %v5120_v7 = vsel %vm1302_vm11, %v1293_v21, %v5104_v54  ;;  %v1283_v20 = vsel %vm1282_vm14, %v4562_v9, %v1279_v19  ;;  %v4377_v9 = vld [vmem:[#allocation10 + $0xcc] sm:$0xf0]  ;;  %v3757_v21 = vld [vmem:[#allocation10 + $0xa8] sm:$0xf]  ;;  %v4374_v19 = vld [vmem:[#allocation10 + $0xb4] sm:$0xf0]  ;;  %v3730_v25 = vor.u32 %v4364_v47, %v3727_v50 }
 0x26a   :  { %v1288_v10 = vsel %vm1285_vm15, %v1287_v62, %v1283_v20  ;;  %v3766_v24 = vor.u32 %v4377_v9, %v3765_v38  ;;  %v3758_v55 = vor.u32 %v4374_v19, %v3757_v21  ;;  %v4372_v20 = vld [vmem:[#allocation10 + $0xac] sm:$0xf]  ;;  %v3759_v62 = vld [vmem:[#allocation10 + $0xb8] sm:$0xf0]  ;;  %1861 = vmatpush.bf16.msra.mxu1 %v3754_v59  ;;  %v3703_v21 = vld [vmem:[#allocation10 + $0x50] sm:$0xf0] }
 0x26b   :  { %v3709_v59 = vld [vmem:[#allocation10 + $0x48] sm:$0xf]  ;;  %v4355_v26 = vld [vmem:[#allocation10 + $0x24] sm:$0xf]  ;;  %v3687_v14 = vld [vmem:[#allocation10 + $0x30] sm:$0xf0] }
 0x26c   :  { %1847 = vmatpush.bf16.msrb.mxu0 %v3766_v24  ;;  %v3725_v24 = vld [vmem:[#allocation10 + $0x68] sm:$0xf]  ;;  %v3695_v15 = vld [vmem:[#allocation10 + $0x38] sm:$0xf0]  ;;  %v4353_v3 = vld [vmem:[#allocation10 + $0xc] sm:$0xf0] }
 0x26d   :  { %v4354_v47 = vld [vmem:[#allocation10 + $0x14] sm:$0xf0]  ;;  %v4352_v50 = vld [vmem:[#allocation10 + $0xc] sm:$0xf] }
 0x26f   :  { %v4566_v36 = vpop.eup %4565 }
 0x270   :  { %v1295_v13 = vmul.f32 %v4566_v36, %v1288_v10  ;;  %1848 = vmatpush.bf16.msrb.mxu0 %v3750_v17  ;;  %v3762_v36 = vor.u32 %v4372_v20, %v3759_v62  ;;  %v3733_v10 = vld [vmem:[#allocation10 + $0x80] sm:$0xf]  ;;  %v4361_v17 = vld [vmem:[#allocation10 + $0x4c] sm:$0xf0]  ;;  %v3711_v62 = vld [vmem:[#allocation10 + $0x58] sm:$0xf0] }
 0x271   :  { %v3702_v19 = vor.u32 %v4361_v17, %v3701_v11 }
 0x272   :  { %v5124_v5 = vsel %vm1302_vm11, %v1295_v13, %v5108_v12  ;;  %v1308_v1 = vsel %vm1302_vm11, %v1295_v13, 0.0  ;;  %v3790_v12 = vor.u32 %v4382_v27, %v3789_v23  ;;  %v4369_v13 = vld [vmem:[#allocation10 + $0x8c] sm:$0xf0]  ;;  %1887 = vmatpush.bf16.msrb.mxu3 %v3762_v36  ;;  %v4368_v23 = vld [vmem:[#allocation10 + $0x8c] sm:$0xf] }
 0x273   :  { %1310 = vst [vmem:[#allocation13 + $0x10] sm:$0xff] %v1308_v1  ;;  %v1318_v54 = vpack.c.bf16 %v5124_v5, %v5124_v5  ;;  %v4367_v1 = vld [vmem:[#allocation10 + $0x84] sm:$0xf]  ;;  %v3743_v27 = vld [vmem:[#allocation10 + $0x98] sm:$0xf0] }
 0x274   :  { %1872 = vmatpush.bf16.msrb.mxu2 %v3790_v12  ;;  %v3738_v56 = vor.u32 %v4367_v1, %v3735_v16  ;;  %v3746_v18 = vor.u32 %v4368_v23, %v3743_v27  ;;  %v3717_v12 = vld [vmem:[#allocation10 + $0x60] sm:$0xf] }
 0x275   :  { %1519 = vmatmul.bf16.vlgmr.msra.gmra.mxu0 %v1318_v54  ;;  %1532 = vmatmul.bf16.vlgmr.msrb.gmra.mxu1 %v1318_v54  ;;  %v3718_v9 = vor.u32 %v4365_v30, %v3717_v12  ;;  %v3685_v36 = vld [vmem:[#allocation10 + $0x20] sm:$0xf]  ;;  %v4358_v12 = vld [vmem:[#allocation10 + $0x34] sm:$0xf0]  ;;  %v4356_v30 = vld [vmem:[#allocation10 + $0x2c] sm:$0xf] }
 0x276   :  { %1545 = vmatmul.bf16.vlgmr.msra.gmra.mxu2 %v1318_v54  ;;  %1558 = vmatmul.bf16.vlgmr.msra.gmra.mxu3 %v1318_v54  ;;  %v3734_v54 = vor.u32 %v4369_v13, %v3733_v10  ;;  %v4357_v10 = vld [vmem:[#allocation10 + $0x2c] sm:$0xf0] }
 0x277   :  { %1862 = vmatpush.bf16.msra.mxu1 %v3738_v56  ;;  %1888 = vmatpush.bf16.msrb.mxu3 %v3746_v18  ;;  %v3686_v16 = vor.u32 %v4357_v10, %v3685_v36  ;;  %v3693_v56 = vld [vmem:[#allocation10 + $0x28] sm:$0xf]  ;;  %v3690_v18 = vor.u32 %v4355_v26, %v3687_v14 }
 0x278   :  { %1873 = vmatpush.bf16.msrb.mxu2 %v3774_v46  ;;  %1849 = vmatpush.bf16.msrb.mxu0 %v3734_v54  ;;  %v3726_v46 = vor.u32 %v4366_v22, %v3725_v24  ;;  %v4351_v24 = vld [vmem:[#allocation10 + $0x4] sm:$0xf] }
 0x27b   :  { %1863 = vmatpush.bf16.msra.mxu1 %v3722_v41  ;;  %1889 = vmatpush.bf16.msrb.mxu3 %v3730_v25  ;;  %v3679_v25 = vld [vmem:[#allocation10 + $0x18] sm:$0xf0] }
 0x27c   :  { %1874 = vmatpush.bf16.msrb.mxu2 %v3758_v55  ;;  %1850 = vmatpush.bf16.msrb.mxu0 %v3718_v9  ;;  %v4360_v55 = vld [vmem:[#allocation10 + $0x4c] sm:$0xf]  ;;  %v3669_v9 = vld [vmem:[#allocation10] sm:$0xf] }
 0x27d   :  { %v3714_v54 = vor.u32 %v4360_v55, %v3711_v62 }
 0x27f   :  { %1890 = vmatpush.bf16.msrb.mxu3 %v3714_v54 }
 0x280   :  { %1875 = vmatpush.bf16.msrb.mxu2 %v3742_v51  ;;  %1851 = vmatpush.bf16.msrb.mxu0 %v3702_v19 }
 0x284   :  { %1876 = vmatpush.bf16.msrb.mxu2 %v3726_v46  ;;  %1852 = vmatpush.bf16.msrb.mxu0 %v3686_v16 }
 0x2f2   :  { %v1520_v33 = vpop.f32.mrf.mxu0  ;;  %v1533_v38 = vpop.f32.mrf.mxu1 }
 0x2f3   :  { %v1563_v29 = vadd.f32 %v1520_v33, %v4999_v28  ;;  %v1564_v45 = vadd.f32 %v1533_v38, %v5026_v44  ;;  %v3706_v28 = vor.u32 %v4359_v53, %v3703_v21  ;;  %v4362_v44 = vld [vmem:[#allocation10 + $0x54] sm:$0xf0]  ;;  %v3694_v33 = vor.u32 %v4358_v12, %v3693_v56 }
 0x2f4   :  { %v3710_v20 = vor.u32 %v4362_v44, %v3709_v59  ;;  %v3698_v38 = vor.u32 %v4356_v30, %v3695_v15  ;;  %v3682_v53 = vor.u32 %v4352_v50, %v3679_v25 }
 0x2f5   :  { %v3664_v0 = vmul.f32 -1.442695, %v1563_v29  ;;  %v3665_v60 = vmul.f32 -1.442695, %v1564_v45  ;;  %1864 = vmatpush.bf16.msra.mxu1 %v3706_v28  ;;  %v3671_v29 = vld [vmem:[#allocation10 + $0x10] sm:$0xf0] }
 0x2f6   :  { %1877 = vmatpush.bf16.msrb.mxu2 %v3710_v20  ;;  %v3677_v45 = vld [vmem:[#allocation10 + $0x8] sm:$0xf]  ;;  %v3674_v46 = vor.u32 %v4351_v24, %v3671_v29  ;;  %1891 = vmatpush.bf16.msrb.mxu3 %v3698_v38  ;;  %v4647_v28 = vld [vmem:[%s5220_s0] sm:$0xff] }
 0x2f7   :  { %4567 = vpow2.f32 %v3664_v0  ;;  %v3678_v11 = vor.u32 %v4354_v47, %v3677_v45  ;;  %vm1967_vm0 = vcmp.gt.s32.totalorder %v4647_v28, 4  ;;  %vm2302_vm1 = vcmp.gt.s32.totalorder %v4647_v28, 5 }
 0x2f8   :  { %4569 = vpow2.f32 %v3665_v60  ;;  %v1968_v44 = vsel %vm1967_vm0, 1, %v4837_v61  ;;  %v2303_v14 = vsel %vm2302_vm1, 1, %v4837_v61 }
 0x2f9   :  { %v1546_v13 = vpop.f32.mrf.mxu2  ;;  %v1559_v1 = vpop.f32.mrf.mxu3  ;;  %1865 = vmatpush.bf16.msra.mxu1 %v3690_v18  ;;  %1970 = vperm.xlu2 %4517, %v1968_v44   ;;  %v4413_v44 = vld [vmem:[#allocation10 + $0xec] sm:$0xf0] }
 0x2fa   :  { %v1566_v51 = vadd.f32 %v1559_v1, %v5008_v32  ;;  %v1522_v23 = vpop.f32.mrf.mxu0  ;;  %v1535_v27 = vpop.f32.mrf.mxu1  ;;  %v3670_v32 = vor.u32 %v4353_v3, %v3669_v9  ;;  %1878 = vmatpush.bf16.msrb.mxu2 %v3694_v33  ;;  %1892 = vmatpush.bf16.msrb.mxu3 %v3682_v53  ;;  %v1565_v62 = vadd.f32 %v1546_v13, %v5005_v31 }
 0x2fc   :  { %v3666_v22 = vmul.f32 -1.442695, %v1566_v51  ;;  %1853 = vmatpush.bf16.msrb.mxu0 %v3670_v32  ;;  %v1636_v32 = vpop.permute.xlu1 %1635 }
 0x2fd   :  { %v4568_v41 = vpop.eup %4567  ;;  %1866 = vmatpush.bf16.msra.mxu1 %v3674_v46  ;;  %vm1637_vm10 = vcmp.eq.s32.totalorder %v1636_v32, 1  ;;  %v4404_v32 = vld [vmem:[#allocation10 + $0xac] sm:$0xf] }
 0x2fe   :  { %v4570_v0 = vpop.eup %4569  ;;  %v1570_v60 = vadd.f32 1.0, %v4568_v41  ;;  %4571 = vpow2.f32 %v3666_v22  ;;  %1879 = vmatpush.bf16.msrb.mxu2 %v3678_v11 }
 0x2ff   :  { %v1589_v17 = vadd.f32 1.0, %v4570_v0 }
 0x300   :  { %4573 = vrcp.f32 %v1570_v60  ;;  %v1582_v26 = vand.u32 2147483648, %v1570_v60  ;;  %v1580_v23 = vand.u32 2147483647, %v1570_v60  ;;  %vm1576_vm4 = vweird.f32 %v1570_v60 }
 0x301   :  { %4575 = vrcp.f32 %v1589_v17  ;;  %v1548_v21 = vpop.f32.mrf.mxu2  ;;  %v1561_v19 = vpop.f32.mrf.mxu3  ;;  %v1601_v56 = vand.u32 2147483648, %v1589_v17  ;;  %v1599_v18 = vand.u32 2147483647, %v1589_v17  ;;  %2305 = vperm.xlu2 %4517, %v2303_v14   ;;  %vm1595_vm5 = vweird.f32 %v1589_v17  ;;  %v3896_v14 = vld [vmem:[#allocation10 + $0xc0] sm:$0xf] }
 0x302   :  { %v1583_v13 = vor.u32 1.1754944e-38, %v1582_v26  ;;  %vm1581_vm8 = vcmp.eq.f32.partialorder %v1580_v23, 8.507059e+37 }
 0x303   :  { %v1602_v33 = vor.u32 1.1754944e-38, %v1601_v56  ;;  %vm1600_vm9 = vcmp.eq.f32.partialorder %v1599_v18, 8.507059e+37  ;;  %v4409_v56 = vld [vmem:[#allocation10 + $0xcc] sm:$0xf0]  ;;  %v3904_v18 = vld [vmem:[#allocation10 + $0xc8] sm:$0xf] }
 0x304   :  { %v4572_v59 = vpop.eup %4571  ;;  %v3897_v23 = vor.u32 %v4409_v56, %v3896_v14 }
 0x305   :  { %v1609_v55 = vadd.f32 1.0, %v4572_v59  ;;  %v3912_v59 = vld [vmem:[#allocation10 + $0xe0] sm:$0xf] }
 0x306   :  { %v4574_v20 = vpop.eup %4573 }
 0x307   :  { %v4576_v36 = vpop.eup %4575  ;;  %v1572_v10 = vmul.f32 %v4574_v20, %v1570_v60  ;;  %4577 = vrcp.f32 %v1609_v55  ;;  %vm1577_vm2 = vweird.f32 %v4574_v20  ;;  %v1621_v50 = vand.u32 2147483648, %v1609_v55 }
 0x308   :  { %v1591_v1 = vmul.f32 %v4576_v36, %v1589_v17  ;;  %4579 = vtanh.f32 %v1565_v62  ;;  %vm1596_vm3 = vweird.f32 %v4576_v36  ;;  %vm1578_vm6 = vmor %vm1576_vm4, %vm1577_vm2  ;;  %vm1615_vm12 = vweird.f32 %v1609_v55  ;;  %v3914_v62 = vld [vmem:[#allocation10 + $0xf0] sm:$0xf0] }
 0x309   :  { %v1573_v54 = vsub.f32 1.0, %v1572_v10  ;;  %vm1597_vm7 = vmor %vm1595_vm5, %vm1596_vm3  ;;  %v1619_v0 = vand.u32 2147483647, %v1609_v55  ;;  %v1622_v11 = vor.u32 1.1754944e-38, %v1621_v50  ;;  %v4414_v10 = vld [vmem:[#allocation10 + $0xf4] sm:$0xf0] }
 0x30a   :  { %v1592_v16 = vsub.f32 1.0, %v1591_v1  ;;  %v3864_v50 = vld [vmem:[#allocation10 + $0x80] sm:$0xf] }
 0x30b   :  { %v1574_v51 = vmul.f32 %v4574_v20, %v1573_v54  ;;  %vm1620_vm14 = vcmp.eq.f32.partialorder %v1619_v0, 8.507059e+37  ;;  %v4412_v54 = vld [vmem:[#allocation10 + $0xec] sm:$0xf]  ;;  %v4401_v0 = vld [vmem:[#allocation10 + $0x8c] sm:$0xf0] }
 0x30c   :  { %v1593_v27 = vmul.f32 %v4576_v36, %v1592_v16  ;;  %v3922_v16 = vld [vmem:[#allocation10 + $0xf8] sm:$0xf0] }
 0x30d   :  { %v4578_v12 = vpop.eup %4577  ;;  %v1575_v31 = vadd.f32 %v4574_v20, %v1574_v51  ;;  %v3925_v26 = vor.u32 %v4412_v54, %v3922_v16  ;;  %v4407_v51 = vld [vmem:[#allocation10 + $0xc4] sm:$0xf]  ;;  %v4398_v54 = vld [vmem:[#allocation10 + $0x74] sm:$0xf0] }
 0x30e   :  { %v1594_v30 = vadd.f32 %v4576_v36, %v1593_v27  ;;  %v1611_v15 = vmul.f32 %v4578_v12, %v1609_v55  ;;  %v4580_v61 = vpop.eup %4579  ;;  %vm1616_vm11 = vweird.f32 %v4578_v12  ;;  %v4411_v55 = vld [vmem:[#allocation10 + $0xe4] sm:$0xf]  ;;  %v3898_v27 = vld [vmem:[#allocation10 + $0xd0] sm:$0xf0] }
 0x30f   :  { %v1579_v38 = vsel %vm1578_vm6, %v4574_v20, %v1575_v31  ;;  %vm1617_vm13 = vmor %vm1615_vm12, %vm1616_vm11  ;;  %v3913_v20 = vor.u32 %v4413_v44, %v3912_v59  ;;  %v3917_v1 = vor.u32 %v4411_v55, %v3914_v62  ;;  %2220 = vmatpush.bf16.msra.mxu3 %v3925_v26  ;;  %v3901_v31 = vor.u32 %v4407_v51, %v3898_v27  ;;  %v4400_v59 = vld [vmem:[#allocation10 + $0x8c] sm:$0xf]  ;;  %v3874_v44 = vld [vmem:[#allocation10 + $0x98] sm:$0xf0] }
 0x310   :  { %v1584_v9 = vsel %vm1581_vm8, %v1583_v13, %v1579_v38  ;;  %v1598_v3 = vsel %vm1597_vm7, %v4576_v36, %v1594_v30  ;;  %v1612_v24 = vsub.f32 1.0, %v1611_v15  ;;  %v3920_v36 = vld [vmem:[#allocation10 + $0xe8] sm:$0xf]  ;;  %v4408_v30 = vld [vmem:[#allocation10 + $0xcc] sm:$0xf]  ;;  %v3877_v55 = vor.u32 %v4400_v59, %v3874_v44 }
 0x311   :  { %v1603_v22 = vsel %vm1600_vm9, %v1602_v33, %v1598_v3  ;;  %v1627_v29 = vmul.f32 %v4580_v61, %v1584_v9  ;;  %2181 = vmatpush.bf16.msra.mxu0 %v3913_v20  ;;  %2194 = vmatpush.bf16.msrb.mxu1 %v3917_v1  ;;  %v3906_v15 = vld [vmem:[#allocation10 + $0xd8] sm:$0xf0]  ;;  %v3880_v38 = vld [vmem:[#allocation10 + $0xa0] sm:$0xf]  ;;  %v4405_v61 = vld [vmem:[#allocation10 + $0xac] sm:$0xf0] }
 0x312   :  { %v1626_v45 = vmul.f32 %v1603_v22, %v5120_v7  ;;  %v1613_v41 = vmul.f32 %v4578_v12, %v1612_v24  ;;  %v3909_v33 = vor.u32 %v4408_v30, %v3906_v15  ;;  %v4403_v9 = vld [vmem:[#allocation10 + $0xa4] sm:$0xf]  ;;  %v3881_v3 = vor.u32 %v4405_v61, %v3880_v38  ;;  %v3882_v24 = vld [vmem:[#allocation10 + $0xb0] sm:$0xf0]  ;;  %v3888_v22 = vld [vmem:[#allocation10 + $0xa8] sm:$0xf] }
 0x313   :  { %v3848_v20 = vld [vmem:[#allocation10 + $0x60] sm:$0xf]  ;;  %v4397_v62 = vld [vmem:[#allocation10 + $0x6c] sm:$0xf0]  ;;  %v3850_v1 = vld [vmem:[#allocation10 + $0x70] sm:$0xf0] }
 0x314   :  { %v1628_v46 = vadd.f32 %v1627_v29, %v1626_v45  ;;  %v1614_v47 = vadd.f32 %v4578_v12, %v1613_v41  ;;  %2221 = vmatpush.bf16.msra.mxu3 %v3909_v33  ;;  %v4406_v29 = vld [vmem:[#allocation10 + $0xb4] sm:$0xf0]  ;;  %v3885_v45 = vor.u32 %v4403_v9, %v3882_v24  ;;  %v4396_v51 = vld [vmem:[#allocation10 + $0x6c] sm:$0xf]  ;;  %v3832_v30 = vld [vmem:[#allocation10 + $0x40] sm:$0xf] }
 0x315   :  { %2182 = vmatpush.bf16.msra.mxu0 %v3897_v23  ;;  %2195 = vmatpush.bf16.msrb.mxu1 %v3901_v31  ;;  %v3889_v41 = vor.u32 %v4406_v29, %v3888_v22  ;;  %v3858_v23 = vld [vmem:[#allocation10 + $0x78] sm:$0xf0]  ;;  %v4393_v15 = vld [vmem:[#allocation10 + $0x4c] sm:$0xf0]  ;;  %v4391_v33 = vld [vmem:[#allocation10 + $0x44] sm:$0xf] }
 0x316   :  { %4581 = vtanh.f32 %v1628_v46  ;;  %v5141_v25 = vsel %vm1637_vm10, %v1628_v46, %v5120_v7  ;;  %v1618_v60 = vsel %vm1617_vm13, %v4578_v12, %v1614_v47  ;;  %v4410_v12 = vld [vmem:[#allocation10 + $0xd4] sm:$0xf0]  ;;  %v3890_v46 = vld [vmem:[#allocation10 + $0xb8] sm:$0xf0]  ;;  %v3833_v38 = vor.u32 %v4393_v15, %v3832_v30  ;;  %v3834_v61 = vld [vmem:[#allocation10 + $0x50] sm:$0xf0] }
 0x317   :  { %v1623_v53 = vsel %vm1620_vm14, %v1622_v11, %v1618_v60  ;;  %v3905_v13 = vor.u32 %v4410_v12, %v3904_v18  ;;  %v3893_v47 = vor.u32 %v4404_v32, %v3890_v46  ;;  %v4399_v60 = vld [vmem:[#allocation10 + $0x84] sm:$0xf]  ;;  %v3865_v11 = vor.u32 %v4401_v0, %v3864_v50  ;;  %v3840_v9 = vld [vmem:[#allocation10 + $0x48] sm:$0xf]  ;;  %v4392_v22 = vld [vmem:[#allocation10 + $0x4c] sm:$0xf] }
 0x318   :  { %v3861_v12 = vor.u32 %v4396_v51, %v3858_v23  ;;  %v3837_v24 = vor.u32 %v4391_v33, %v3834_v61  ;;  %v3816_v32 = vld [vmem:[#allocation10 + $0x20] sm:$0xf]  ;;  %v4389_v46 = vld [vmem:[#allocation10 + $0x2c] sm:$0xf0]  ;;  %v4388_v59 = vld [vmem:[#allocation10 + $0x2c] sm:$0xf] }
 0x319   :  { %2183 = vmatpush.bf16.msra.mxu0 %v3881_v3  ;;  %2196 = vmatpush.bf16.msrb.mxu1 %v3885_v45  ;;  %v4394_v3 = vld [vmem:[#allocation10 + $0x54] sm:$0xf0]  ;;  %v3826_v44 = vld [vmem:[#allocation10 + $0x38] sm:$0xf0]  ;;  %v4384_v23 = vld [vmem:[#allocation10 + $0xc] sm:$0xf] }
 0x31a   :  { %2222 = vmatpush.bf16.msra.mxu3 %v3893_v47  ;;  %v4387_v47 = vld [vmem:[#allocation10 + $0x24] sm:$0xf]  ;;  %v4386_v51 = vld [vmem:[#allocation10 + $0x14] sm:$0xf0] }
 0x31c   :  { %v4582_v17 = vpop.eup %4581 }
 0x31d   :  { %v1630_v21 = vmul.f32 %v4582_v17, %v1623_v53  ;;  %v3866_v17 = vld [vmem:[#allocation10 + $0x90] sm:$0xf0]  ;;  %v3872_v53 = vld [vmem:[#allocation10 + $0x88] sm:$0xf]  ;;  %2184 = vmatpush.bf16.msra.mxu0 %v3865_v11  ;;  %v3817_v11 = vor.u32 %v4389_v46, %v3816_v32 }
 0x31e   :  { %2223 = vmatpush.bf16.msra.mxu3 %v3877_v55 }
 0x31f   :  { %v5145_v19 = vsel %vm1637_vm10, %v1630_v21, %v5124_v5  ;;  %v1643_v28 = vsel %vm1637_vm10, %v1630_v21, 0.0  ;;  %v3921_v5 = vor.u32 %v4414_v10, %v3920_v36  ;;  %v4402_v21 = vld [vmem:[#allocation10 + $0x94] sm:$0xf0]  ;;  %v4395_v36 = vld [vmem:[#allocation10 + $0x64] sm:$0xf]  ;;  %v3849_v10 = vor.u32 %v4397_v62, %v3848_v20 }
 0x320   :  { %1645 = vst [vmem:[#allocation13 + $0x18] sm:$0xff] %v1643_v28  ;;  %v1653_v7 = vpack.c.bf16 %v5145_v19, %v5145_v19  ;;  %v3869_v28 = vor.u32 %v4399_v60, %v3866_v17  ;;  %v3853_v14 = vor.u32 %v4395_v36, %v3850_v1  ;;  %v3818_v17 = vld [vmem:[#allocation10 + $0x30] sm:$0xf0]  ;;  %v3829_v20 = vor.u32 %v4388_v59, %v3826_v44  ;;  %v3800_v36 = vld [vmem:[#allocation10] sm:$0xf] }
 0x321   :  { %2207 = vmatpush.bf16.msra.mxu2 %v3921_v5  ;;  %v3856_v5 = vld [vmem:[#allocation10 + $0x68] sm:$0xf]  ;;  %2185 = vmatpush.bf16.msra.mxu0 %v3849_v10  ;;  %v4385_v10 = vld [vmem:[#allocation10 + $0xc] sm:$0xf0] }
 0x322   :  { %1854 = vmatmul.bf16.vlgmr.msrb.gmra.mxu0 %v1653_v7  ;;  %1867 = vmatmul.bf16.vlgmr.msra.gmra.mxu1 %v1653_v7  ;;  %v3857_v56 = vor.u32 %v4398_v54, %v3856_v5  ;;  %v3801_v54 = vor.u32 %v4385_v10, %v3800_v36 }
 0x323   :  { %1880 = vmatmul.bf16.vlgmr.msrb.gmra.mxu2 %v1653_v7  ;;  %1893 = vmatmul.bf16.vlgmr.msrb.gmra.mxu3 %v1653_v7  ;;  %v3873_v7 = vor.u32 %v4402_v21, %v3872_v53  ;;  %v3824_v53 = vld [vmem:[#allocation10 + $0x28] sm:$0xf]  ;;  %v4390_v21 = vld [vmem:[#allocation10 + $0x34] sm:$0xf0] }
 0x324   :  { %2197 = vmatpush.bf16.msrb.mxu1 %v3869_v28  ;;  %2224 = vmatpush.bf16.msra.mxu3 %v3861_v12  ;;  %v3821_v28 = vor.u32 %v4387_v47, %v3818_v17 }
 0x325   :  { %2208 = vmatpush.bf16.msra.mxu2 %v3905_v13  ;;  %2186 = vmatpush.bf16.msra.mxu0 %v3833_v38 }
 0x328   :  { %2198 = vmatpush.bf16.msrb.mxu1 %v3853_v14 }
 0x329   :  { %2209 = vmatpush.bf16.msra.mxu2 %v3889_v41  ;;  %2187 = vmatpush.bf16.msra.mxu0 %v3817_v11 }
 0x32c   :  { %2199 = vmatpush.bf16.msrb.mxu1 %v3837_v24 }
 0x32d   :  { %2210 = vmatpush.bf16.msra.mxu2 %v3873_v7  ;;  %v3825_v7 = vor.u32 %v4390_v21, %v3824_v53  ;;  %2188 = vmatpush.bf16.msra.mxu0 %v3801_v54 }
 0x330   :  { %2200 = vmatpush.bf16.msrb.mxu1 %v3821_v28 }
 0x331   :  { %2211 = vmatpush.bf16.msra.mxu2 %v3857_v56 }
 0x353   :  { %v1971_v28 = vpop.permute.xlu2 %1970 }
 0x354   :  { %vm1972_vm7 = vcmp.eq.s32.totalorder %v1971_v28, 1 }
 0x39f   :  { %v1855_v16 = vpop.f32.mrf.mxu0  ;;  %v1868_v26 = vpop.f32.mrf.mxu1 }
 0x3a0   :  { %v1898_v27 = vadd.f32 %v1855_v16, %v5011_v35  ;;  %v1899_v18 = vadd.f32 %v1868_v26, %v5036_v52  ;;  %v3841_v35 = vor.u32 %v4394_v3, %v3840_v9  ;;  %v3842_v52 = vld [vmem:[#allocation10 + $0x58] sm:$0xf0]  ;;  %v3802_v16 = vld [vmem:[#allocation10 + $0x10] sm:$0xf0]  ;;  %v3808_v26 = vld [vmem:[#allocation10 + $0x8] sm:$0xf] }
 0x3a1   :  { %v3845_v41 = vor.u32 %v4392_v22, %v3842_v52 }
 0x3a2   :  { %v3795_v31 = vmul.f32 -1.442695, %v1898_v27  ;;  %v3796_v13 = vmul.f32 -1.442695, %v1899_v18  ;;  %2212 = vmatpush.bf16.msra.mxu2 %v3841_v35  ;;  %v3810_v27 = vld [vmem:[#allocation10 + $0x18] sm:$0xf0] }
 0x3a3   :  { %2225 = vmatpush.bf16.msra.mxu3 %v3845_v41 }
 0x3a4   :  { %4583 = vpow2.f32 %v3795_v31  ;;  %v3809_v31 = vor.u32 %v4386_v51, %v3808_v26 }
 0x3a5   :  { %4585 = vpow2.f32 %v3796_v13  ;;  %v3813_v13 = vor.u32 %v4384_v23, %v3810_v27  ;;  %v4043_v23 = vld [vmem:[#allocation10 + $0xe0] sm:$0xf]  ;;  %v4445_v27 = vld [vmem:[#allocation10 + $0xec] sm:$0xf0] }
 0x3a6   :  { %v1881_v29 = vpop.f32.mrf.mxu2  ;;  %v1894_v45 = vpop.f32.mrf.mxu3  ;;  %2213 = vmatpush.bf16.msra.mxu2 %v3825_v7 }
 0x3a7   :  { %v1901_v50 = vadd.f32 %v1894_v45, %v5020_v40  ;;  %v1857_v0 = vpop.f32.mrf.mxu0  ;;  %v1870_v60 = vpop.f32.mrf.mxu1  ;;  %v4383_v40 = vld [vmem:[#allocation10 + $0x4] sm:$0xf]  ;;  %2226 = vmatpush.bf16.msra.mxu3 %v3829_v20  ;;  %v1900_v38 = vadd.f32 %v1881_v29, %v5017_v39 }
 0x3a8   :  { %v3805_v56 = vor.u32 %v4383_v40, %v3802_v16 }
 0x3a9   :  { %v3797_v55 = vmul.f32 -1.442695, %v1901_v50 }
 0x3aa   :  { %v4584_v62 = vpop.eup %4583  ;;  %2201 = vmatpush.bf16.msrb.mxu1 %v3805_v56  ;;  %2214 = vmatpush.bf16.msra.mxu2 %v3809_v31  ;;  %v4045_v31 = vld [vmem:[#allocation10 + $0xf0] sm:$0xf0] }
 0x3ab   :  { %v4586_v1 = vpop.eup %4585  ;;  %v1905_v5 = vadd.f32 1.0, %v4584_v62  ;;  %4587 = vpow2.f32 %v3797_v55  ;;  %2227 = vmatpush.bf16.msra.mxu3 %v3813_v13  ;;  %v4051_v13 = vld [vmem:[#allocation10 + $0xe8] sm:$0xf] }
 0x3ac   :  { %v1924_v14 = vadd.f32 1.0, %v4586_v1 }
 0x3ad   :  { %4589 = vrcp.f32 %v1905_v5  ;;  %v1917_v22 = vand.u32 2147483648, %v1905_v5  ;;  %v1915_v45 = vand.u32 2147483647, %v1905_v5  ;;  %vm1911_vm1 = vweird.f32 %v1905_v5 }
 0x3ae   :  { %4591 = vrcp.f32 %v1924_v14  ;;  %v1883_v18 = vpop.f32.mrf.mxu2  ;;  %v1896_v12 = vpop.f32.mrf.mxu3  ;;  %v1936_v41 = vand.u32 2147483648, %v1924_v14  ;;  %v1934_v46 = vand.u32 2147483647, %v1924_v14  ;;  %vm1930_vm3 = vweird.f32 %v1924_v14 }
 0x3af   :  { %v1918_v39 = vor.u32 1.1754944e-38, %v1917_v22  ;;  %vm1916_vm4 = vcmp.eq.f32.partialorder %v1915_v45, 8.507059e+37  ;;  %v4443_v18 = vld [vmem:[#allocation10 + $0xe4] sm:$0xf]  ;;  %v4044_v12 = vor.u32 %v4445_v27, %v4043_v23  ;;  %v4029_v22 = vld [vmem:[#allocation10 + $0xd0] sm:$0xf0] }
 0x3b0   :  { %v1937_v11 = vor.u32 1.1754944e-38, %v1936_v41  ;;  %vm1935_vm6 = vcmp.eq.f32.partialorder %v1934_v46, 8.507059e+37  ;;  %v4442_v45 = vld [vmem:[#allocation10 + $0xd4] sm:$0xf0]  ;;  %v4440_v46 = vld [vmem:[#allocation10 + $0xcc] sm:$0xf] }
 0x3b1   :  { %v4588_v30 = vpop.eup %4587  ;;  %2516 = vmatpush.bf16.msrb.mxu0 %v4044_v12  ;;  %v4429_v23 = vld [vmem:[#allocation10 + $0x6c] sm:$0xf0]  ;;  %v4427_v27 = vld [vmem:[#allocation10 + $0x64] sm:$0xf] }
 0x3b2   :  { %v1944_v15 = vadd.f32 1.0, %v4588_v30  ;;  %v4446_v30 = vld [vmem:[#allocation10 + $0xf4] sm:$0xf0] }
 0x3b3   :  { %v4590_v33 = vpop.eup %4589 }
 0x3b4   :  { %v4592_v61 = vpop.eup %4591  ;;  %v1907_v9 = vmul.f32 %v4590_v33, %v1905_v5  ;;  %4593 = vrcp.f32 %v1944_v15  ;;  %vm1912_vm15 = vweird.f32 %v4590_v33  ;;  %v1956_v10 = vand.u32 2147483648, %v1944_v15 }
 0x3b5   :  { %v1926_v3 = vmul.f32 %v4592_v61, %v1924_v14  ;;  %4595 = vtanh.f32 %v1900_v38  ;;  %vm1931_vm0 = vweird.f32 %v4592_v61  ;;  %vm1913_vm2 = vmor %vm1911_vm1, %vm1912_vm15  ;;  %vm1950_vm9 = vweird.f32 %v1944_v15  ;;  %v4053_v38 = vld [vmem:[#allocation10 + $0xf8] sm:$0xf0] }
 0x3b6   :  { %v1908_v24 = vsub.f32 1.0, %v1907_v9  ;;  %vm1932_vm5 = vmor %vm1930_vm3, %vm1931_vm0  ;;  %v1954_v1 = vand.u32 2147483647, %v1944_v15  ;;  %v1957_v54 = vor.u32 1.1754944e-38, %v1956_v10  ;;  %v4027_v9 = vld [vmem:[#allocation10 + $0xc0] sm:$0xf] }
 0x3b7   :  { %v1927_v35 = vsub.f32 1.0, %v1926_v3  ;;  %v4441_v3 = vld [vmem:[#allocation10 + $0xcc] sm:$0xf0]  ;;  %v3997_v10 = vld [vmem:[#allocation10 + $0x90] sm:$0xf0] }
 0x3b8   :  { %v1909_v52 = vmul.f32 %v4590_v33, %v1908_v24  ;;  %vm1955_vm11 = vcmp.eq.f32.partialorder %v1954_v1, 8.507059e+37  ;;  %v4439_v24 = vld [vmem:[#allocation10 + $0xc4] sm:$0xf]  ;;  %v4003_v1 = vld [vmem:[#allocation10 + $0x88] sm:$0xf] }
 0x3b9   :  { %v1928_v32 = vmul.f32 %v4592_v61, %v1927_v35  ;;  %v4028_v35 = vor.u32 %v4441_v3, %v4027_v9  ;;  %v4032_v41 = vor.u32 %v4439_v24, %v4029_v22  ;;  %v4428_v9 = vld [vmem:[#allocation10 + $0x6c] sm:$0xf]  ;;  %v3989_v3 = vld [vmem:[#allocation10 + $0x78] sm:$0xf0] }
 0x3ba   :  { %v4594_v47 = vpop.eup %4593  ;;  %v1910_v50 = vadd.f32 %v4590_v33, %v1909_v52  ;;  %v4035_v52 = vld [vmem:[#allocation10 + $0xc8] sm:$0xf]  ;;  %v3992_v24 = vor.u32 %v4428_v9, %v3989_v3 }
 0x3bb   :  { %v1946_v29 = vmul.f32 %v4594_v47, %v1944_v15  ;;  %v1929_v0 = vadd.f32 %v4592_v61, %v1928_v32  ;;  %v4596_v17 = vpop.eup %4595  ;;  %vm1951_vm8 = vweird.f32 %v4594_v47  ;;  %v4048_v15 = vor.u32 %v4443_v18, %v4045_v31  ;;  %2517 = vmatpush.bf16.msrb.mxu0 %v4028_v35 }
 0x3bc   :  { %v1914_v60 = vsel %vm1913_vm2, %v4590_v33, %v1910_v50  ;;  %vm1952_vm10 = vmor %vm1950_vm9, %vm1951_vm8  ;;  %v4444_v33 = vld [vmem:[#allocation10 + $0xec] sm:$0xf]  ;;  %v4036_v32 = vor.u32 %v4442_v45, %v4035_v52  ;;  %v3963_v52 = vld [vmem:[#allocation10 + $0x40] sm:$0xf] }
 0x3bd   :  { %v1919_v53 = vsel %vm1916_vm4, %v1918_v39, %v1914_v60  ;;  %v1947_v21 = vsub.f32 1.0, %v1946_v29  ;;  %v1933_v7 = vsel %vm1932_vm5, %v4592_v61, %v1929_v0  ;;  %v4056_v61 = vor.u32 %v4444_v33, %v4053_v38  ;;  %2529 = vmatpush.bf16.msra.mxu1 %v4048_v15  ;;  %v4011_v39 = vld [vmem:[#allocation10 + $0xa0] sm:$0xf]  ;;  %v4437_v29 = vld [vmem:[#allocation10 + $0xac] sm:$0xf0] }
 0x3be   :  { %v1962_v59 = vmul.f32 %v4596_v17, %v1919_v53  ;;  %v1938_v44 = vsel %vm1935_vm6, %v1937_v11, %v1933_v7  ;;  %v4435_v0 = vld [vmem:[#allocation10 + $0xa4] sm:$0xf]  ;;  %v4012_v60 = vor.u32 %v4437_v29, %v4011_v39  ;;  %v4013_v11 = vld [vmem:[#allocation10 + $0xb0] sm:$0xf0]  ;;  %v4019_v17 = vld [vmem:[#allocation10 + $0xa8] sm:$0xf] }
 0x3bf   :  { %v1948_v55 = vmul.f32 %v4594_v47, %v1947_v21  ;;  %v1961_v20 = vmul.f32 %v1938_v44, %v5141_v25  ;;  %2555 = vmatpush.bf16.msrb.mxu3 %v4056_v61  ;;  %v4438_v53 = vld [vmem:[#allocation10 + $0xb4] sm:$0xf0]  ;;  %v4016_v21 = vor.u32 %v4435_v0, %v4013_v11  ;;  %v4436_v7 = vld [vmem:[#allocation10 + $0xac] sm:$0xf]  ;;  %v4425_v45 = vld [vmem:[#allocation10 + $0x4c] sm:$0xf0] }
 0x3c0   :  { %v4020_v28 = vor.u32 %v4438_v53, %v4019_v17  ;;  %2518 = vmatpush.bf16.msrb.mxu0 %v4012_v60  ;;  %v4430_v15 = vld [vmem:[#allocation10 + $0x74] sm:$0xf0]  ;;  %v3973_v29 = vld [vmem:[#allocation10 + $0x58] sm:$0xf0]  ;;  %v3947_v0 = vld [vmem:[#allocation10 + $0x20] sm:$0xf] }
 0x3c1   :  { %v1963_v62 = vadd.f32 %v1962_v59, %v1961_v20  ;;  %v1949_v36 = vadd.f32 %v4594_v47, %v1948_v55  ;;  %2530 = vmatpush.bf16.msra.mxu1 %v4032_v41  ;;  %v4021_v59 = vld [vmem:[#allocation10 + $0xb8] sm:$0xf0]  ;;  %v3995_v55 = vld [vmem:[#allocation10 + $0x80] sm:$0xf]  ;;  %v4433_v20 = vld [vmem:[#allocation10 + $0x8c] sm:$0xf0] }
 0x3c2   :  { %v4024_v44 = vor.u32 %v4436_v7, %v4021_v59  ;;  %v4423_v41 = vld [vmem:[#allocation10 + $0x44] sm:$0xf]  ;;  %v4421_v60 = vld [vmem:[#allocation10 + $0x2c] sm:$0xf0]  ;;  %v3949_v7 = vld [vmem:[#allocation10 + $0x30] sm:$0xf0] }
 0x3c3   :  { %4597 = vtanh.f32 %v1963_v62  ;;  %v5157_v40 = vsel %vm1972_vm7, %v1963_v62, %v5141_v25  ;;  %v1953_v5 = vsel %vm1952_vm10, %v4594_v47, %v1949_v36  ;;  %v4037_v47 = vld [vmem:[#allocation10 + $0xd8] sm:$0xf0]  ;;  %v4431_v62 = vld [vmem:[#allocation10 + $0x84] sm:$0xf]  ;;  %v3996_v36 = vor.u32 %v4433_v20, %v3995_v55  ;;  %v3955_v59 = vld [vmem:[#allocation10 + $0x28] sm:$0xf] }
 0x3c4   :  { %v1958_v26 = vsel %vm1955_vm11, %v1957_v54, %v1953_v5  ;;  %v4040_v50 = vor.u32 %v4440_v46, %v4037_v47  ;;  %v4434_v5 = vld [vmem:[#allocation10 + $0x94] sm:$0xf0]  ;;  %v4000_v54 = vor.u32 %v4431_v62, %v3997_v10  ;;  %v3964_v46 = vor.u32 %v4425_v45, %v3963_v52  ;;  %v3971_v47 = vld [vmem:[#allocation10 + $0x48] sm:$0xf]  ;;  %v4420_v10 = vld [vmem:[#allocation10 + $0x2c] sm:$0xf] }
 0x3c5   :  { %2531 = vmatpush.bf16.msra.mxu1 %v4016_v21  ;;  %2519 = vmatpush.bf16.msrb.mxu0 %v3996_v36  ;;  %v3948_v21 = vor.u32 %v4421_v60, %v3947_v0  ;;  %v4422_v36 = vld [vmem:[#allocation10 + $0x34] sm:$0xf0] }
 0x3c6   :  { %2556 = vmatpush.bf16.msrb.mxu3 %v4040_v50  ;;  %v4424_v50 = vld [vmem:[#allocation10 + $0x4c] sm:$0xf] }
 0x3c7   :  { %v3976_v53 = vor.u32 %v4424_v50, %v3973_v29 }
 0x3c9   :  { %v4598_v16 = vpop.eup %4597  ;;  %2532 = vmatpush.bf16.msra.mxu1 %v4000_v54 }
 0x3ca   :  { %v1965_v14 = vmul.f32 %v4598_v16, %v1958_v26  ;;  %2557 = vmatpush.bf16.msrb.mxu3 %v4024_v44  ;;  %v4004_v16 = vor.u32 %v4434_v5, %v4003_v1  ;;  %v4432_v26 = vld [vmem:[#allocation10 + $0x8c] sm:$0xf]  ;;  %v3957_v1 = vld [vmem:[#allocation10 + $0x38] sm:$0xf0]  ;;  %v3956_v5 = vor.u32 %v4422_v36, %v3955_v59 }
 0x3cb   :  { %v3960_v54 = vor.u32 %v4420_v10, %v3957_v1 }
 0x3cc   :  { %v5161_v56 = vsel %vm1972_vm7, %v1965_v14, %v5145_v19  ;;  %v1978_v51 = vsel %vm1972_vm7, %v1965_v14, 0.0  ;;  %v4052_v19 = vor.u32 %v4446_v30, %v4051_v13  ;;  %v4005_v14 = vld [vmem:[#allocation10 + $0x98] sm:$0xf0]  ;;  %v3981_v13 = vld [vmem:[#allocation10 + $0x70] sm:$0xf0] }
 0x3cd   :  { %1980 = vst [vmem:[#allocation13 + $0x20] sm:$0xff] %v1978_v51  ;;  %v1988_v25 = vpack.c.bf16 %v5161_v56, %v5161_v56  ;;  %v4008_v51 = vor.u32 %v4432_v26, %v4005_v14  ;;  %v3987_v30 = vld [vmem:[#allocation10 + $0x68] sm:$0xf]  ;;  %v3984_v38 = vor.u32 %v4427_v27, %v3981_v13  ;;  %v4417_v26 = vld [vmem:[#allocation10 + $0xc] sm:$0xf0] }
 0x3ce   :  { %2542 = vmatpush.bf16.msrb.mxu2 %v4052_v19  ;;  %v3988_v61 = vor.u32 %v4430_v15, %v3987_v30  ;;  %v4415_v14 = vld [vmem:[#allocation10 + $0x4] sm:$0xf]  ;;  %v3941_v13 = vld [vmem:[#allocation10 + $0x18] sm:$0xf0] }
 0x3cf   :  { %2189 = vmatmul.bf16.vlgmr.msra.gmra.mxu0 %v1988_v25  ;;  %2202 = vmatmul.bf16.vlgmr.msrb.gmra.mxu1 %v1988_v25 }
 0x3d0   :  { %2215 = vmatmul.bf16.vlgmr.msra.gmra.mxu2 %v1988_v25  ;;  %2228 = vmatmul.bf16.vlgmr.msra.gmra.mxu3 %v1988_v25  ;;  %v3979_v25 = vld [vmem:[#allocation10 + $0x60] sm:$0xf] }
 0x3d1   :  { %2558 = vmatpush.bf16.msrb.mxu3 %v4008_v51  ;;  %v3980_v31 = vor.u32 %v4429_v23, %v3979_v25  ;;  %2533 = vmatpush.bf16.msra.mxu1 %v3984_v38  ;;  %v3933_v25 = vld [vmem:[#allocation10 + $0x10] sm:$0xf0]  ;;  %v3939_v23 = vld [vmem:[#allocation10 + $0x8] sm:$0xf] }
 0x3d2   :  { %2543 = vmatpush.bf16.msrb.mxu2 %v4036_v32  ;;  %v3965_v32 = vld [vmem:[#allocation10 + $0x50] sm:$0xf0] }
 0x3d3   :  { %2520 = vmatpush.bf16.msrb.mxu0 %v3980_v31  ;;  %v4416_v31 = vld [vmem:[#allocation10 + $0xc] sm:$0xf] }
 0x3d4   :  { %v3944_v38 = vor.u32 %v4416_v31, %v3941_v13  ;;  %v4477_v31 = vld [vmem:[#allocation10 + $0xec] sm:$0xf0]  ;;  %v4475_v13 = vld [vmem:[#allocation10 + $0xe4] sm:$0xf] }
 0x3d5   :  { %2559 = vmatpush.bf16.msrb.mxu3 %v3992_v24 }
 0x3d6   :  { %2544 = vmatpush.bf16.msrb.mxu2 %v4020_v28  ;;  %v4419_v28 = vld [vmem:[#allocation10 + $0x24] sm:$0xf] }
 0x3d7   :  { %2521 = vmatpush.bf16.msrb.mxu0 %v3964_v46  ;;  %v3952_v62 = vor.u32 %v4419_v28, %v3949_v7 }
 0x3d9   :  { %2560 = vmatpush.bf16.msrb.mxu3 %v3976_v53 }
 0x3da   :  { %2545 = vmatpush.bf16.msrb.mxu2 %v4004_v16  ;;  %v3931_v16 = vld [vmem:[#allocation10] sm:$0xf] }
 0x3db   :  { %2522 = vmatpush.bf16.msrb.mxu0 %v3948_v21 }
 0x3dd   :  { %2561 = vmatpush.bf16.msrb.mxu3 %v3960_v54 }
 0x3de   :  { %2546 = vmatpush.bf16.msrb.mxu2 %v3988_v61 }
 0x3e1   :  { %2562 = vmatpush.bf16.msrb.mxu3 %v3944_v38 }
 0x44c   :  { %v2190_v18 = vpop.f32.mrf.mxu0  ;;  %v2203_v12 = vpop.f32.mrf.mxu1 }
 0x44d   :  { %v2233_v19 = vadd.f32 %v2190_v18, %v5023_v43  ;;  %v2234_v33 = vadd.f32 %v2203_v12, %v5045_v63  ;;  %v3968_v43 = vor.u32 %v4423_v41, %v3965_v32  ;;  %v4426_v63 = vld [vmem:[#allocation10 + $0x54] sm:$0xf0]  ;;  %v3936_v18 = vor.u32 %v4415_v14, %v3933_v25 }
 0x44e   :  { %v3972_v39 = vor.u32 %v4426_v63, %v3971_v47  ;;  %v4418_v12 = vld [vmem:[#allocation10 + $0x14] sm:$0xf0] }
 0x44f   :  { %v3926_v35 = vmul.f32 -1.442695, %v2233_v19  ;;  %v3927_v22 = vmul.f32 -1.442695, %v2234_v33  ;;  %2534 = vmatpush.bf16.msra.mxu1 %v3968_v43  ;;  %v3940_v19 = vor.u32 %v4418_v12, %v3939_v23  ;;  %v4174_v12 = vld [vmem:[#allocation10 + $0xe0] sm:$0xf] }
 0x450   :  { %2547 = vmatpush.bf16.msrb.mxu2 %v3972_v39 }
 0x451   :  { %4599 = vpow2.f32 %v3926_v35 }
 0x452   :  { %4601 = vpow2.f32 %v3927_v22 }
 0x453   :  { %v2216_v11 = vpop.f32.mrf.mxu2  ;;  %v2229_v17 = vpop.f32.mrf.mxu3  ;;  %2535 = vmatpush.bf16.msra.mxu1 %v3952_v62 }
 0x454   :  { %v2236_v44 = vadd.f32 %v2229_v17, %v5033_v49  ;;  %v2192_v55 = vpop.f32.mrf.mxu0  ;;  %v2205_v20 = vpop.f32.mrf.mxu1  ;;  %v3932_v49 = vor.u32 %v4417_v26, %v3931_v16  ;;  %2548 = vmatpush.bf16.msrb.mxu2 %v3956_v5  ;;  %v2235_v22 = vadd.f32 %v2216_v11, %v5030_v48 }
 0x455   :  { %v2306_v62 = vpop.permute.xlu2 %2305 }
 0x456   :  { %v3928_v51 = vmul.f32 -1.442695, %v2236_v44  ;;  %2523 = vmatpush.bf16.msrb.mxu0 %v3932_v49  ;;  %vm2307_vm4 = vcmp.eq.s32.totalorder %v2306_v62, 1 }
 0x457   :  { %v4600_v27 = vpop.eup %4599  ;;  %2536 = vmatpush.bf16.msra.mxu1 %v3936_v18 }
 0x458   :  { %v4602_v30 = vpop.eup %4601  ;;  %v2240_v15 = vadd.f32 1.0, %v4600_v27  ;;  %4603 = vpow2.f32 %v3928_v51  ;;  %2549 = vmatpush.bf16.msrb.mxu2 %v3940_v19  ;;  %v4182_v19 = vld [vmem:[#allocation10 + $0xe8] sm:$0xf] }
 0x459   :  { %v2259_v33 = vadd.f32 1.0, %v4602_v30  ;;  %v4175_v30 = vor.u32 %v4477_v31, %v4174_v12  ;;  %v4112_v31 = vld [vmem:[#allocation10 + $0x70] sm:$0xf0] }
 0x45a   :  { %4605 = vrcp.f32 %v2240_v15  ;;  %v2252_v43 = vand.u32 2147483648, %v2240_v15  ;;  %v2250_v50 = vand.u32 2147483647, %v2240_v15  ;;  %vm2246_vm14 = vweird.f32 %v2240_v15 }
 0x45b   :  { %4607 = vrcp.f32 %v2259_v33  ;;  %v2218_v61 = vpop.f32.mrf.mxu2  ;;  %v2231_v9 = vpop.f32.mrf.mxu3  ;;  %v2271_v47 = vand.u32 2147483648, %v2259_v33  ;;  %v2269_v29 = vand.u32 2147483647, %v2259_v33  ;;  %vm2265_vm15 = vweird.f32 %v2259_v33  ;;  %2851 = vmatpush.bf16.msra.mxu0 %v4175_v30  ;;  %v4462_v30 = vld [vmem:[#allocation10 + $0x74] sm:$0xf0] }
 0x45c   :  { %v2253_v48 = vor.u32 1.1754944e-38, %v2252_v43  ;;  %vm2251_vm2 = vcmp.eq.f32.partialorder %v2250_v50, 8.507059e+37  ;;  %v4476_v61 = vld [vmem:[#allocation10 + $0xec] sm:$0xf]  ;;  %v4184_v9 = vld [vmem:[#allocation10 + $0xf8] sm:$0xf0] }
 0x45d   :  { %v2272_v53 = vor.u32 1.1754944e-38, %v2271_v47  ;;  %vm2270_vm3 = vcmp.eq.f32.partialorder %v2269_v29, 8.507059e+37  ;;  %v4472_v47 = vld [vmem:[#allocation10 + $0xcc] sm:$0xf]  ;;  %v4469_v29 = vld [vmem:[#allocation10 + $0xac] sm:$0xf0] }
 0x45e   :  { %v4604_v3 = vpop.eup %4603 }
 0x45f   :  { %v2279_v24 = vadd.f32 1.0, %v4604_v3  ;;  %v4187_v3 = vor.u32 %v4476_v61, %v4184_v9  ;;  %v4120_v61 = vld [vmem:[#allocation10 + $0x78] sm:$0xf0] }
 0x460   :  { %v4606_v35 = vpop.eup %4605 }
 0x461   :  { %v4608_v52 = vpop.eup %4607  ;;  %v2242_v45 = vmul.f32 %v4606_v35, %v2240_v15  ;;  %4609 = vrcp.f32 %v2279_v24  ;;  %vm2247_vm12 = vweird.f32 %v4606_v35  ;;  %v2291_v54 = vand.u32 2147483648, %v2279_v24  ;;  %v4176_v15 = vld [vmem:[#allocation10 + $0xf0] sm:$0xf0]  ;;  %2890 = vmatpush.bf16.msra.mxu3 %v4187_v3 }
 0x462   :  { %v2261_v41 = vmul.f32 %v4608_v52, %v2259_v33  ;;  %4611 = vtanh.f32 %v2235_v22  ;;  %vm2266_vm13 = vweird.f32 %v4608_v52  ;;  %vm2248_vm0 = vmor %vm2246_vm14, %vm2247_vm12  ;;  %vm2285_vm6 = vweird.f32 %v2279_v24  ;;  %v4478_v33 = vld [vmem:[#allocation10 + $0xf4] sm:$0xf0]  ;;  %v4471_v22 = vld [vmem:[#allocation10 + $0xc4] sm:$0xf] }
 0x463   :  { %v2243_v32 = vsub.f32 1.0, %v2242_v45  ;;  %vm2267_vm1 = vmor %vm2265_vm15, %vm2266_vm13  ;;  %v2289_v26 = vand.u32 2147483647, %v2279_v24  ;;  %v2292_v51 = vor.u32 1.1754944e-38, %v2291_v54  ;;  %v4179_v38 = vor.u32 %v4475_v13, %v4176_v15  ;;  %v4160_v45 = vld [vmem:[#allocation10 + $0xd0] sm:$0xf0] }
 0x464   :  { %v2262_v46 = vsub.f32 1.0, %v2261_v41  ;;  %v4166_v41 = vld [vmem:[#allocation10 + $0xc8] sm:$0xf] }
 0x465   :  { %v2244_v63 = vmul.f32 %v4606_v35, %v2243_v32  ;;  %vm2290_vm8 = vcmp.eq.f32.partialorder %v2289_v26, 8.507059e+37  ;;  %2864 = vmatpush.bf16.msrb.mxu1 %v4179_v38  ;;  %v4474_v32 = vld [vmem:[#allocation10 + $0xd4] sm:$0xf0]  ;;  %v4464_v26 = vld [vmem:[#allocation10 + $0x8c] sm:$0xf] }
 0x466   :  { %v2263_v39 = vmul.f32 %v4608_v52, %v2262_v46  ;;  %v4163_v46 = vor.u32 %v4471_v22, %v4160_v45  ;;  %v4167_v43 = vor.u32 %v4474_v32, %v4166_v41  ;;  %v4118_v13 = vld [vmem:[#allocation10 + $0x68] sm:$0xf]  ;;  %v4457_v22 = vld [vmem:[#allocation10 + $0x4c] sm:$0xf0]  ;;  %v4096_v45 = vld [vmem:[#allocation10 + $0x50] sm:$0xf0] }
 0x467   :  { %v4610_v0 = vpop.eup %4609  ;;  %v2245_v60 = vadd.f32 %v4606_v35, %v2244_v63  ;;  %v4168_v63 = vld [vmem:[#allocation10 + $0xd8] sm:$0xf0]  ;;  %v4119_v38 = vor.u32 %v4462_v30, %v4118_v13  ;;  %v4102_v32 = vld [vmem:[#allocation10 + $0x48] sm:$0xf] }
 0x468   :  { %v2264_v11 = vadd.f32 %v4608_v52, %v2263_v39  ;;  %v2281_v17 = vmul.f32 %v4610_v0, %v2279_v24  ;;  %v4612_v28 = vpop.eup %4611  ;;  %vm2286_vm5 = vweird.f32 %v4610_v0  ;;  %v4158_v24 = vld [vmem:[#allocation10 + $0xc0] sm:$0xf]  ;;  %v4171_v50 = vor.u32 %v4472_v47, %v4168_v63  ;;  %v4104_v47 = vld [vmem:[#allocation10 + $0x58] sm:$0xf0] }
 0x469   :  { %v2249_v21 = vsel %vm2248_vm0, %v4606_v35, %v2245_v60  ;;  %vm2287_vm7 = vmor %vm2285_vm6, %vm2286_vm5  ;;  %v4473_v35 = vld [vmem:[#allocation10 + $0xcc] sm:$0xf0]  ;;  %2865 = vmatpush.bf16.msrb.mxu1 %v4163_v46  ;;  %v4142_v39 = vld [vmem:[#allocation10 + $0xa0] sm:$0xf] }
 0x46a   :  { %v2254_v7 = vsel %vm2251_vm2, %v2253_v48, %v2249_v21  ;;  %v2268_v59 = vsel %vm2267_vm1, %v4608_v52, %v2264_v11  ;;  %v2282_v44 = vsub.f32 1.0, %v2281_v17  ;;  %v4159_v52 = vor.u32 %v4473_v35, %v4158_v24  ;;  %2891 = vmatpush.bf16.msra.mxu3 %v4171_v50  ;;  %v4144_v48 = vld [vmem:[#allocation10 + $0xb0] sm:$0xf0]  ;;  %v4150_v11 = vld [vmem:[#allocation10 + $0xa8] sm:$0xf] }
 0x46b   :  { %v2273_v55 = vsel %vm2270_vm3, %v2272_v53, %v2268_v59  ;;  %v2297_v20 = vmul.f32 %v4612_v28, %v2254_v7  ;;  %v4143_v60 = vor.u32 %v4469_v29, %v4142_v39  ;;  %v4470_v17 = vld [vmem:[#allocation10 + $0xb4] sm:$0xf0]  ;;  %v4468_v28 = vld [vmem:[#allocation10 + $0xac] sm:$0xf]  ;;  %v4152_v7 = vld [vmem:[#allocation10 + $0xb8] sm:$0xf0] }
 0x46c   :  { %v2296_v36 = vmul.f32 %v2273_v55, %v5157_v40  ;;  %v2283_v10 = vmul.f32 %v4610_v0, %v2282_v44  ;;  %2852 = vmatpush.bf16.msra.mxu0 %v4159_v52  ;;  %v4151_v21 = vor.u32 %v4470_v17, %v4150_v11  ;;  %v4155_v59 = vor.u32 %v4468_v28, %v4152_v7  ;;  %v4126_v44 = vld [vmem:[#allocation10 + $0x80] sm:$0xf]  ;;  %v4465_v55 = vld [vmem:[#allocation10 + $0x8c] sm:$0xf0]  ;;  %v4455_v52 = vld [vmem:[#allocation10 + $0x44] sm:$0xf] }
 0x46d   :  { %v4127_v62 = vor.u32 %v4465_v55, %v4126_v44  ;;  %v4094_v35 = vld [vmem:[#allocation10 + $0x40] sm:$0xf]  ;;  %v4456_v46 = vld [vmem:[#allocation10 + $0x4c] sm:$0xf]  ;;  %v4453_v50 = vld [vmem:[#allocation10 + $0x2c] sm:$0xf0] }
 0x46e   :  { %v2298_v1 = vadd.f32 %v2297_v20, %v2296_v36  ;;  %v2284_v5 = vadd.f32 %v4610_v0, %v2283_v10  ;;  %v4463_v20 = vld [vmem:[#allocation10 + $0x84] sm:$0xf]  ;;  %2892 = vmatpush.bf16.msra.mxu3 %v4155_v59  ;;  %v4128_v36 = vld [vmem:[#allocation10 + $0x90] sm:$0xf0]  ;;  %v4134_v10 = vld [vmem:[#allocation10 + $0x88] sm:$0xf]  ;;  %v4095_v41 = vor.u32 %v4457_v22, %v4094_v35 }
 0x46f   :  { %v4078_v63 = vld [vmem:[#allocation10 + $0x20] sm:$0xf]  ;;  %v4080_v11 = vld [vmem:[#allocation10 + $0x30] sm:$0xf0]  ;;  %v4086_v17 = vld [vmem:[#allocation10 + $0x28] sm:$0xf] }
 0x470   :  { %4613 = vtanh.f32 %v2298_v1  ;;  %v5173_v16 = vsel %vm2307_vm4, %v2298_v1, %v5157_v40  ;;  %v2288_v14 = vsel %vm2287_vm7, %v4610_v0, %v2284_v5  ;;  %v4467_v0 = vld [vmem:[#allocation10 + $0xa4] sm:$0xf]  ;;  %2853 = vmatpush.bf16.msra.mxu0 %v4143_v60  ;;  %v4466_v1 = vld [vmem:[#allocation10 + $0x94] sm:$0xf0]  ;;  %v4131_v5 = vor.u32 %v4463_v20, %v4128_v36  ;;  %v4452_v44 = vld [vmem:[#allocation10 + $0x2c] sm:$0xf] }
 0x471   :  { %v2293_v23 = vsel %vm2290_vm8, %v2292_v51, %v2288_v14  ;;  %v4147_v53 = vor.u32 %v4467_v0, %v4144_v48  ;;  %v4135_v54 = vor.u32 %v4466_v1, %v4134_v10  ;;  %v4136_v14 = vld [vmem:[#allocation10 + $0x98] sm:$0xf0]  ;;  %v4107_v0 = vor.u32 %v4456_v46, %v4104_v47  ;;  %v4451_v48 = vld [vmem:[#allocation10 + $0x24] sm:$0xf]  ;;  %v4454_v59 = vld [vmem:[#allocation10 + $0x34] sm:$0xf0] }
 0x472   :  { %v4139_v51 = vor.u32 %v4464_v26, %v4136_v14  ;;  %v4079_v60 = vor.u32 %v4453_v50, %v4078_v63  ;;  %v4083_v7 = vor.u32 %v4451_v48, %v4080_v11  ;;  %v4088_v55 = vld [vmem:[#allocation10 + $0x38] sm:$0xf0]  ;;  %v4087_v20 = vor.u32 %v4454_v59, %v4086_v17  ;;  %v4062_v36 = vld [vmem:[#allocation10] sm:$0xf]  ;;  %v4449_v10 = vld [vmem:[#allocation10 + $0xc] sm:$0xf0]  ;;  %v2641_v17 = vpop.permute.xlu0 %2640 }
 0x473   :  { %2866 = vmatpush.bf16.msrb.mxu1 %v4147_v53  ;;  %v4447_v1 = vld [vmem:[#allocation10 + $0x4] sm:$0xf]  ;;  %v4070_v26 = vld [vmem:[#allocation10 + $0x8] sm:$0xf]  ;;  %vm2642_vm1 = vcmp.eq.s32.totalorder %v2641_v17, 1 }
 0x474   :  { %2854 = vmatpush.bf16.msra.mxu0 %v4127_v62  ;;  %2893 = vmatpush.bf16.msra.mxu3 %v4139_v51  ;;  %v4091_v62 = vor.u32 %v4452_v44, %v4088_v55 }
 0x476   :  { %v4614_v25 = vpop.eup %4613 }
 0x477   :  { %v2300_v27 = vmul.f32 %v4614_v25, %v2293_v23  ;;  %2867 = vmatpush.bf16.msrb.mxu1 %v4131_v5  ;;  %v4110_v25 = vld [vmem:[#allocation10 + $0x60] sm:$0xf]  ;;  %v4461_v23 = vld [vmem:[#allocation10 + $0x6c] sm:$0xf0] }
 0x478   :  { %v4111_v12 = vor.u32 %v4461_v23, %v4110_v25  ;;  %v4450_v25 = vld [vmem:[#allocation10 + $0x14] sm:$0xf0]  ;;  %v4448_v23 = vld [vmem:[#allocation10 + $0xc] sm:$0xf] }
 0x479   :  { %v5177_v49 = vsel %vm2307_vm4, %v2300_v27, %v5161_v56  ;;  %v2313_v18 = vsel %vm2307_vm4, %v2300_v27, 0.0  ;;  %v4183_v56 = vor.u32 %v4478_v33, %v4182_v19  ;;  %v4459_v27 = vld [vmem:[#allocation10 + $0x64] sm:$0xf] }
 0x47a   :  { %2315 = vst [vmem:[#allocation13 + $0x28] sm:$0xff] %v2313_v18  ;;  %v2323_v40 = vpack.c.bf16 %v5177_v49, %v5177_v49  ;;  %v4115_v33 = vor.u32 %v4459_v27, %v4112_v31  ;;  %2855 = vmatpush.bf16.msra.mxu0 %v4111_v12  ;;  %v4072_v27 = vld [vmem:[#allocation10 + $0x18] sm:$0xf0]  ;;  %v4071_v12 = vor.u32 %v4450_v25, %v4070_v26 }
 0x47b   :  { %2877 = vmatpush.bf16.msra.mxu2 %v4183_v56  ;;  %v4460_v56 = vld [vmem:[#allocation10 + $0x6c] sm:$0xf]  ;;  %v4075_v13 = vor.u32 %v4448_v23, %v4072_v27  ;;  %v4486_v26 = vld [vmem:[#allocation11 + $0x38] sm:$0xff] }
 0x47c   :  { %2524 = vmatmul.bf16.vlgmr.msrb.gmra.mxu0 %v2323_v40  ;;  %2537 = vmatmul.bf16.vlgmr.msra.gmra.mxu1 %v2323_v40  ;;  %v4123_v9 = vor.u32 %v4460_v56, %v4120_v61  ;;  %v4482_v27 = vld [vmem:[#allocation11 + $0x18] sm:$0xff] }
 0x47d   :  { %2550 = vmatmul.bf16.vlgmr.msrb.gmra.mxu2 %v2323_v40  ;;  %2563 = vmatmul.bf16.vlgmr.msrb.gmra.mxu3 %v2323_v40 }
 0x47e   :  { %2868 = vmatpush.bf16.msrb.mxu1 %v4115_v33  ;;  %2894 = vmatpush.bf16.msra.mxu3 %v4123_v9 }
 0x47f   :  { %2878 = vmatpush.bf16.msra.mxu2 %v4167_v43  ;;  %2856 = vmatpush.bf16.msra.mxu0 %v4095_v41 }
 0x482   :  { %2895 = vmatpush.bf16.msra.mxu3 %v4107_v0 }
 0x483   :  { %2879 = vmatpush.bf16.msra.mxu2 %v4151_v21  ;;  %2857 = vmatpush.bf16.msra.mxu0 %v4079_v60 }
 0x486   :  { %2896 = vmatpush.bf16.msra.mxu3 %v4091_v62 }
 0x487   :  { %2880 = vmatpush.bf16.msra.mxu2 %v4135_v54  ;;  %v4064_v54 = vld [vmem:[#allocation10 + $0x10] sm:$0xf0] }
 0x488   :  { %v4067_v51 = vor.u32 %v4447_v1, %v4064_v54 }
 0x48a   :  { %2897 = vmatpush.bf16.msra.mxu3 %v4075_v13  ;;  %v4481_v13 = vld [vmem:[#allocation11 + $0x10] sm:$0xff] }
 0x48b   :  { %2881 = vmatpush.bf16.msra.mxu2 %v4119_v38 }
 0x4f9   :  { %v2525_v18 = vpop.f32.mrf.mxu0  ;;  %v2538_v40 = vpop.f32.mrf.mxu1 }
 0x4fa   :  { %v2568_v15 = vadd.f32 %v2525_v18, %v4964_v4  ;;  %v2569_v19 = vadd.f32 %v2538_v40, %v5057_v42  ;;  %v4099_v4 = vor.u32 %v4455_v52, %v4096_v45  ;;  %v4458_v42 = vld [vmem:[#allocation10 + $0x54] sm:$0xf0] }
 0x4fb   :  { %v4103_v43 = vor.u32 %v4458_v42, %v4102_v32 }
 0x4fc   :  { %v4057_v3 = vmul.f32 -1.442695, %v2568_v15  ;;  %v4058_v24 = vmul.f32 -1.442695, %v2569_v19  ;;  %2869 = vmatpush.bf16.msrb.mxu1 %v4099_v4 }
 0x4fd   :  { %2882 = vmatpush.bf16.msra.mxu2 %v4103_v43 }
 0x4fe   :  { %4615 = vpow2.f32 %v4057_v3 }
 0x4ff   :  { %4617 = vpow2.f32 %v4058_v24 }
 0x500   :  { %v2551_v39 = vpop.f32.mrf.mxu2  ;;  %v2564_v29 = vpop.f32.mrf.mxu3  ;;  %2870 = vmatpush.bf16.msrb.mxu1 %v4083_v7 }
 0x501   :  { %v2571_v53 = vadd.f32 %v2564_v29, %v5042_v58  ;;  %v2527_v21 = vpop.f32.mrf.mxu0  ;;  %v2540_v28 = vpop.f32.mrf.mxu1  ;;  %v4063_v58 = vor.u32 %v4449_v10, %v4062_v36  ;;  %2883 = vmatpush.bf16.msra.mxu2 %v4087_v20  ;;  %v2570_v56 = vadd.f32 %v2551_v39, %v5039_v57 }
 0x503   :  { %v4059_v5 = vmul.f32 -1.442695, %v2571_v53  ;;  %2858 = vmatpush.bf16.msra.mxu0 %v4063_v58  ;;  %v4484_v58 = vld [vmem:[#allocation11 + $0x28] sm:$0xff] }
 0x504   :  { %v4616_v14 = vpop.eup %4615  ;;  %2871 = vmatpush.bf16.msrb.mxu1 %v4067_v51  ;;  %v4483_v51 = vld [vmem:[#allocation11 + $0x20] sm:$0xff] }
 0x505   :  { %v4618_v18 = vpop.eup %4617  ;;  %v2575_v40 = vadd.f32 1.0, %v4616_v14  ;;  %4619 = vpow2.f32 %v4059_v5  ;;  %2884 = vmatpush.bf16.msra.mxu2 %v4071_v12  ;;  %v4485_v14 = vld [vmem:[#allocation11 + $0x30] sm:$0xff] }
 0x506   :  { %v2594_v31 = vadd.f32 1.0, %v4618_v18 }
 0x507   :  { %4621 = vrcp.f32 %v2575_v40  ;;  %v2587_v22 = vand.u32 2147483648, %v2575_v40  ;;  %v2585_v41 = vand.u32 2147483647, %v2575_v40  ;;  %vm2581_vm11 = vweird.f32 %v2575_v40  ;;  %3061 = vmatpush.bf16.msrb.mxu0 %v4486_v26 }
 0x508   :  { %4623 = vrcp.f32 %v2594_v31  ;;  %v2553_v30 = vpop.f32.mrf.mxu2  ;;  %v2566_v15 = vpop.f32.mrf.mxu3  ;;  %v2606_v52 = vand.u32 2147483648, %v2594_v31  ;;  %v2604_v32 = vand.u32 2147483647, %v2594_v31  ;;  %vm2600_vm12 = vweird.f32 %v2594_v31 }
 0x509   :  { %v2588_v57 = vor.u32 1.1754944e-38, %v2587_v22  ;;  %vm2586_vm15 = vcmp.eq.f32.partialorder %v2585_v41, 8.507059e+37  ;;  %v4480_v30 = vld [vmem:[#allocation11 + $0x8] sm:$0xff] }
 0x50a   :  { %v2607_v63 = vor.u32 1.1754944e-38, %v2606_v52  ;;  %vm2605_vm0 = vcmp.eq.f32.partialorder %v2604_v32, 8.507059e+37 }
 0x50b   :  { %v4620_v19 = vpop.eup %4619  ;;  %3062 = vmatpush.bf16.msrb.mxu0 %v4485_v14  ;;  %v2976_v14 = vpop.permute.xlu1 %2975 }
 0x50c   :  { %v2614_v33 = vadd.f32 1.0, %v4620_v19 }
 0x50d   :  { %v4622_v38 = vpop.eup %4621 }
 0x50e   :  { %v4624_v61 = vpop.eup %4623  ;;  %v2577_v9 = vmul.f32 %v4622_v38, %v2575_v40  ;;  %4625 = vrcp.f32 %v2614_v33  ;;  %vm2582_vm9 = vweird.f32 %v4622_v38  ;;  %v2626_v59 = vand.u32 2147483648, %v2614_v33 }
 0x50f   :  { %v2596_v3 = vmul.f32 %v4624_v61, %v2594_v31  ;;  %4627 = vtanh.f32 %v2570_v56  ;;  %vm2601_vm10 = vweird.f32 %v4624_v61  ;;  %vm2583_vm13 = vmor %vm2581_vm11, %vm2582_vm9  ;;  %vm2620_vm3 = vweird.f32 %v2614_v33  ;;  %3063 = vmatpush.bf16.msrb.mxu0 %v4484_v58  ;;  %v4479_v56 = vld [vmem:[#allocation11] sm:$0xff] }
 0x510   :  { %v2578_v24 = vsub.f32 1.0, %v2577_v9  ;;  %vm2602_vm14 = vmor %vm2600_vm12, %vm2601_vm10  ;;  %v2624_v55 = vand.u32 2147483647, %v2614_v33  ;;  %v2627_v62 = vor.u32 1.1754944e-38, %v2626_v59 }
 0x511   :  { %v2597_v35 = vsub.f32 1.0, %v2596_v3 }
 0x512   :  { %v2579_v45 = vmul.f32 %v4622_v38, %v2578_v24  ;;  %vm2625_vm5 = vcmp.eq.f32.partialorder %v2624_v55, 8.507059e+37 }
 0x513   :  { %v2598_v4 = vmul.f32 %v4624_v61, %v2597_v35  ;;  %3064 = vmatpush.bf16.msrb.mxu0 %v4483_v51 }
 0x514   :  { %v4626_v42 = vpop.eup %4625  ;;  %v2580_v46 = vadd.f32 %v4622_v38, %v2579_v45 }
 0x515   :  { %v2599_v43 = vadd.f32 %v4624_v61, %v2598_v4  ;;  %v2616_v47 = vmul.f32 %v4626_v42, %v2614_v33  ;;  %v4628_v39 = vpop.eup %4627  ;;  %vm2621_vm2 = vweird.f32 %v4626_v42 }
 0x516   :  { %v2584_v50 = vsel %vm2583_vm13, %v4622_v38, %v2580_v46  ;;  %vm2622_vm4 = vmor %vm2620_vm3, %vm2621_vm2  ;;  %vm2977_vm2 = vcmp.eq.s32.totalorder %v2976_v14, 1 }
 0x517   :  { %v2589_v29 = vsel %vm2586_vm15, %v2588_v57, %v2584_v50  ;;  %v2603_v0 = vsel %vm2602_vm14, %v4624_v61, %v2599_v43  ;;  %v2617_v60 = vsub.f32 1.0, %v2616_v47  ;;  %3065 = vmatpush.bf16.msrb.mxu0 %v4482_v27 }
 0x518   :  { %v2608_v48 = vsel %vm2605_vm0, %v2607_v63, %v2603_v0  ;;  %v2632_v11 = vmul.f32 %v4628_v39, %v2589_v29 }
 0x519   :  { %v2631_v53 = vmul.f32 %v2608_v48, %v5173_v16  ;;  %v2618_v21 = vmul.f32 %v4626_v42, %v2617_v60 }
 0x51b   :  { %v2633_v28 = vadd.f32 %v2632_v11, %v2631_v53  ;;  %v2619_v7 = vadd.f32 %v4626_v42, %v2618_v21  ;;  %3066 = vmatpush.bf16.msrb.mxu0 %v4481_v13 }
 0x51d   :  { %4629 = vtanh.f32 %v2633_v28  ;;  %v5189_v44 = vsel %vm2642_vm1, %v2633_v28, %v5173_v16  ;;  %v2623_v20 = vsel %vm2622_vm4, %v4626_v42, %v2619_v7 }
 0x51e   :  { %v2628_v10 = vsel %vm2625_vm5, %v2627_v62, %v2623_v20 }
 0x51f   :  { %3067 = vmatpush.bf16.msrb.mxu0 %v4480_v30 }
 0x523   :  { %v4630_v36 = vpop.eup %4629  ;;  %3068 = vmatpush.bf16.msrb.mxu0 %v4479_v56 }
 0x524   :  { %v2635_v1 = vmul.f32 %v4630_v36, %v2628_v10 }
 0x526   :  { %v5193_v5 = vsel %vm2642_vm1, %v2635_v1, %v5177_v49  ;;  %v2648_v54 = vsel %vm2642_vm1, %v2635_v1, 0.0  ;;  %v186_v49 = vadd.f32 %v4970_v8, %v4961_v2 }
 0x527   :  { %2650 = vst [vmem:[#allocation13 + $0x30] sm:$0xff] %v2648_v54  ;;  %v2658_v16 = vpack.c.bf16 %v5193_v5, %v5193_v5 }
 0x529   :  { %2859 = vmatmul.bf16.vlgmr.msra.gmra.mxu0 %v2658_v16  ;;  %2872 = vmatmul.bf16.vlgmr.msrb.gmra.mxu1 %v2658_v16 }
 0x52a   :  { %2885 = vmatmul.bf16.vlgmr.msra.gmra.mxu2 %v2658_v16  ;;  %2898 = vmatmul.bf16.vlgmr.msra.gmra.mxu3 %v2658_v16 }
 0x5a6   :  { %v2860_v25 = vpop.f32.mrf.mxu0  ;;  %v2873_v23 = vpop.f32.mrf.mxu1 }
 0x5a7   :  { %v2903_v18 = vadd.f32 %v2860_v25, %v186_v49  ;;  %v2904_v40 = vadd.f32 %v2873_v23, %v5066_v6 }
 0x5a9   :  { %v4188_v12 = vmul.f32 -1.442695, %v2903_v18  ;;  %v4189_v31 = vmul.f32 -1.442695, %v2904_v40 }
 0x5ab   :  { %4631 = vpow2.f32 %v4188_v12 }
 0x5ac   :  { %4633 = vpow2.f32 %v4189_v31 }
 0x5ad   :  { %v2886_v15 = vpop.f32.mrf.mxu2  ;;  %v2899_v19 = vpop.f32.mrf.mxu3 }
 0x5ae   :  { %v2906_v33 = vadd.f32 %v2899_v19, %v5054_v37  ;;  %v2862_v38 = vpop.f32.mrf.mxu0  ;;  %v2875_v2 = vpop.f32.mrf.mxu1  ;;  %v2905_v37 = vadd.f32 %v2886_v15, %v5051_v34 }
 0x5b0   :  { %v4190_v8 = vmul.f32 -1.442695, %v2906_v33 }
 0x5b1   :  { %v4632_v61 = vpop.eup %4631 }
 0x5b2   :  { %v4634_v9 = vpop.eup %4633  ;;  %v2910_v6 = vadd.f32 1.0, %v4632_v61  ;;  %4635 = vpow2.f32 %v4190_v8 }
 0x5b3   :  { %v2929_v3 = vadd.f32 1.0, %v4634_v9 }
 0x5b4   :  { %4637 = vrcp.f32 %v2910_v6  ;;  %v2922_v57 = vand.u32 2147483648, %v2910_v6  ;;  %v2920_v63 = vand.u32 2147483647, %v2910_v6  ;;  %vm2916_vm8 = vweird.f32 %v2910_v6 }
 0x5b5   :  { %4639 = vrcp.f32 %v2929_v3  ;;  %v2888_v24 = vpop.f32.mrf.mxu2  ;;  %v2901_v35 = vpop.f32.mrf.mxu3  ;;  %v2941_v43 = vand.u32 2147483648, %v2929_v3  ;;  %v2939_v39 = vand.u32 2147483647, %v2929_v3  ;;  %vm2935_vm9 = vweird.f32 %v2929_v3 }
 0x5b6   :  { %v2923_v34 = vor.u32 1.1754944e-38, %v2922_v57  ;;  %vm2921_vm12 = vcmp.eq.f32.partialorder %v2920_v63, 8.507059e+37 }
 0x5b7   :  { %v2942_v11 = vor.u32 1.1754944e-38, %v2941_v43  ;;  %vm2940_vm13 = vcmp.eq.f32.partialorder %v2939_v39, 8.507059e+37 }
 0x5b8   :  { %v4636_v22 = vpop.eup %4635 }
 0x5b9   :  { %v2949_v52 = vadd.f32 1.0, %v4636_v22 }
 0x5ba   :  { %v4638_v45 = vpop.eup %4637 }
 0x5bb   :  { %v4640_v41 = vpop.eup %4639  ;;  %v2912_v4 = vmul.f32 %v4638_v45, %v2910_v6  ;;  %4641 = vrcp.f32 %v2949_v52  ;;  %vm2917_vm6 = vweird.f32 %v4638_v45  ;;  %v2961_v1 = vand.u32 2147483648, %v2949_v52 }
 0x5bc   :  { %v2931_v32 = vmul.f32 %v4640_v41, %v2929_v3  ;;  %4643 = vtanh.f32 %v2905_v37  ;;  %vm2936_vm7 = vweird.f32 %v4640_v41  ;;  %vm2918_vm10 = vmor %vm2916_vm8, %vm2917_vm6  ;;  %vm2955_vm15 = vweird.f32 %v2949_v52 }
 0x5bd   :  { %v2913_v42 = vsub.f32 1.0, %v2912_v4  ;;  %vm2937_vm11 = vmor %vm2935_vm9, %vm2936_vm7  ;;  %v2959_v54 = vand.u32 2147483647, %v2949_v52  ;;  %v2962_v26 = vor.u32 1.1754944e-38, %v2961_v1 }
 0x5be   :  { %v2932_v46 = vsub.f32 1.0, %v2931_v32 }
 0x5bf   :  { %v2914_v47 = vmul.f32 %v4638_v45, %v2913_v42  ;;  %vm2960_vm1 = vcmp.eq.f32.partialorder %v2959_v54, 8.507059e+37 }
 0x5c0   :  { %v2933_v50 = vmul.f32 %v4640_v41, %v2932_v46 }
 0x5c1   :  { %v4642_v29 = vpop.eup %4641  ;;  %v2915_v0 = vadd.f32 %v4638_v45, %v2914_v47 }
 0x5c2   :  { %v2934_v60 = vadd.f32 %v4640_v41, %v2933_v50  ;;  %v2951_v48 = vmul.f32 %v4642_v29, %v2949_v52  ;;  %v4644_v53 = vpop.eup %4643  ;;  %vm2956_vm14 = vweird.f32 %v4642_v29 }
 0x5c3   :  { %v2919_v17 = vsel %vm2918_vm10, %v4638_v45, %v2915_v0  ;;  %vm2957_vm0 = vmor %vm2955_vm15, %vm2956_vm14 }
 0x5c4   :  { %v2924_v21 = vsel %vm2921_vm12, %v2923_v34, %v2919_v17  ;;  %v2938_v28 = vsel %vm2937_vm11, %v4640_v41, %v2934_v60  ;;  %v2952_v7 = vsub.f32 1.0, %v2951_v48 }
 0x5c5   :  { %v2943_v59 = vsel %vm2940_vm13, %v2942_v11, %v2938_v28  ;;  %v2967_v55 = vmul.f32 %v4644_v53, %v2924_v21 }
 0x5c6   :  { %v2966_v20 = vmul.f32 %v2943_v59, %v5189_v44  ;;  %v2953_v62 = vmul.f32 %v4642_v29, %v2952_v7 }
 0x5c8   :  { %v2968_v36 = vadd.f32 %v2967_v55, %v2966_v20  ;;  %v2954_v10 = vadd.f32 %v4642_v29, %v2953_v62 }
 0x5ca   :  { %4645 = vtanh.f32 %v2968_v36  ;;  %v2958_v16 = vsel %vm2957_vm0, %v4642_v29, %v2954_v10 }
 0x5cb   :  { %v2963_v51 = vsel %vm2960_vm1, %v2962_v26, %v2958_v16 }
 0x5d0   :  { %v4646_v58 = vpop.eup %4645 }
 0x5d1   :  { %v2970_v49 = vmul.f32 %v4646_v58, %v2963_v51 }
 0x5d3   :  { %v2978_v25 = vsel %vm2977_vm2, %v2970_v49, %v5193_v5  ;;  %v2983_v44 = vsel %vm2977_vm2, %v2970_v49, 0.0  ;;  %v4518_v5 = vld [vmem:[%s5226_s6] ss:$0 sm:$0xff] }
 0x5d4   :  { %2985 = vst [vmem:[#allocation13 + $0x38] sm:$0xff] %v2983_v44  ;;  %v2992_v23 = vpack.c.bf16 %v2978_v25, %v2978_v25 }
 0x5d5   :  { %2990 = vst [vmem:[#allocation14] sm:$0xff] %v2978_v25  ;;  %3087 = dma.vmem_to_hbm [thread:$0]  %s3080_s24, 1024, %s3082_s22, [#allocation7], %s4828_s19, %s4828_s19, %s4829_s20  }
 0x5d6   :  { %3069 = vmatmul.bf16.vlgmr.msrb.gmra.mxu0 %v2992_v23  ;;  %3098 = dma.vmem_to_hbm [thread:$0]  %s3094_s18, 128, %s3096_s16, [#allocation15]  }
 0x653   :  { %v3070_v27 = vpop.f32.mrf.mxu0 }
 0x654   :  { %v3071_v18 = vadd.f32 %v4518_v5, %v3070_v27 }
 0x656   :  { %3074 = vst [vmem:[#allocation16] sm:$0xff] %v3071_v18 }
 0x657   :  { %3109 = dma.vmem_to_hbm [thread:$0]  %s3105_s26, 128, %s3107_s29, [#allocation15]  }
 0x65b   :  { %v3072_v40 = vpop.f32.mrf.mxu0 }
 0x65c   :  { %4822 = dma.done.wait [#allocation7], 1024  }
 0x65d   :  { %4823 = vsyncadd [#allocation7], 4294966272 }
 0x65e   :  { %4824 = dma.done.wait [#allocation15], 256  }
 0x65f   :  { %4825 = vsyncadd [#allocation15], 4294967040 }
 0x660   :  { %3122 = vsyncpa [#allocation6], 1 }
 0x661   :  { %3123 = vsyncpa [#allocation9], 1 }
 0x662   :  { %3124 = vsyncpa [#allocation12], 1 }
 0x663   :  { %3125 = vsyncpa [#allocation7], 1 }
 0x664   :  { %3126 = vsyncpa [#allocation15], 1 }

</bundles_post_ra>
